<compile_context>
chip_gen: v7x
topology: tpu7x:2x2x1
jax: 0.10.0
libtpu: 0.0.40
codegen_flags: <defaults>
</compile_context>

<pallas_src>
import jax
import jax.numpy as jnp
from jax.experimental import pallas as pl
from jax.experimental.pallas import tpu as pltpu


# ---------------------------------------------------------------------------
# Phase 1: conv1 (VPU FMAs) + ReLU + conv2 (MXU, bf16) + running global max,
# finalized on the last tile into g_contrib = w3_global @ max + b3.
# ---------------------------------------------------------------------------
def _conv12_max_kernel(x_ref, w1_ref, b1_ref, w2_ref, b2_ref, w3g_ref, b3_ref,
                       h2_ref, gc_ref, gmax_ref):
    t = pl.program_id(1)

    x = x_ref[0]                       # (Cin=3, Nt) f32, points on lanes
    w1 = w1_ref[...]                   # (H, 3)   f32

    # conv1: K=3 contraction as broadcast FMAs on the VPU (keep it off the MXU)
    acc = w1[:, 0:1] * x[0:1, :]       # (H,1)*(1,Nt) -> (H,Nt)
    for c in range(1, x.shape[0]):     # Cin is tiny & static -> unrolled
        acc = acc + w1[:, c:c + 1] * x[c:c + 1, :]
    h1 = jnp.maximum(acc + b1_ref[...], 0.0)                     # ReLU, f32

    # conv2 on the MXU: bf16 operands, f32 accumulation
    h2 = jnp.dot(w2_ref[...], h1.astype(jnp.bfloat16),
                 preferred_element_type=jnp.float32) + b2_ref[...]  # (H, Nt)

    # stash per-point features for phase 2 (bf16: they are MXU operands there)
    h2_ref[0] = h2.astype(jnp.bfloat16)

    # running max over point tiles (torch.max(x, 2)) kept in VMEM scratch
    tile_max = jnp.max(h2, axis=1, keepdims=True)                # (H, 1)

    @pl.when(t == 0)
    def _init():
        gmax_ref[...] = jnp.full(gmax_ref.shape, -jnp.inf, dtype=gmax_ref.dtype)

    gmax_ref[...] = jnp.maximum(gmax_ref[...], tile_max)

    # finalize once per batch element: fold the pooled feature through conv3's
    # global half (rank-1 over points) so phase 2 never touches w3_global.
    @pl.when(t == pl.num_programs(1) - 1)
    def _finalize():
        gc = jnp.dot(w3g_ref[...], gmax_ref[...].astype(jnp.bfloat16),
                     preferred_element_type=jnp.float32) + b3_ref[...]
        gc_ref[0] = gc                                           # (H, 1)


# ---------------------------------------------------------------------------
# Phase 2: conv3 local half (MXU) + broadcast global contribution, ReLU, conv4.
# ---------------------------------------------------------------------------
def _conv34_kernel(h2_ref, gc_ref, w3l_ref, w4_ref, b4_ref, o_ref):
    h2 = h2_ref[0]                                               # (H, Nt) bf16

    h3 = jnp.dot(w3l_ref[...], h2,
                 preferred_element_type=jnp.float32)             # (H, Nt)
    h3 = jnp.maximum(h3 + gc_ref[0], 0.0)                        # + (w3g@g + b3)

    out = jnp.dot(w4_ref[...], h3.astype(jnp.bfloat16),
                  preferred_element_type=jnp.float32) + b4_ref[...]
    o_ref[0] = out.astype(o_ref.dtype)


def _pick_n_tile(n, h, out_c):
    """Largest point-tile that divides N and keeps double-buffered blocks plus
    resident weights comfortably under the default scoped-VMEM limit."""
    budget = 24 * 1024 * 1024
    # phase-2 resident weights, double-buffered: w3_local + w4 (bf16)
    w_bytes = 2 * (h * h * 2 + out_c * h * 2)
    candidates = [t for t in (1024, 512, 256, 128) if n % t == 0]
    for t in candidates:
        blk_bytes = 2 * (h * t * 2 + out_c * t * 4)   # h2 in (bf16) + out (f32)
        if w_bytes + blk_bytes <= budget:
            return t
    if candidates:
        return candidates[-1]
    return n  # ragged N: one full-width tile (Pallas pads the lane dim)


def encoder_forward(x_ncw, params):
    """x_ncw: (B, 3, N) float32 in the module's NCW layout. Returns (B, Out, N)."""
    w1, b1, w2, b2, w3, b3, w4, b4 = params
    B, Cin, N = x_ncw.shape
    H = w2.shape[0]
    Out = w4.shape[0]

    # One-time parameter prep: split conv3 weight into local/global halves,
    # cast MXU operands to bf16, biases to (C, 1) f32 columns.
    w1f = w1.astype(jnp.float32)                     # VPU path -> keep f32
    b1c = b1.reshape(H, 1).astype(jnp.float32)
    w2b = w2.astype(jnp.bfloat16)
    b2c = b2.reshape(H, 1).astype(jnp.float32)
    w3l = w3[:, :H].astype(jnp.bfloat16)
    w3g = w3[:, H:].astype(jnp.bfloat16)
    b3c = b3.reshape(H, 1).astype(jnp.float32)
    w4b = w4.astype(jnp.bfloat16)
    b4c = b4.reshape(Out, 1).astype(jnp.float32)

    nt = _pick_n_tile(N, H, Out)
    n_tiles = N // nt

    # ---- phase 1: conv1 + ReLU + conv2, h2 stash, pooled global term -------
    h2_stash, g_contrib = pl.pallas_call(
        _conv12_max_kernel,
        out_shape=(
            jax.ShapeDtypeStruct((B, H, N), jnp.bfloat16),   # h2 stash
            jax.ShapeDtypeStruct((B, H, 1), jnp.float32),    # w3g @ max + b3
        ),
        grid_spec=pltpu.PrefetchScalarGridSpec(
            num_scalar_prefetch=0,
            grid=(B, n_tiles),
            in_specs=[
                pl.BlockSpec((1, Cin, nt), lambda b, t: (b, 0, t)),   # x
                pl.BlockSpec((H, Cin),     lambda b, t: (0, 0)),      # w1
                pl.BlockSpec((H, 1),       lambda b, t: (0, 0)),      # b1
                pl.BlockSpec((H, H),       lambda b, t: (0, 0)),      # w2
                pl.BlockSpec((H, 1),       lambda b, t: (0, 0)),      # b2
                pl.BlockSpec((H, H),       lambda b, t: (0, 0)),      # w3 global
                pl.BlockSpec((H, 1),       lambda b, t: (0, 0)),      # b3
            ],
            out_specs=(
                pl.BlockSpec((1, H, nt), lambda b, t: (b, 0, t)),     # h2
                pl.BlockSpec((1, H, 1),  lambda b, t: (b, 0, 0)),     # g_contrib
            ),
            scratch_shapes=[pltpu.VMEM((H, 1), jnp.float32)],         # running max
        ),
        compiler_params=pltpu.CompilerParams(
            dimension_semantics=("parallel", "arbitrary"),
        ),
    )(x_ncw, w1f, b1c, w2b, b2c, w3g, b3c)

    # ---- phase 2: conv3 local + broadcast global term + ReLU + conv4 -------
    out = pl.pallas_call(
        _conv34_kernel,
        out_shape=jax.ShapeDtypeStruct((B, Out, N), jnp.float32),
        grid_spec=pltpu.PrefetchScalarGridSpec(
            num_scalar_prefetch=0,
            grid=(B, n_tiles),
            in_specs=[
                pl.BlockSpec((1, H, nt), lambda b, t: (b, 0, t)),     # h2
                pl.BlockSpec((1, H, 1),  lambda b, t: (b, 0, 0)),     # g_contrib
                pl.BlockSpec((H, H),     lambda b, t: (0, 0)),        # w3 local
                pl.BlockSpec((Out, H),   lambda b, t: (0, 0)),        # w4
                pl.BlockSpec((Out, 1),   lambda b, t: (0, 0)),        # b4
            ],
            out_specs=pl.BlockSpec((1, Out, nt), lambda b, t: (b, 0, t)),
        ),
        compiler_params=pltpu.CompilerParams(
            # both axes independent -> shards across v7x's 2 TensorCores
            dimension_semantics=("parallel", "parallel"),
        ),
    )(h2_stash, g_contrib, w3l, w4b, b4c)

    return out                                               # (B, Out, N)


# ---------------------------------------------------------------------------
# Plain-JAX f32 reference mirroring the PyTorch forward (channels-first).
# ---------------------------------------------------------------------------
def encoder_reference(x_ncw, params):
    w1, b1, w2, b2, w3, b3, w4, b4 = params

    def conv1x1(h, w, b):  # h: (B, Cin, N), w: (Cout, Cin), b: (Cout,)
        return jnp.einsum('oc,bcn->bon', w, h) + b[None, :, None]

    h1 = jax.nn.relu(conv1x1(x_ncw, w1, b1))
    h2 = conv1x1(h1, w2, b2)
    g = jnp.max(h2, axis=2)                                   # (B, H)
    B, H, N = h2.shape
    xc = jnp.concatenate(
        [h2, jnp.broadcast_to(g[:, :, None], (B, H, N))], axis=1)  # (B, 2H, N)
    h3 = jax.nn.relu(conv1x1(xc, w3, b3))
    return conv1x1(h3, w4, b4)


def make_params(key, cin, hidden, out):
    """Deterministic PyTorch-style uniform(+-1/sqrt(fan_in)) init.
    Conv1d weights stored as (out_channels, in_channels)."""
    ks = jax.random.split(key, 8)

    def u(k, shape, fan_in):
        bound = 1.0 / jnp.sqrt(fan_in)
        return jax.random.uniform(k, shape, jnp.float32, -bound, bound)

    w1 = u(ks[0], (hidden, cin), cin);              b1 = u(ks[1], (hidden,), cin)
    w2 = u(ks[2], (hidden, hidden), hidden);        b2 = u(ks[3], (hidden,), hidden)
    w3 = u(ks[4], (hidden, 2 * hidden), 2 * hidden)
    b3 = u(ks[5], (hidden,), 2 * hidden)
    w4 = u(ks[6], (out, hidden), hidden);           b4 = u(ks[7], (out,), hidden)
    return (w1, b1, w2, b2, w3, b3, w4, b4)


if __name__ == "__main__":
    # Small shapes consistent with the module (input is (B, 3, num_points)).
    # Channel dims chosen as multiples of 128 for lane-dense tiles/stores.
    B, CIN, N = 2, 3, 512
    HIDDEN, OUT = 128, 128        # small stand-ins for the 1024/output_size dims

    key = jax.random.PRNGKey(0)
    kx, kp = jax.random.split(key)
    x = jax.random.normal(kx, (B, CIN, N), jnp.float32)
    params = make_params(kp, CIN, HIDDEN, OUT)

    out = jax.jit(encoder_forward)(x, params)
    out = jax.block_until_ready(out)

    ref = encoder_reference(x, params)
    assert out.shape == (B, OUT, N), out.shape
    max_err = float(jnp.max(jnp.abs(out - ref)))
    # bf16 MXU operands with f32 accumulation -> loosened vs a pure-f32 check
    assert max_err < 3e-2, max_err

    print("KERNEL_OK")
</pallas_src>

<mosaic_0001>
module attributes {stable_mosaic.version = 11 : i64} {
  func.func @_conv34_kernel(%arg0: i32, %arg1: i32, %arg2: memref<1x128x512xbf16, #tpu.memory_space<vmem>>, %arg3: memref<1x128x1xf32, #tpu.memory_space<vmem>>, %arg4: memref<128x128xbf16, #tpu.memory_space<vmem>>, %arg5: memref<128x128xbf16, #tpu.memory_space<vmem>>, %arg6: memref<128x1xf32, #tpu.memory_space<vmem>>, %arg7: memref<1x128x512xf32, #tpu.memory_space<vmem>>) attributes {dimension_semantics = [#tpu.dimension_semantics<parallel>, #tpu.dimension_semantics<parallel>], iteration_bounds = array<i64: 2, 1>, scalar_prefetch = 0 : i64, scratch_operands = 0 : i64, tpu.core_type = #tpu.core_type<tc>, window_params = [{transform_indices = @transform_0, window_bounds = array<i64: 1, 128, 512>}, {transform_indices = @transform_1, window_bounds = array<i64: 1, 128, 1>}, {pipeline_mode = #tpu.pipeline_mode<synchronous>, transform_indices = @transform_2, window_bounds = array<i64: 128, 128>}, {pipeline_mode = #tpu.pipeline_mode<synchronous>, transform_indices = @transform_3, window_bounds = array<i64: 128, 128>}, {pipeline_mode = #tpu.pipeline_mode<synchronous>, transform_indices = @transform_4, window_bounds = array<i64: 128, 1>}, {transform_indices = @transform_5, window_bounds = array<i64: 1, 128, 512>}]} {
    %c0 = arith.constant 0 : index
    %c0_0 = arith.constant 0 : index
    %c0_1 = arith.constant 0 : index
    %0 = vector.load %arg2[%c0, %c0_0, %c0_1] : memref<1x128x512xbf16, #tpu.memory_space<vmem>>, vector<1x128x512xbf16>
    %1 = vector.shape_cast %0 : vector<1x128x512xbf16> to vector<128x512xbf16>
    %c0_2 = arith.constant 0 : index
    %c0_3 = arith.constant 0 : index
    %2 = vector.load %arg4[%c0_2, %c0_3] : memref<128x128xbf16, #tpu.memory_space<vmem>>, vector<128x128xbf16>
    %cst = arith.constant dense<0.000000e+00> : vector<128x512xf32>
    %3 = tpu.matmul %2, %1, %cst {dimension_numbers = #tpu.dot_dimension_numbers<[1], [0], [0], [1], [0, 0, 1, 1], [], []>} : vector<128x128xbf16>, vector<128x512xbf16>, vector<128x512xf32> -> vector<128x512xf32>
    %c0_4 = arith.constant 0 : index
    %c0_5 = arith.constant 0 : index
    %c0_6 = arith.constant 0 : index
    %4 = vector.load %arg3[%c0_4, %c0_5, %c0_6] : memref<1x128x1xf32, #tpu.memory_space<vmem>>, vector<1x128x1xf32>
    %5 = vector.shape_cast %4 : vector<1x128x1xf32> to vector<128x1xf32>
    %6 = vector.broadcast %5 : vector<128x1xf32> to vector<128x512xf32>
    %7 = arith.addf %3, %6 : vector<128x512xf32>
    %cst_7 = arith.constant 0.000000e+00 : f32
    %8 = vector.broadcast %cst_7 : f32 to vector<128x512xf32>
    %9 = arith.maximumf %7, %8 : vector<128x512xf32>
    %c0_8 = arith.constant 0 : index
    %c0_9 = arith.constant 0 : index
    %10 = vector.load %arg5[%c0_8, %c0_9] : memref<128x128xbf16, #tpu.memory_space<vmem>>, vector<128x128xbf16>
    %11 = arith.truncf %9 : vector<128x512xf32> to vector<128x512xbf16>
    %cst_10 = arith.constant dense<0.000000e+00> : vector<128x512xf32>
    %12 = tpu.matmul %10, %11, %cst_10 {dimension_numbers = #tpu.dot_dimension_numbers<[1], [0], [0], [1], [0, 0, 1, 1], [], []>} : vector<128x128xbf16>, vector<128x512xbf16>, vector<128x512xf32> -> vector<128x512xf32>
    %c0_11 = arith.constant 0 : index
    %c0_12 = arith.constant 0 : index
    %13 = vector.load %arg6[%c0_11, %c0_12] : memref<128x1xf32, #tpu.memory_space<vmem>>, vector<128x1xf32>
    %14 = vector.broadcast %13 : vector<128x1xf32> to vector<128x512xf32>
    %15 = arith.addf %12, %14 : vector<128x512xf32>
    %c0_13 = arith.constant 0 : index
    %c0_14 = arith.constant 0 : index
    %c0_15 = arith.constant 0 : index
    %16 = vector.load %arg7[%c0_13, %c0_14, %c0_15] : memref<1x128x512xf32, #tpu.memory_space<vmem>>, vector<1x128x512xf32>
    %17 = vector.shape_cast %16 : vector<1x128x512xf32> to vector<128x512xf32>
    %18 = vector.shape_cast %15 : vector<128x512xf32> to vector<1x128x512xf32>
    tpu.vector_store %arg7[%c0_13, %c0_14, %c0_15], %18 {strides = array<i32>} : memref<1x128x512xf32, #tpu.memory_space<vmem>>, vector<1x128x512xf32>,
    return
  }
  func.func @transform_0(%arg0: i32, %arg1: i32) -> (i32, i32, i32) {
    %c0_i32 = arith.constant 0 : i32
    %c0_i32_0 = arith.constant 0 : i32
    return %arg0, %c0_i32, %arg1 : i32, i32, i32
  }
  func.func @transform_1(%arg0: i32, %arg1: i32) -> (i32, i32, i32) {
    %c0_i32 = arith.constant 0 : i32
    %c0_i32_0 = arith.constant 0 : i32
    %c0_i32_1 = arith.constant 0 : i32
    return %arg0, %c0_i32, %c0_i32_0 : i32, i32, i32
  }
  func.func @transform_2(%arg0: i32, %arg1: i32) -> (i32, i32) {
    %c0_i32 = arith.constant 0 : i32
    %c0_i32_0 = arith.constant 0 : i32
    %c0_i32_1 = arith.constant 0 : i32
    return %c0_i32, %c0_i32_0 : i32, i32
  }
  func.func @transform_3(%arg0: i32, %arg1: i32) -> (i32, i32) {
    %c0_i32 = arith.constant 0 : i32
    %c0_i32_0 = arith.constant 0 : i32
    %c0_i32_1 = arith.constant 0 : i32
    return %c0_i32, %c0_i32_0 : i32, i32
  }
  func.func @transform_4(%arg0: i32, %arg1: i32) -> (i32, i32) {
    %c0_i32 = arith.constant 0 : i32
    %c0_i32_0 = arith.constant 0 : i32
    %c0_i32_1 = arith.constant 0 : i32
    return %c0_i32, %c0_i32_0 : i32, i32
  }
  func.func @transform_5(%arg0: i32, %arg1: i32) -> (i32, i32, i32) {
    %c0_i32 = arith.constant 0 : i32
    %c0_i32_0 = arith.constant 0 : i32
    return %arg0, %c0_i32, %arg1 : i32, i32, i32
  }
}

module attributes {stable_mosaic.version = 11 : i64} {
  func.func @_conv12_max_kernel(%arg0: i32, %arg1: i32, %arg2: memref<1x3x512xf32, #tpu.memory_space<vmem>>, %arg3: memref<128x3xf32, #tpu.memory_space<vmem>>, %arg4: memref<128x1xf32, #tpu.memory_space<vmem>>, %arg5: memref<128x128xbf16, #tpu.memory_space<vmem>>, %arg6: memref<128x1xf32, #tpu.memory_space<vmem>>, %arg7: memref<128x128xbf16, #tpu.memory_space<vmem>>, %arg8: memref<128x1xf32, #tpu.memory_space<vmem>>, %arg9: memref<1x128x512xbf16, #tpu.memory_space<vmem>>, %arg10: memref<1x128x1xf32, #tpu.memory_space<vmem>>, %arg11: memref<128x1xf32, #tpu.memory_space<vmem>>) attributes {dimension_semantics = [#tpu.dimension_semantics<parallel>, #tpu.dimension_semantics<arbitrary>], iteration_bounds = array<i64: 2, 1>, scalar_prefetch = 0 : i64, scratch_operands = 1 : i64, tpu.core_type = #tpu.core_type<tc>, window_params = [{transform_indices = @transform_0, window_bounds = array<i64: 1, 3, 512>}, {pipeline_mode = #tpu.pipeline_mode<synchronous>, transform_indices = @transform_1, window_bounds = array<i64: 128, 3>}, {pipeline_mode = #tpu.pipeline_mode<synchronous>, transform_indices = @transform_2, window_bounds = array<i64: 128, 1>}, {pipeline_mode = #tpu.pipeline_mode<synchronous>, transform_indices = @transform_3, window_bounds = array<i64: 128, 128>}, {pipeline_mode = #tpu.pipeline_mode<synchronous>, transform_indices = @transform_4, window_bounds = array<i64: 128, 1>}, {pipeline_mode = #tpu.pipeline_mode<synchronous>, transform_indices = @transform_5, window_bounds = array<i64: 128, 128>}, {pipeline_mode = #tpu.pipeline_mode<synchronous>, transform_indices = @transform_6, window_bounds = array<i64: 128, 1>}, {transform_indices = @transform_7, window_bounds = array<i64: 1, 128, 512>}, {transform_indices = @transform_8, window_bounds = array<i64: 1, 128, 1>}]} {
    %c0 = arith.constant 0 : index
    %c0_0 = arith.constant 0 : index
    %c0_1 = arith.constant 0 : index
    %0 = vector.load %arg2[%c0, %c0_0, %c0_1] : memref<1x3x512xf32, #tpu.memory_space<vmem>>, vector<1x3x512xf32>
    %1 = vector.shape_cast %0 : vector<1x3x512xf32> to vector<3x512xf32>
    %c0_2 = arith.constant 0 : index
    %c0_3 = arith.constant 0 : index
    %2 = vector.load %arg3[%c0_2, %c0_3] : memref<128x3xf32, #tpu.memory_space<vmem>>, vector<128x3xf32>
    %3 = vector.extract_strided_slice %2 {offsets = [0, 0], sizes = [128, 1], strides = [1, 1]} : vector<128x3xf32> to vector<128x1xf32>
    %4 = vector.extract_strided_slice %1 {offsets = [0, 0], sizes = [1, 512], strides = [1, 1]} : vector<3x512xf32> to vector<1x512xf32>
    %5 = vector.broadcast %3 : vector<128x1xf32> to vector<128x512xf32>
    %6 = vector.broadcast %4 : vector<1x512xf32> to vector<128x512xf32>
    %7 = arith.mulf %5, %6 : vector<128x512xf32>
    %8 = vector.extract_strided_slice %2 {offsets = [0, 1], sizes = [128, 1], strides = [1, 1]} : vector<128x3xf32> to vector<128x1xf32>
    %9 = vector.extract_strided_slice %1 {offsets = [1, 0], sizes = [1, 512], strides = [1, 1]} : vector<3x512xf32> to vector<1x512xf32>
    %10 = vector.broadcast %8 : vector<128x1xf32> to vector<128x512xf32>
    %11 = vector.broadcast %9 : vector<1x512xf32> to vector<128x512xf32>
    %12 = arith.mulf %10, %11 : vector<128x512xf32>
    %13 = arith.addf %7, %12 : vector<128x512xf32>
    %14 = vector.extract_strided_slice %2 {offsets = [0, 2], sizes = [128, 1], strides = [1, 1]} : vector<128x3xf32> to vector<128x1xf32>
    %15 = vector.extract_strided_slice %1 {offsets = [2, 0], sizes = [1, 512], strides = [1, 1]} : vector<3x512xf32> to vector<1x512xf32>
    %16 = vector.broadcast %14 : vector<128x1xf32> to vector<128x512xf32>
    %17 = vector.broadcast %15 : vector<1x512xf32> to vector<128x512xf32>
    %18 = arith.mulf %16, %17 : vector<128x512xf32>
    %19 = arith.addf %13, %18 : vector<128x512xf32>
    %c0_4 = arith.constant 0 : index
    %c0_5 = arith.constant 0 : index
    %20 = vector.load %arg4[%c0_4, %c0_5] : memref<128x1xf32, #tpu.memory_space<vmem>>, vector<128x1xf32>
    %21 = vector.broadcast %20 : vector<128x1xf32> to vector<128x512xf32>
    %22 = arith.addf %19, %21 : vector<128x512xf32>
    %cst = arith.constant 0.000000e+00 : f32
    %23 = vector.broadcast %cst : f32 to vector<128x512xf32>
    %24 = arith.maximumf %22, %23 : vector<128x512xf32>
    %c0_6 = arith.constant 0 : index
    %c0_7 = arith.constant 0 : index
    %25 = vector.load %arg5[%c0_6, %c0_7] : memref<128x128xbf16, #tpu.memory_space<vmem>>, vector<128x128xbf16>
    %26 = arith.truncf %24 : vector<128x512xf32> to vector<128x512xbf16>
    %cst_8 = arith.constant dense<0.000000e+00> : vector<128x512xf32>
    %27 = tpu.matmul %25, %26, %cst_8 {dimension_numbers = #tpu.dot_dimension_numbers<[1], [0], [0], [1], [0, 0, 1, 1], [], []>} : vector<128x128xbf16>, vector<128x512xbf16>, vector<128x512xf32> -> vector<128x512xf32>
    %c0_9 = arith.constant 0 : index
    %c0_10 = arith.constant 0 : index
    %28 = vector.load %arg6[%c0_9, %c0_10] : memref<128x1xf32, #tpu.memory_space<vmem>>, vector<128x1xf32>
    %29 = vector.broadcast %28 : vector<128x1xf32> to vector<128x512xf32>
    %30 = arith.addf %27, %29 : vector<128x512xf32>
    %31 = arith.truncf %30 : vector<128x512xf32> to vector<128x512xbf16>
    %c0_11 = arith.constant 0 : index
    %c0_12 = arith.constant 0 : index
    %c0_13 = arith.constant 0 : index
    %32 = vector.load %arg9[%c0_11, %c0_12, %c0_13] : memref<1x128x512xbf16, #tpu.memory_space<vmem>>, vector<1x128x512xbf16>
    %33 = vector.shape_cast %32 : vector<1x128x512xbf16> to vector<128x512xbf16>
    %34 = vector.shape_cast %31 : vector<128x512xbf16> to vector<1x128x512xbf16>
    tpu.vector_store %arg9[%c0_11, %c0_12, %c0_13], %34 {strides = array<i32>} : memref<1x128x512xbf16, #tpu.memory_space<vmem>>, vector<1x128x512xbf16>,
    %cst_14 = arith.constant dense<0xFF800000> : vector<128xf32>
    %35 = vector.multi_reduction <maximumf>, %30, %cst_14 [1] : vector<128x512xf32> to vector<128xf32>
    %36 = vector.shape_cast %35 : vector<128xf32> to vector<128x1xf32>
    %c0_i32 = arith.constant 0 : i32
    %37 = arith.cmpi eq, %arg1, %c0_i32 : i32
    %38 = arith.extui %37 : i1 to i32
    %c0_i32_15 = arith.constant 0 : i32
    %39 = arith.cmpi ne, %38, %c0_i32_15 : i32
    scf.if %39 {
      %cst_22 = arith.constant 0xFF800000 : f32
      %46 = vector.broadcast %cst_22 : f32 to vector<128x1xf32>
      %c0_23 = arith.constant 0 : index
      %c0_24 = arith.constant 0 : index
      %47 = vector.load %arg11[%c0_23, %c0_24] : memref<128x1xf32, #tpu.memory_space<vmem>>, vector<128x1xf32>
      tpu.vector_store %arg11[%c0_23, %c0_24], %46 {strides = array<i32>} : memref<128x1xf32, #tpu.memory_space<vmem>>, vector<128x1xf32>,
    } else {
    }
    %c0_16 = arith.constant 0 : index
    %c0_17 = arith.constant 0 : index
    %40 = vector.load %arg11[%c0_16, %c0_17] : memref<128x1xf32, #tpu.memory_space<vmem>>, vector<128x1xf32>
    %41 = arith.maximumf %40, %36 : vector<128x1xf32>
    %c0_18 = arith.constant 0 : index
    %c0_19 = arith.constant 0 : index
    %42 = vector.load %arg11[%c0_18, %c0_19] : memref<128x1xf32, #tpu.memory_space<vmem>>, vector<128x1xf32>
    tpu.vector_store %arg11[%c0_18, %c0_19], %41 {strides = array<i32>} : memref<128x1xf32, #tpu.memory_space<vmem>>, vector<128x1xf32>,
    %c0_i32_20 = arith.constant 0 : i32
    %43 = arith.cmpi eq, %arg1, %c0_i32_20 : i32
    %44 = arith.extui %43 : i1 to i32
    %c0_i32_21 = arith.constant 0 : i32
    %45 = arith.cmpi ne, %44, %c0_i32_21 : i32
    scf.if %45 {
      %c0_22 = arith.constant 0 : index
      %c0_23 = arith.constant 0 : index
      %46 = vector.load %arg7[%c0_22, %c0_23] : memref<128x128xbf16, #tpu.memory_space<vmem>>, vector<128x128xbf16>
      %c0_24 = arith.constant 0 : index
      %c0_25 = arith.constant 0 : index
      %47 = vector.load %arg11[%c0_24, %c0_25] : memref<128x1xf32, #tpu.memory_space<vmem>>, vector<128x1xf32>
      %48 = arith.truncf %47 : vector<128x1xf32> to vector<128x1xbf16>
      %cst_26 = arith.constant dense<0.000000e+00> : vector<128x1xf32>
      %49 = tpu.matmul %46, %48, %cst_26 {dimension_numbers = #tpu.dot_dimension_numbers<[1], [0], [0], [1], [0, 0, 1, 1], [], []>} : vector<128x128xbf16>, vector<128x1xbf16>, vector<128x1xf32> -> vector<128x1xf32>
      %c0_27 = arith.constant 0 : index
      %c0_28 = arith.constant 0 : index
      %50 = vector.load %arg8[%c0_27, %c0_28] : memref<128x1xf32, #tpu.memory_space<vmem>>, vector<128x1xf32>
      %51 = arith.addf %49, %50 : vector<128x1xf32>
      %c0_29 = arith.constant 0 : index
      %c0_30 = arith.constant 0 : index
      %c0_31 = arith.constant 0 : index
      %52 = vector.load %arg10[%c0_29, %c0_30, %c0_31] : memref<1x128x1xf32, #tpu.memory_space<vmem>>, vector<1x128x1xf32>
      %53 = vector.shape_cast %52 : vector<1x128x1xf32> to vector<128x1xf32>
      %54 = vector.shape_cast %51 : vector<128x1xf32> to vector<1x128x1xf32>
      tpu.vector_store %arg10[%c0_29, %c0_30, %c0_31], %54 {strides = array<i32>} : memref<1x128x1xf32, #tpu.memory_space<vmem>>, vector<1x128x1xf32>,
    } else {
    }
    return
  }
  func.func @transform_0(%arg0: i32, %arg1: i32) -> (i32, i32, i32) {
    %c0_i32 = arith.constant 0 : i32
    %c0_i32_0 = arith.constant 0 : i32
    return %arg0, %c0_i32, %arg1 : i32, i32, i32
  }
  func.func @transform_1(%arg0: i32, %arg1: i32) -> (i32, i32) {
    %c0_i32 = arith.constant 0 : i32
    %c0_i32_0 = arith.constant 0 : i32
    %c0_i32_1 = arith.constant 0 : i32
    return %c0_i32, %c0_i32_0 : i32, i32
  }
  func.func @transform_2(%arg0: i32, %arg1: i32) -> (i32, i32) {
    %c0_i32 = arith.constant 0 : i32
    %c0_i32_0 = arith.constant 0 : i32
    %c0_i32_1 = arith.constant 0 : i32
    return %c0_i32, %c0_i32_0 : i32, i32
  }
  func.func @transform_3(%arg0: i32, %arg1: i32) -> (i32, i32) {
    %c0_i32 = arith.constant 0 : i32
    %c0_i32_0 = arith.constant 0 : i32
    %c0_i32_1 = arith.constant 0 : i32
    return %c0_i32, %c0_i32_0 : i32, i32
  }
  func.func @transform_4(%arg0: i32, %arg1: i32) -> (i32, i32) {
    %c0_i32 = arith.constant 0 : i32
    %c0_i32_0 = arith.constant 0 : i32
    %c0_i32_1 = arith.constant 0 : i32
    return %c0_i32, %c0_i32_0 : i32, i32
  }
  func.func @transform_5(%arg0: i32, %arg1: i32) -> (i32, i32) {
    %c0_i32 = arith.constant 0 : i32
    %c0_i32_0 = arith.constant 0 : i32
    %c0_i32_1 = arith.constant 0 : i32
    return %c0_i32, %c0_i32_0 : i32, i32
  }
  func.func @transform_6(%arg0: i32, %arg1: i32) -> (i32, i32) {
    %c0_i32 = arith.constant 0 : i32
    %c0_i32_0 = arith.constant 0 : i32
    %c0_i32_1 = arith.constant 0 : i32
    return %c0_i32, %c0_i32_0 : i32, i32
  }
  func.func @transform_7(%arg0: i32, %arg1: i32) -> (i32, i32, i32) {
    %c0_i32 = arith.constant 0 : i32
    %c0_i32_0 = arith.constant 0 : i32
    return %arg0, %c0_i32, %arg1 : i32, i32, i32
  }
  func.func @transform_8(%arg0: i32, %arg1: i32) -> (i32, i32, i32) {
    %c0_i32 = arith.constant 0 : i32
    %c0_i32_0 = arith.constant 0 : i32
    %c0_i32_1 = arith.constant 0 : i32
    return %arg0, %c0_i32, %c0_i32_0 : i32, i32, i32
  }
}

</mosaic_0001>

<bundles_post_ra>
// kernel: encoder_forward.3
= control target key start
LH: loop header
LB: loop body
LE: loop exit
PB: predicated region body
PF: predicated region fallthrough
CT: control target
= control target key end

     0   :  { %10 = vsyncpa [#allocation3], 0  ;;  %s2185_s0 = inlined_call_operand.vmem [shape: bf16[2,128,512], index: 0, kind: input, shape index: {}]   ;;  %s2186_s1 = inlined_call_operand.vmem [shape: f32[2,128,1], index: 1, kind: input, shape index: {}]   ;;  %s2187_s2 = inlined_call_operand.vmem [shape: bf16[128,128], index: 2, kind: input, shape index: {}]   ;;  %s2188_s3 = inlined_call_operand.vmem [shape: bf16[128,128], index: 3, kind: input, shape index: {}]   ;;  %s2189_s4 = inlined_call_operand.vmem [shape: f32[128,1], index: 4, kind: input, shape index: {}]   ;;  %s2190_s5 = inlined_call_operand.hbm [shape: f32[2,128,512], index: 5, kind: output, shape index: {}]  }
   0x1   :  { %12 = vsyncpa [#allocation3 + $0x1], 0  ;;  %s1810_s18 = smov 0   ;;  %s1812_s19 = smov 0  }
   0x2   :  { %s1814_s20 = smov 0   ;;  %s1816_s21 = smov 0  }
   0x3   :  { %s1818_s22 = smov 0   ;;  %s1820_s23 = smov 0  }
   0x4 LB: > { %s1506_s24 = sadd.s32 4294967295, %s1774_s23   ;;  %s1507_s25 = sadd.s32 4294967294, %s1774_s23   ;;  %s1774_s23 = sphi %s1820_s23, %s18_s23   ;;  %s1770_s22 = sphi %s1818_s22, %s2197_s22   ;;  %s1766_s21 = sphi %s1816_s21, %s2196_s21   ;;  %s1762_s20 = sphi %s1814_s20, %s2195_s20   ;;  %s1758_s19 = sphi %s1812_s19, %s2194_s19   ;;  %s1754_s18 = sphi %s1810_s18, %s2193_s18  }
   0x5   : > { %s30_s26 = sadd.s32 1, %s1770_s22  ;;  %s156_s27 = sadd.s32 1, %s1762_s20 }
   0x6   : > { %p32_p0 = scmp.ge.s32.totalorder %s30_s26, 2  ;;  %p166_p1 = scmp.ne.s32.totalorder %s1762_s20, %s1758_s19 }
   0x7   : > { %p167_p2 = scmp.eq.s32.totalorder %s1506_s24, 1  ;;  %p172_p3 = scmp.ne.s32.totalorder %s1758_s19, %s1754_s18 }
   0x8   : > { %s2199_s26 = smov (%p32_p0, %s30_s26), 0  ;;  %p173_p5 = scmp.eq.s32.totalorder %s1507_s25, 1 }
   0x9   : > { %p1850_p4 = por %p167_p2, %p166_p1  ;;  %s151_s29 = ssub.s32 %s1770_s22, %s2199_s26 }
   0xa   : > { %p1510_p6 = scmp.ge.s32.totalorder %s1774_s23, 1  ;;  %p154_p7 = scmp.eq.s32.totalorder %s151_s29, 0 }
   0xb   : > { %p1857_p8 = por %p173_p5, %p172_p3  ;;  %p221_p9 = scmp.lt.s32.totalorder %s1774_s23, 3 }
   0xc   : > { %s1863_s6 = scalar_select %p154_p7, %s1762_s20, %s156_s27  }
   0xd   : > { %p222_p10 = pnand %p1510_p6, %p221_p9 }
   0xe   : > { %p259_p11 = scmp.lt.s32.totalorder (!%p222_p10), %s1766_s21, 1  ;;  %v1776_v0 = vmov (!%p222_p10), 0   ;;  %v1680_v39 = vld [vmem:[%s2187_s2] sm:$0xff] (!%p222_p10)   ;;  %v1681_v44 = vld [vmem:[%s2187_s2 + $0x8] sm:$0xff] (!%p222_p10)   ;;  %v1682_v49 = vld [vmem:[%s2187_s2 + $0x10] sm:$0xff] (!%p222_p10)   ;;  %s255_s27 = sand.u32 (!%p222_p10), 1, %s1758_s19  }
   0xf   : > { %225 = sbr.rel (%p222_p10) target bundleno = 628 (0x274), region = 40  ;;  %659 = vmatprep.mubr.bf16.mxu0 (!%p222_p10), %v1776_v0  ;;  %772 = vmatprep.mubr.bf16.mxu1 (!%p222_p10), %v1776_v0  ;;  %v965_v52 = vld [vmem:[%s2189_s4] sm:$0xff] (!%p222_p10)  ;;  %v966_v53 = vld [vmem:[%s2189_s4 + $0x8] sm:$0xff] (!%p222_p10)  ;;  %v1683_v54 = vld [vmem:[%s2187_s2 + $0x18] sm:$0xff] (!%p222_p10)   ;;  %s1511_s29 = sshll.u32 (!%p222_p10), %s255_s27, 9 }
  0x10   : > { %1630 = vset.pattern.permute.xlu0 (!%p222_p10), %v1776_v0  ;;  %1631 = vset.pattern.permute.xlu1 (!%p222_p10), %v1776_v0  ;;  %v967_v55 = vld [vmem:[%s2189_s4 + $0x10] sm:$0xff] (!%p222_p10)  ;;  %v968_v56 = vld [vmem:[%s2189_s4 + $0x18] sm:$0xff] (!%p222_p10)  ;;  %v969_v57 = vld [vmem:[%s2189_s4 + $0x20] sm:$0xff] (!%p222_p10)  ;;  %s1777_s14 = smov (!%p222_p10), [#allocation2]  }
  0x11   : > { %v970_v58 = vld [vmem:[%s2189_s4 + $0x28] sm:$0xff] (!%p222_p10)  ;;  %v1684_v59 = vld [vmem:[%s2187_s2 + $0x20] sm:$0xff] (!%p222_p10)   ;;  %v971_v60 = vld [vmem:[%s2189_s4 + $0x30] sm:$0xff] (!%p222_p10) }
  0x12   : > { %v972_v61 = vld [vmem:[%s2189_s4 + $0x38] sm:$0xff] (!%p222_p10)  ;;  %v973_v62 = vld [vmem:[%s2189_s4 + $0x40] sm:$0xff] (!%p222_p10)  ;;  %v974_v63 = vld [vmem:[%s2189_s4 + $0x48] sm:$0xff] (!%p222_p10) }
  0x16   : > { %s1869_s7 = scalar_select %p259_p11, %s1766_s21, 1 }
  0x18   : > { %s1569_s8 = sshll.u32 %s1869_s7, 8  ;;  %s1570_s12 = sshll.u32 %s1869_s7, 7 }
  0x19   : > { %s1877_s11 = scalar_lea.vmem %s2185_s0, %s1569_s8  ;;  %s1905_s15 = scalar_lea.vmem %s2186_s1, %s1570_s12 }
  0x1a   : > { %v1632_v1 = vld [vmem:[%s1877_s11 + $0x4] ss:$16 sps:$4 sm:$0xff]   ;;  %v1634_v2 = vld [vmem:[%s1877_s11 + $0xc] ss:$16 sps:$4 sm:$0xff]   ;;  %v1636_v3 = vld [vmem:[%s1877_s11] ss:$16 sps:$4 sm:$0xff]  }
  0x1b   : > { %627 = vmatprep.subr.bf16.mxu0 %v1632_v1  ;;  %v1637_v4 = vld [vmem:[%s1877_s11 + $0x8] ss:$16 sps:$4 sm:$0xff]   ;;  %740 = vmatprep.subr.bf16.mxu1 %v1634_v2  ;;  %v1638_v5 = vld [vmem:[%s1877_s11 + $0x24] ss:$16 sps:$4 sm:$0xff]   ;;  %v1640_v6 = vld [vmem:[%s1877_s11 + $0x2c] ss:$16 sps:$4 sm:$0xff]  }
  0x1c   : > { %628 = vmatpush1.bf16.msra.mxu0 %v1636_v3  ;;  %741 = vmatpush1.bf16.msra.mxu1 %v1637_v4  ;;  %v1642_v7 = vld [vmem:[%s1877_s11 + $0x20] ss:$16 sps:$4 sm:$0xff]   ;;  %v1643_v8 = vld [vmem:[%s1877_s11 + $0x28] ss:$16 sps:$4 sm:$0xff]   ;;  %v1644_v9 = vld [vmem:[%s1877_s11 + $0x44] ss:$16 sps:$4 sm:$0xff]  }
  0x1d   : > { %629 = vmatprep.subr.bf16.mxu0 %v1638_v5  ;;  %742 = vmatprep.subr.bf16.mxu1 %v1640_v6  ;;  %v1646_v10 = vld [vmem:[%s1877_s11 + $0x4c] ss:$16 sps:$4 sm:$0xff]   ;;  %v1648_v11 = vld [vmem:[%s1877_s11 + $0x40] ss:$16 sps:$4 sm:$0xff]   ;;  %v1649_v12 = vld [vmem:[%s1877_s11 + $0x48] ss:$16 sps:$4 sm:$0xff]  }
  0x1e   : > { %v1650_v13 = vld [vmem:[%s1877_s11 + $0x64] ss:$16 sps:$4 sm:$0xff]   ;;  %v1652_v14 = vld [vmem:[%s1877_s11 + $0x6c] ss:$16 sps:$4 sm:$0xff]   ;;  %v1654_v15 = vld [vmem:[%s1877_s11 + $0x60] ss:$16 sps:$4 sm:$0xff]  }
  0x1f   : > { %v1655_v16 = vld [vmem:[%s1877_s11 + $0x68] ss:$16 sps:$4 sm:$0xff]   ;;  %v1656_v17 = vld [vmem:[%s1877_s11 + $0x84] ss:$16 sps:$4 sm:$0xff]   ;;  %v1658_v18 = vld [vmem:[%s1877_s11 + $0x8c] ss:$16 sps:$4 sm:$0xff]  }
  0x20   : > { %630 = vmatpush1.bf16.msra.mxu0 %v1642_v7  ;;  %743 = vmatpush1.bf16.msra.mxu1 %v1643_v8  ;;  %v1660_v19 = vld [vmem:[%s1877_s11 + $0x80] ss:$16 sps:$4 sm:$0xff]   ;;  %v1661_v20 = vld [vmem:[%s1877_s11 + $0x88] ss:$16 sps:$4 sm:$0xff]   ;;  %v1662_v21 = vld [vmem:[%s1877_s11 + $0xa4] ss:$16 sps:$4 sm:$0xff]  }
  0x21   : > { %631 = vmatprep.subr.bf16.mxu0 %v1644_v9  ;;  %744 = vmatprep.subr.bf16.mxu1 %v1646_v10  ;;  %v1664_v22 = vld [vmem:[%s1877_s11 + $0xac] ss:$16 sps:$4 sm:$0xff]   ;;  %v1666_v23 = vld [vmem:[%s1877_s11 + $0xa0] ss:$16 sps:$4 sm:$0xff]   ;;  %v1667_v24 = vld [vmem:[%s1877_s11 + $0xa8] ss:$16 sps:$4 sm:$0xff]  }
  0x22   : > { %v1668_v25 = vld [vmem:[%s1877_s11 + $0xc4] ss:$16 sps:$4 sm:$0xff]   ;;  %v1670_v26 = vld [vmem:[%s1877_s11 + $0xcc] ss:$16 sps:$4 sm:$0xff]   ;;  %v1672_v30 = vld [vmem:[%s1877_s11 + $0xc0] ss:$16 sps:$4 sm:$0xff]  }
  0x23   : > { %v323_v27 = vld [vmem:[%s1905_s15] sm:$0xff]  ;;  %v325_v28 = vld [vmem:[%s1905_s15 + $0x10] sm:$0xff]  ;;  %v324_v29 = vld [vmem:[%s1905_s15 + $0x8] sm:$0xff]  ;;  %s2062_s7 = scalar_lea.vmem [#allocation2], %s1511_s29  ;;  %s1571_s8 = sshll.u32 %s1766_s21, 13 }
  0x24   : > { %632 = vmatpush1.bf16.msra.mxu0 %v1648_v11  ;;  %745 = vmatpush1.bf16.msra.mxu1 %v1649_v12  ;;  %v1673_v31 = vld [vmem:[%s1877_s11 + $0xc8] ss:$16 sps:$4 sm:$0xff]   ;;  %v1674_v33 = vld [vmem:[%s1877_s11 + $0xe4] ss:$16 sps:$4 sm:$0xff]   ;;  %v1676_v34 = vld [vmem:[%s1877_s11 + $0xec] ss:$16 sps:$4 sm:$0xff]  }
  0x25   : > { %633 = vmatprep.subr.bf16.mxu0 %v1650_v13  ;;  %746 = vmatprep.subr.bf16.mxu1 %v1652_v14  ;;  %v326_v32 = vld [vmem:[%s1905_s15 + $0x18] sm:$0xff]  ;;  %v1678_v35 = vld [vmem:[%s1877_s11 + $0xe0] ss:$16 sps:$4 sm:$0xff]   ;;  %v328_v38 = vld [vmem:[%s1905_s15 + $0x28] sm:$0xff]  ;;  %s1415_s9 = sshll.u32 %s2062_s7, 4  ;;  %s2139_s12 = scalar_lea.sflag [#allocation3], %s255_s27  ;;  %s2129_s9 = int_to_ptr.vmem [resolvable:$true] %s1415_s9 }
  0x26   : > { %341 = vperm.xlu0 %1630, %v323_v27   ;;  %351 = vperm.xlu1 %1631, %v325_v28   ;;  %v1679_v36 = vld [vmem:[%s1877_s11 + $0xe8] ss:$16 sps:$4 sm:$0xff]   ;;  %v327_v37 = vld [vmem:[%s1905_s15 + $0x20] sm:$0xff]  ;;  %v329_v40 = vld [vmem:[%s1905_s15 + $0x30] sm:$0xff]  ;;  %s2127_s11 = scalar_lea.hbm %s2190_s5, %s1571_s8  ;;  %s1696_s13 = scalar_lea.vmem %s2129_s9, 8192 }
  0x27   : > { %v331_v41 = vld [vmem:[%s1905_s15 + $0x40] sm:$0xff]  ;;  %v330_v42 = vld [vmem:[%s1905_s15 + $0x38] sm:$0xff]  ;;  %v332_v43 = vld [vmem:[%s1905_s15 + $0x48] sm:$0xff]  ;;  %p1697_p12 = scmp.ne.s32.totalorder %s2129_s9, %s1696_s13 }
  0x28   : > { %634 = vmatpush1.bf16.msra.mxu0 %v1654_v15  ;;  %747 = vmatpush1.bf16.msra.mxu1 %v1655_v16  ;;  %v333_v45 = vld [vmem:[%s1905_s15 + $0x50] sm:$0xff]  ;;  %v334_v46 = vld [vmem:[%s1905_s15 + $0x58] sm:$0xff]  ;;  %v335_v47 = vld [vmem:[%s1905_s15 + $0x60] sm:$0xff] }
  0x29   : > { %635 = vmatprep.subr.bf16.mxu0 %v1656_v17  ;;  %748 = vmatprep.subr.bf16.mxu1 %v1658_v18  ;;  %v336_v48 = vld [vmem:[%s1905_s15 + $0x68] sm:$0xff]  ;;  %v337_v50 = vld [vmem:[%s1905_s15 + $0x70] sm:$0xff]  ;;  %v338_v51 = vld [vmem:[%s1905_s15 + $0x78] sm:$0xff]  ;;  %p1698_p13 = pnand %p1697_p12, %p1850_p4  ;;  %s1700_s15 = sshll.u32 %s1777_s14, 4  ;;  %s1701_s15 = int_to_ptr.vmem [resolvable:$false] %s1700_s15 }
  0x2a   : > { %346 = vperm.xlu0 %1630, %v324_v29   ;;  %356 = vperm.xlu1 %1631, %v326_v32   ;;  %v1685_v1 = vld [vmem:[%s2187_s2 + $0x28] sm:$0xff]   ;;  %v975_v2 = vld [vmem:[%s2189_s4 + $0x50] sm:$0xff]  ;;  %v976_v3 = vld [vmem:[%s2189_s4 + $0x58] sm:$0xff]  ;;  %s1702_s16 = scalar_lea.vmem %s1701_s15, 16384  ;;  %p1703_p1 = scmp.lt.s32.totalorder %s2129_s9, %s1701_s15 }
  0x2b   : > { %v977_v4 = vld [vmem:[%s2189_s4 + $0x60] sm:$0xff]  ;;  %v978_v5 = vld [vmem:[%s2189_s4 + $0x68] sm:$0xff]  ;;  %v1686_v6 = vld [vmem:[%s2187_s2 + $0x30] sm:$0xff]   ;;  %p1699_p0 = pneg %p1698_p13  ;;  %p1704_p2 = scmp.lt.s32.totalorder %s1702_s16, %s1696_s13 }
  0x2c   : > { %636 = vmatpush1.bf16.msra.mxu0 %v1660_v19  ;;  %749 = vmatpush1.bf16.msra.mxu1 %v1661_v20  ;;  %v979_v7 = vld [vmem:[%s2189_s4 + $0x70] sm:$0xff]  ;;  %v980_v8 = vld [vmem:[%s2189_s4 + $0x78] sm:$0xff] }
  0x2d   : > { %637 = vmatprep.subr.bf16.mxu0 %v1662_v21  ;;  %750 = vmatprep.subr.bf16.mxu1 %v1664_v22  ;;  %v1687_v9 = vld [vmem:[%s2187_s2 + $0x38] sm:$0xff]   ;;  %p1705_p3 = por %p1704_p2, %p1703_p1 }
  0x2e   : > { %361 = vperm.xlu0 %1630, %v327_v37   ;;  %366 = vperm.xlu1 %1631, %v328_v38  }
  0x2f   : > { %p1706_p5 = pnand %p1705_p3, %p1699_p0 }
  0x30   : > { %638 = vmatpush1.bf16.msra.mxu0 %v1666_v23  ;;  %751 = vmatpush1.bf16.msra.mxu1 %v1667_v24 }
  0x31   : > { %639 = vmatprep.subr.bf16.mxu0 %v1668_v25  ;;  %752 = vmatprep.subr.bf16.mxu1 %v1670_v26 }
  0x32   : > { %371 = vperm.xlu0 %1630, %v329_v40   ;;  %376 = vperm.xlu1 %1631, %v330_v42  }
  0x34   : > { %640 = vmatpush1.bf16.msra.mxu0 %v1672_v30  ;;  %753 = vmatpush1.bf16.msra.mxu1 %v1673_v31 }
  0x35   : > { %641 = vmatprep.subr.bf16.mxu0 %v1674_v33  ;;  %754 = vmatprep.subr.bf16.mxu1 %v1676_v34 }
  0x36   : > { %381 = vperm.xlu0 %1630, %v331_v41   ;;  %386 = vperm.xlu1 %1631, %v332_v43  }
  0x38   : > { %642 = vmatpush1.bf16.msra.mxu0 %v1678_v35  ;;  %755 = vmatpush1.bf16.msra.mxu1 %v1679_v36 }
  0x3a   : > { %391 = vperm.xlu0 %1630, %v333_v45   ;;  %396 = vperm.xlu1 %1631, %v334_v46  }
  0x3b   : > { %660 = vmatmul.mubr.bf16.vlgmr.msra.gmra.mrb[0].mxu0 %v1680_v39  ;;  %773 = vmatmul.mubr.bf16.vlgmr.msra.gmra.mrb[0].mxu1 %v1680_v39 }
  0x3c   : > { %669 = vmatprep.mubr.bf16.mxu0 %v1776_v0  ;;  %782 = vmatprep.mubr.bf16.mxu1 %v1776_v0 }
  0x3e   : > { %401 = vperm.xlu0 %1630, %v335_v47   ;;  %406 = vperm.xlu1 %1631, %v336_v48  }
  0x42   : > { %411 = vperm.xlu0 %1630, %v337_v50   ;;  %416 = vperm.xlu1 %1631, %v338_v51  }
  0x43   : > { %670 = vmatmul.mubr.bf16.gmra.mrb[4].mxu0 %v1681_v44  ;;  %783 = vmatmul.mubr.bf16.gmra.mrb[4].mxu1 %v1681_v44 }
  0x44   : > { %679 = vmatprep.mubr.bf16.mxu0 %v1776_v0  ;;  %792 = vmatprep.mubr.bf16.mxu1 %v1776_v0 }
  0x46   : > { %983 = vperm.xlu0 %1630, %v965_v52   ;;  %988 = vperm.xlu1 %1631, %v966_v53  }
  0x4a   : > { %993 = vperm.xlu0 %1630, %v967_v55   ;;  %998 = vperm.xlu1 %1631, %v968_v56  }
  0x4b   : > { %680 = vmatmul.mubr.bf16.gmra.mrb[8].mxu0 %v1682_v49  ;;  %793 = vmatmul.mubr.bf16.gmra.mrb[8].mxu1 %v1682_v49 }
  0x4c   : > { %689 = vmatprep.mubr.bf16.mxu0 %v1776_v0  ;;  %802 = vmatprep.mubr.bf16.mxu1 %v1776_v0 }
  0x4e   : > { %1003 = vperm.xlu0 %1630, %v969_v57   ;;  %1008 = vperm.xlu1 %1631, %v970_v58  }
  0x52   : > { %1013 = vperm.xlu0 %1630, %v971_v60   ;;  %1018 = vperm.xlu1 %1631, %v972_v61  }
  0x53   : > { %690 = vmatmul.mubr.bf16.gmra.mrb[12].mxu0 %v1683_v54  ;;  %803 = vmatmul.mubr.bf16.gmra.mrb[12].mxu1 %v1683_v54 }
  0x54   : > { %699 = vmatprep.mubr.bf16.mxu0 %v1776_v0  ;;  %812 = vmatprep.mubr.bf16.mxu1 %v1776_v0 }
  0x56   : > { %1023 = vperm.xlu0 %1630, %v973_v62   ;;  %1028 = vperm.xlu1 %1631, %v974_v63  }
  0x5a   : > { %1033 = vperm.xlu0 %1630, %v975_v2   ;;  %1038 = vperm.xlu1 %1631, %v976_v3  }
  0x5b   : > { %700 = vmatmul.mubr.bf16.gmra.mrb[16].mxu0 %v1684_v59  ;;  %813 = vmatmul.mubr.bf16.gmra.mrb[16].mxu1 %v1684_v59 }
  0x5c   : > { %709 = vmatprep.mubr.bf16.mxu0 %v1776_v0  ;;  %822 = vmatprep.mubr.bf16.mxu1 %v1776_v0 }
  0x5e   : > { %1043 = vperm.xlu0 %1630, %v977_v4   ;;  %1048 = vperm.xlu1 %1631, %v978_v5  }
  0x62   : > { %1053 = vperm.xlu0 %1630, %v979_v7   ;;  %1058 = vperm.xlu1 %1631, %v980_v8  }
  0x63   : > { %710 = vmatmul.mubr.bf16.gmra.mrb[20].mxu0 %v1685_v1  ;;  %823 = vmatmul.mubr.bf16.gmra.mrb[20].mxu1 %v1685_v1 }
  0x64   : > { %719 = vmatprep.mubr.bf16.mxu0 %v1776_v0  ;;  %832 = vmatprep.mubr.bf16.mxu1 %v1776_v0 }
  0x6b   : > { %720 = vmatmul.mubr.bf16.gmra.mrb[24].mxu0 %v1686_v6  ;;  %833 = vmatmul.mubr.bf16.gmra.mrb[24].mxu1 %v1686_v6 }
  0x6c   : > { %729 = vmatprep.mubr.bf16.mxu0 %v1776_v0  ;;  %842 = vmatprep.mubr.bf16.mxu1 %v1776_v0 }
  0x73   : > { %730 = vmatmul.mubr.bf16.gmra.mrb[28].mxu0 %v1687_v9  ;;  %843 = vmatmul.mubr.bf16.gmra.mrb[28].mxu1 %v1687_v9 }
  0x74   : > { %1141 = vmatprep.mubr.bf16.mxu0 %v1776_v0  ;;  %1254 = vmatprep.mubr.bf16.mxu1 %v1776_v0 }
  0xa5   : > { %v342_v10 = vpop.permute.xlu0 %341  ;;  %v352_v12 = vpop.permute.xlu1 %351 }
  0xa9   : > { %v347_v11 = vpop.permute.xlu0 %346  ;;  %v357_v37 = vpop.permute.xlu1 %356 }
  0xad   : > { %v362_v3 = vpop.permute.xlu0 %361  ;;  %v367_v4 = vpop.permute.xlu1 %366 }
 0x10e   : > { %v661_v13 = vpop.f32.mrb[0].mxu0  ;;  %v774_v14 = vpop.f32.mrb[0].mxu1 }
 0x10f   : > { %v662_v15 = vadd.f32 %v661_v13, %v342_v10  ;;  %v775_v16 = vadd.f32 %v774_v14, %v342_v10  ;;  %v663_v17 = vpop.f32.mrb[1].mxu0  ;;  %v776_v18 = vpop.f32.mrb[1].mxu1 }
 0x110   : > { %v664_v19 = vadd.f32 %v663_v17, %v342_v10  ;;  %v777_v20 = vadd.f32 %v776_v18, %v342_v10  ;;  %v665_v21 = vpop.f32.mrb[2].mxu0  ;;  %v778_v22 = vpop.f32.mrb[2].mxu1 }
 0x111   : > { %v666_v23 = vadd.f32 %v665_v21, %v347_v11  ;;  %v779_v24 = vadd.f32 %v778_v22, %v347_v11  ;;  %v667_v25 = vpop.f32.mrb[3].mxu0  ;;  %v780_v26 = vpop.f32.mrb[3].mxu1  ;;  %v853_v29 = vmax.f32 %v662_v15, 0.0  ;;  %v855_v30 = vmax.f32 %v775_v16, 0.0 }
 0x112   : > { %v668_v27 = vadd.f32 %v667_v25, %v347_v11  ;;  %v781_v28 = vadd.f32 %v780_v26, %v347_v11  ;;  %v854_v33 = vmax.f32 %v664_v19, 0.0  ;;  %v856_v34 = vmax.f32 %v777_v20, 0.0 }
 0x113   : > { %v857_v31 = vmax.f32 %v666_v23, 0.0  ;;  %v859_v32 = vmax.f32 %v779_v24, 0.0 }
 0x114   : > { %v858_v35 = vmax.f32 %v668_v27, 0.0  ;;  %v860_v36 = vmax.f32 %v781_v28, 0.0 }
 0x115   : > { %v933_v38 = vpack.c.bf16 %v857_v31, %v853_v29  ;;  %v935_v39 = vpack.c.bf16 %v859_v32, %v855_v30 }
 0x116   : > { %v934_v40 = vpack.c.bf16 %v858_v35, %v854_v33  ;;  %v936_v41 = vpack.c.bf16 %v860_v36, %v856_v34  ;;  %v671_v42 = vpop.f32.mrb[4].mxu0  ;;  %v784_v43 = vpop.f32.mrb[4].mxu1 }
 0x117   : > { %v672_v44 = vadd.f32 %v671_v42, %v352_v12  ;;  %v785_v45 = vadd.f32 %v784_v43, %v352_v12  ;;  %v673_v46 = vpop.f32.mrb[5].mxu0  ;;  %v786_v47 = vpop.f32.mrb[5].mxu1 }
 0x118   : > { %v674_v48 = vadd.f32 %v673_v46, %v352_v12  ;;  %v787_v49 = vadd.f32 %v786_v47, %v352_v12  ;;  %v675_v50 = vpop.f32.mrb[6].mxu0  ;;  %v788_v51 = vpop.f32.mrb[6].mxu1  ;;  %1109 = vmatprep.subr.bf16.mxu0 %v934_v40  ;;  %1222 = vmatprep.subr.bf16.mxu1 %v936_v41 }
 0x119   : > { %v676_v52 = vadd.f32 %v675_v50, %v357_v37  ;;  %v789_v53 = vadd.f32 %v788_v51, %v357_v37  ;;  %v677_v54 = vpop.f32.mrb[7].mxu0  ;;  %v790_v55 = vpop.f32.mrb[7].mxu1  ;;  %1110 = vmatpush1.bf16.msra.mxu0 %v933_v38  ;;  %1223 = vmatpush1.bf16.msra.mxu1 %v935_v39  ;;  %v861_v58 = vmax.f32 %v672_v44, 0.0  ;;  %v863_v59 = vmax.f32 %v785_v45, 0.0 }
 0x11a   : > { %v678_v56 = vadd.f32 %v677_v54, %v357_v37  ;;  %v791_v57 = vadd.f32 %v790_v55, %v357_v37  ;;  %v862_v62 = vmax.f32 %v674_v48, 0.0  ;;  %v864_v63 = vmax.f32 %v787_v49, 0.0  ;;  %v372_v33 = vpop.permute.xlu0 %371  ;;  %v377_v34 = vpop.permute.xlu1 %376 }
 0x11b   : > { %v865_v60 = vmax.f32 %v676_v52, 0.0  ;;  %v867_v61 = vmax.f32 %v789_v53, 0.0 }
 0x11c   : > { %v866_v1 = vmax.f32 %v678_v56, 0.0  ;;  %v868_v2 = vmax.f32 %v791_v57, 0.0 }
 0x11d   : > { %v937_v5 = vpack.c.bf16 %v865_v60, %v861_v58  ;;  %v939_v6 = vpack.c.bf16 %v867_v61, %v863_v59 }
 0x11e   : > { %v938_v7 = vpack.c.bf16 %v866_v1, %v862_v62  ;;  %v940_v8 = vpack.c.bf16 %v868_v2, %v864_v63  ;;  %v681_v9 = vpop.f32.mrb[8].mxu0  ;;  %v794_v10 = vpop.f32.mrb[8].mxu1 }
 0x11f   : > { %v682_v11 = vadd.f32 %v681_v9, %v362_v3  ;;  %v795_v12 = vadd.f32 %v794_v10, %v362_v3  ;;  %v683_v13 = vpop.f32.mrb[9].mxu0  ;;  %v796_v14 = vpop.f32.mrb[9].mxu1 }
 0x120   : > { %v684_v15 = vadd.f32 %v683_v13, %v362_v3  ;;  %v797_v16 = vadd.f32 %v796_v14, %v362_v3  ;;  %v685_v17 = vpop.f32.mrb[10].mxu0  ;;  %v798_v18 = vpop.f32.mrb[10].mxu1  ;;  %1111 = vmatprep.subr.bf16.mxu0 %v938_v7  ;;  %1224 = vmatprep.subr.bf16.mxu1 %v940_v8 }
 0x121   : > { %v686_v19 = vadd.f32 %v685_v17, %v367_v4  ;;  %v799_v20 = vadd.f32 %v798_v18, %v367_v4  ;;  %v687_v21 = vpop.f32.mrb[11].mxu0  ;;  %v800_v22 = vpop.f32.mrb[11].mxu1  ;;  %1112 = vmatpush1.bf16.msra.mxu0 %v937_v5  ;;  %1225 = vmatpush1.bf16.msra.mxu1 %v939_v6  ;;  %v869_v25 = vmax.f32 %v682_v11, 0.0  ;;  %v871_v26 = vmax.f32 %v795_v12, 0.0 }
 0x122   : > { %v688_v23 = vadd.f32 %v687_v21, %v367_v4  ;;  %v801_v24 = vadd.f32 %v800_v22, %v367_v4  ;;  %v870_v29 = vmax.f32 %v684_v15, 0.0  ;;  %v872_v30 = vmax.f32 %v797_v16, 0.0  ;;  %v382_v63 = vpop.permute.xlu0 %381  ;;  %v387_v1 = vpop.permute.xlu1 %386 }
 0x123   : > { %v873_v27 = vmax.f32 %v686_v19, 0.0  ;;  %v875_v28 = vmax.f32 %v799_v20, 0.0 }
 0x124   : > { %v874_v31 = vmax.f32 %v688_v23, 0.0  ;;  %v876_v32 = vmax.f32 %v801_v24, 0.0 }
 0x125   : > { %v941_v35 = vpack.c.bf16 %v873_v27, %v869_v25  ;;  %v943_v36 = vpack.c.bf16 %v875_v28, %v871_v26 }
 0x126   : > { %v942_v37 = vpack.c.bf16 %v874_v31, %v870_v29  ;;  %v944_v38 = vpack.c.bf16 %v876_v32, %v872_v30  ;;  %v691_v39 = vpop.f32.mrb[12].mxu0  ;;  %v804_v40 = vpop.f32.mrb[12].mxu1 }
 0x127   : > { %v692_v41 = vadd.f32 %v691_v39, %v372_v33  ;;  %v805_v42 = vadd.f32 %v804_v40, %v372_v33  ;;  %v693_v43 = vpop.f32.mrb[13].mxu0  ;;  %v806_v44 = vpop.f32.mrb[13].mxu1 }
 0x128   : > { %v694_v45 = vadd.f32 %v693_v43, %v372_v33  ;;  %v807_v46 = vadd.f32 %v806_v44, %v372_v33  ;;  %v695_v47 = vpop.f32.mrb[14].mxu0  ;;  %v808_v48 = vpop.f32.mrb[14].mxu1  ;;  %1113 = vmatprep.subr.bf16.mxu0 %v942_v37  ;;  %1226 = vmatprep.subr.bf16.mxu1 %v944_v38 }
 0x129   : > { %v696_v49 = vadd.f32 %v695_v47, %v377_v34  ;;  %v809_v50 = vadd.f32 %v808_v48, %v377_v34  ;;  %v697_v51 = vpop.f32.mrb[15].mxu0  ;;  %v810_v52 = vpop.f32.mrb[15].mxu1  ;;  %1114 = vmatpush1.bf16.msra.mxu0 %v941_v35  ;;  %1227 = vmatpush1.bf16.msra.mxu1 %v943_v36  ;;  %v877_v55 = vmax.f32 %v692_v41, 0.0  ;;  %v879_v56 = vmax.f32 %v805_v42, 0.0 }
 0x12a   : > { %v698_v53 = vadd.f32 %v697_v51, %v377_v34  ;;  %v811_v54 = vadd.f32 %v810_v52, %v377_v34  ;;  %v878_v59 = vmax.f32 %v694_v45, 0.0  ;;  %v880_v60 = vmax.f32 %v807_v46, 0.0  ;;  %v392_v30 = vpop.permute.xlu0 %391  ;;  %v397_v31 = vpop.permute.xlu1 %396 }
 0x12b   : > { %v881_v57 = vmax.f32 %v696_v49, 0.0  ;;  %v883_v58 = vmax.f32 %v809_v50, 0.0 }
 0x12c   : > { %v882_v61 = vmax.f32 %v698_v53, 0.0  ;;  %v884_v62 = vmax.f32 %v811_v54, 0.0 }
 0x12d   : > { %v945_v2 = vpack.c.bf16 %v881_v57, %v877_v55  ;;  %v947_v3 = vpack.c.bf16 %v883_v58, %v879_v56 }
 0x12e   : > { %v946_v4 = vpack.c.bf16 %v882_v61, %v878_v59  ;;  %v948_v5 = vpack.c.bf16 %v884_v62, %v880_v60  ;;  %v701_v6 = vpop.f32.mrb[16].mxu0  ;;  %v814_v7 = vpop.f32.mrb[16].mxu1 }
 0x12f   : > { %v702_v8 = vadd.f32 %v701_v6, %v382_v63  ;;  %v815_v9 = vadd.f32 %v814_v7, %v382_v63  ;;  %v703_v10 = vpop.f32.mrb[17].mxu0  ;;  %v816_v11 = vpop.f32.mrb[17].mxu1 }
 0x130   : > { %v704_v12 = vadd.f32 %v703_v10, %v382_v63  ;;  %v817_v13 = vadd.f32 %v816_v11, %v382_v63  ;;  %v705_v14 = vpop.f32.mrb[18].mxu0  ;;  %v818_v15 = vpop.f32.mrb[18].mxu1  ;;  %1115 = vmatprep.subr.bf16.mxu0 %v946_v4  ;;  %1228 = vmatprep.subr.bf16.mxu1 %v948_v5 }
 0x131   : > { %v706_v16 = vadd.f32 %v705_v14, %v387_v1  ;;  %v819_v17 = vadd.f32 %v818_v15, %v387_v1  ;;  %v707_v18 = vpop.f32.mrb[19].mxu0  ;;  %v820_v19 = vpop.f32.mrb[19].mxu1  ;;  %1116 = vmatpush1.bf16.msra.mxu0 %v945_v2  ;;  %1229 = vmatpush1.bf16.msra.mxu1 %v947_v3  ;;  %v885_v22 = vmax.f32 %v702_v8, 0.0  ;;  %v887_v23 = vmax.f32 %v815_v9, 0.0 }
 0x132   : > { %v708_v20 = vadd.f32 %v707_v18, %v387_v1  ;;  %v821_v21 = vadd.f32 %v820_v19, %v387_v1  ;;  %v886_v26 = vmax.f32 %v704_v12, 0.0  ;;  %v888_v27 = vmax.f32 %v817_v13, 0.0  ;;  %v402_v60 = vpop.permute.xlu0 %401  ;;  %v407_v61 = vpop.permute.xlu1 %406 }
 0x133   : > { %v889_v24 = vmax.f32 %v706_v16, 0.0  ;;  %v891_v25 = vmax.f32 %v819_v17, 0.0 }
 0x134   : > { %v890_v28 = vmax.f32 %v708_v20, 0.0  ;;  %v892_v29 = vmax.f32 %v821_v21, 0.0 }
 0x135   : > { %v949_v32 = vpack.c.bf16 %v889_v24, %v885_v22  ;;  %v951_v33 = vpack.c.bf16 %v891_v25, %v887_v23 }
 0x136   : > { %v950_v34 = vpack.c.bf16 %v890_v28, %v886_v26  ;;  %v952_v35 = vpack.c.bf16 %v892_v29, %v888_v27  ;;  %v711_v36 = vpop.f32.mrb[20].mxu0  ;;  %v824_v37 = vpop.f32.mrb[20].mxu1 }
 0x137   : > { %v712_v38 = vadd.f32 %v711_v36, %v392_v30  ;;  %v825_v39 = vadd.f32 %v824_v37, %v392_v30  ;;  %v713_v40 = vpop.f32.mrb[21].mxu0  ;;  %v826_v41 = vpop.f32.mrb[21].mxu1 }
 0x138   : > { %v714_v42 = vadd.f32 %v713_v40, %v392_v30  ;;  %v827_v43 = vadd.f32 %v826_v41, %v392_v30  ;;  %v715_v44 = vpop.f32.mrb[22].mxu0  ;;  %v828_v45 = vpop.f32.mrb[22].mxu1  ;;  %1117 = vmatprep.subr.bf16.mxu0 %v950_v34  ;;  %1230 = vmatprep.subr.bf16.mxu1 %v952_v35 }
 0x139   : > { %v716_v46 = vadd.f32 %v715_v44, %v397_v31  ;;  %v829_v47 = vadd.f32 %v828_v45, %v397_v31  ;;  %v717_v48 = vpop.f32.mrb[23].mxu0  ;;  %v830_v49 = vpop.f32.mrb[23].mxu1  ;;  %1118 = vmatpush1.bf16.msra.mxu0 %v949_v32  ;;  %1231 = vmatpush1.bf16.msra.mxu1 %v951_v33  ;;  %v893_v52 = vmax.f32 %v712_v38, 0.0  ;;  %v895_v53 = vmax.f32 %v825_v39, 0.0 }
 0x13a   : > { %v718_v50 = vadd.f32 %v717_v48, %v397_v31  ;;  %v831_v51 = vadd.f32 %v830_v49, %v397_v31  ;;  %v894_v56 = vmax.f32 %v714_v42, 0.0  ;;  %v896_v57 = vmax.f32 %v827_v43, 0.0  ;;  %v412_v27 = vpop.permute.xlu0 %411  ;;  %v417_v28 = vpop.permute.xlu1 %416 }
 0x13b   : > { %v897_v54 = vmax.f32 %v716_v46, 0.0  ;;  %v899_v55 = vmax.f32 %v829_v47, 0.0 }
 0x13c   : > { %v898_v58 = vmax.f32 %v718_v50, 0.0  ;;  %v900_v59 = vmax.f32 %v831_v51, 0.0 }
 0x13d   : > { %v953_v62 = vpack.c.bf16 %v897_v54, %v893_v52  ;;  %v955_v63 = vpack.c.bf16 %v899_v55, %v895_v53 }
 0x13e   : > { %v954_v1 = vpack.c.bf16 %v898_v58, %v894_v56  ;;  %v956_v2 = vpack.c.bf16 %v900_v59, %v896_v57  ;;  %v721_v3 = vpop.f32.mrb[24].mxu0  ;;  %v834_v4 = vpop.f32.mrb[24].mxu1 }
 0x13f   : > { %v722_v5 = vadd.f32 %v721_v3, %v402_v60  ;;  %v835_v6 = vadd.f32 %v834_v4, %v402_v60  ;;  %v723_v7 = vpop.f32.mrb[25].mxu0  ;;  %v836_v8 = vpop.f32.mrb[25].mxu1  ;;  %v1693_v3 = vld [vmem:[%s2188_s3 + $0x28] sm:$0xff]   ;;  %v1694_v4 = vld [vmem:[%s2188_s3 + $0x30] sm:$0xff]  }
 0x140   : > { %v724_v9 = vadd.f32 %v723_v7, %v402_v60  ;;  %v837_v10 = vadd.f32 %v836_v8, %v402_v60  ;;  %v725_v11 = vpop.f32.mrb[26].mxu0  ;;  %v838_v12 = vpop.f32.mrb[26].mxu1  ;;  %1119 = vmatprep.subr.bf16.mxu0 %v954_v1  ;;  %1232 = vmatprep.subr.bf16.mxu1 %v956_v2  ;;  %v1691_v1 = vld [vmem:[%s2188_s3 + $0x18] sm:$0xff]   ;;  %v1692_v2 = vld [vmem:[%s2188_s3 + $0x20] sm:$0xff]  }
 0x141   : > { %v726_v13 = vadd.f32 %v725_v11, %v407_v61  ;;  %v839_v14 = vadd.f32 %v838_v12, %v407_v61  ;;  %v727_v15 = vpop.f32.mrb[27].mxu0  ;;  %v840_v16 = vpop.f32.mrb[27].mxu1  ;;  %1120 = vmatpush1.bf16.msra.mxu0 %v953_v62  ;;  %1233 = vmatpush1.bf16.msra.mxu1 %v955_v63  ;;  %v901_v19 = vmax.f32 %v722_v5, 0.0  ;;  %v903_v20 = vmax.f32 %v835_v6, 0.0  ;;  %v1689_v62 = vld [vmem:[%s2188_s3 + $0x8] sm:$0xff]   ;;  %v1690_v63 = vld [vmem:[%s2188_s3 + $0x10] sm:$0xff]  }
 0x142   : > { %v728_v17 = vadd.f32 %v727_v15, %v407_v61  ;;  %v841_v18 = vadd.f32 %v840_v16, %v407_v61  ;;  %v902_v23 = vmax.f32 %v724_v9, 0.0  ;;  %v904_v24 = vmax.f32 %v837_v10, 0.0  ;;  %v1688_v61 = vld [vmem:[%s2188_s3] sm:$0xff]   ;;  %v1695_v5 = vld [vmem:[%s2188_s3 + $0x38] sm:$0xff]   ;;  %v984_v6 = vpop.permute.xlu0 %983  ;;  %v989_v7 = vpop.permute.xlu1 %988 }
 0x143   : > { %v905_v21 = vmax.f32 %v726_v13, 0.0  ;;  %v907_v22 = vmax.f32 %v839_v14, 0.0 }
 0x144   : > { %v906_v25 = vmax.f32 %v728_v17, 0.0  ;;  %v908_v26 = vmax.f32 %v841_v18, 0.0 }
 0x145   : > { %v957_v29 = vpack.c.bf16 %v905_v21, %v901_v19  ;;  %v959_v30 = vpack.c.bf16 %v907_v22, %v903_v20 }
 0x146   : > { %v958_v31 = vpack.c.bf16 %v906_v25, %v902_v23  ;;  %v960_v32 = vpack.c.bf16 %v908_v26, %v904_v24  ;;  %v731_v33 = vpop.f32.mrb[28].mxu0  ;;  %v844_v34 = vpop.f32.mrb[28].mxu1 }
 0x147   : > { %v732_v35 = vadd.f32 %v731_v33, %v412_v27  ;;  %v845_v36 = vadd.f32 %v844_v34, %v412_v27  ;;  %v733_v37 = vpop.f32.mrb[29].mxu0  ;;  %v846_v38 = vpop.f32.mrb[29].mxu1 }
 0x148   : > { %v734_v39 = vadd.f32 %v733_v37, %v412_v27  ;;  %v847_v40 = vadd.f32 %v846_v38, %v412_v27  ;;  %v735_v41 = vpop.f32.mrb[30].mxu0  ;;  %v848_v42 = vpop.f32.mrb[30].mxu1  ;;  %1121 = vmatprep.subr.bf16.mxu0 %v958_v31  ;;  %1234 = vmatprep.subr.bf16.mxu1 %v960_v32 }
 0x149   : > { %v736_v43 = vadd.f32 %v735_v41, %v417_v28  ;;  %v849_v44 = vadd.f32 %v848_v42, %v417_v28  ;;  %v737_v45 = vpop.f32.mrb[31].mxu0  ;;  %v850_v46 = vpop.f32.mrb[31].mxu1  ;;  %1122 = vmatpush1.bf16.msra.mxu0 %v957_v29  ;;  %1235 = vmatpush1.bf16.msra.mxu1 %v959_v30  ;;  %v909_v49 = vmax.f32 %v732_v35, 0.0  ;;  %v911_v50 = vmax.f32 %v845_v36, 0.0 }
 0x14a   : > { %v738_v47 = vadd.f32 %v737_v45, %v417_v28  ;;  %v851_v48 = vadd.f32 %v850_v46, %v417_v28  ;;  %v910_v53 = vmax.f32 %v734_v39, 0.0  ;;  %v912_v54 = vmax.f32 %v847_v40, 0.0  ;;  %v994_v23 = vpop.permute.xlu0 %993  ;;  %v999_v24 = vpop.permute.xlu1 %998 }
 0x14b   : > { %v913_v51 = vmax.f32 %v736_v43, 0.0  ;;  %v915_v52 = vmax.f32 %v849_v44, 0.0 }
 0x14c   : > { %v914_v55 = vmax.f32 %v738_v47, 0.0  ;;  %v916_v56 = vmax.f32 %v851_v48, 0.0 }
 0x14d   : > { %v961_v57 = vpack.c.bf16 %v913_v51, %v909_v49  ;;  %v963_v58 = vpack.c.bf16 %v915_v52, %v911_v50 }
 0x14e   : > { %v962_v59 = vpack.c.bf16 %v914_v55, %v910_v53  ;;  %v964_v60 = vpack.c.bf16 %v916_v56, %v912_v54  ;;  %v1004_v41 = vpop.permute.xlu0 %1003  ;;  %v1009_v42 = vpop.permute.xlu1 %1008 }
 0x150   : > { %1123 = vmatprep.subr.bf16.mxu0 %v962_v59  ;;  %1236 = vmatprep.subr.bf16.mxu1 %v964_v60 }
 0x151   : > { %1124 = vmatpush1.bf16.msra.mxu0 %v961_v57  ;;  %1237 = vmatpush1.bf16.msra.mxu1 %v963_v58 }
 0x152   : > { %v1014_v59 = vpop.permute.xlu0 %1013  ;;  %v1019_v60 = vpop.permute.xlu1 %1018 }
 0x154   : > { %1142 = vmatmul.mubr.bf16.vlgmr.msra.gmra.mrb[32].mxu0 %v1688_v61  ;;  %1255 = vmatmul.mubr.bf16.vlgmr.msra.gmra.mrb[32].mxu1 %v1688_v61 }
 0x155   : > { %1151 = vmatprep.mubr.bf16.mxu0 %v1776_v0  ;;  %1264 = vmatprep.mubr.bf16.mxu1 %v1776_v0 }
 0x15c   : > { %1152 = vmatmul.mubr.bf16.gmra.mrb[36].mxu0 %v1689_v62  ;;  %1265 = vmatmul.mubr.bf16.gmra.mrb[36].mxu1 %v1689_v62 }
 0x15d   : > { %1161 = vmatprep.mubr.bf16.mxu0 %v1776_v0  ;;  %1274 = vmatprep.mubr.bf16.mxu1 %v1776_v0 }
 0x164   : > { %1162 = vmatmul.mubr.bf16.gmra.mrb[40].mxu0 %v1690_v63  ;;  %1275 = vmatmul.mubr.bf16.gmra.mrb[40].mxu1 %v1690_v63 }
 0x165   : > { %1171 = vmatprep.mubr.bf16.mxu0 %v1776_v0  ;;  %1284 = vmatprep.mubr.bf16.mxu1 %v1776_v0 }
 0x16c   : > { %1172 = vmatmul.mubr.bf16.gmra.mrb[44].mxu0 %v1691_v1  ;;  %1285 = vmatmul.mubr.bf16.gmra.mrb[44].mxu1 %v1691_v1 }
 0x16d   : > { %1181 = vmatprep.mubr.bf16.mxu0 %v1776_v0  ;;  %1294 = vmatprep.mubr.bf16.mxu1 %v1776_v0 }
 0x174   : > { %1182 = vmatmul.mubr.bf16.gmra.mrb[48].mxu0 %v1692_v2  ;;  %1295 = vmatmul.mubr.bf16.gmra.mrb[48].mxu1 %v1692_v2 }
 0x175   : > { %1191 = vmatprep.mubr.bf16.mxu0 %v1776_v0  ;;  %1304 = vmatprep.mubr.bf16.mxu1 %v1776_v0 }
 0x17c   : > { %1192 = vmatmul.mubr.bf16.gmra.mrb[52].mxu0 %v1693_v3  ;;  %1305 = vmatmul.mubr.bf16.gmra.mrb[52].mxu1 %v1693_v3 }
 0x17d   : > { %1201 = vmatprep.mubr.bf16.mxu0 %v1776_v0  ;;  %1314 = vmatprep.mubr.bf16.mxu1 %v1776_v0 }
 0x184   : > { %1202 = vmatmul.mubr.bf16.gmra.mrb[56].mxu0 %v1694_v4  ;;  %1315 = vmatmul.mubr.bf16.gmra.mrb[56].mxu1 %v1694_v4 }
 0x185   : > { %1211 = vmatprep.mubr.bf16.mxu0 %v1776_v0  ;;  %1324 = vmatprep.mubr.bf16.mxu1 %v1776_v0 }
 0x18c   : > { %1212 = vmatmul.mubr.bf16.gmra.mrb[60].mxu0 %v1695_v5  ;;  %1325 = vmatmul.mubr.bf16.gmra.mrb[60].mxu1 %v1695_v5 }
 0x227   : > { %v1143_v8 = vpop.f32.mrb[32].mxu0  ;;  %v1256_v9 = vpop.f32.mrb[32].mxu1 }
 0x228   : > { %v1144_v10 = vadd.f32 %v1143_v8, %v984_v6  ;;  %v1257_v11 = vadd.f32 %v1256_v9, %v984_v6  ;;  %v1145_v12 = vpop.f32.mrb[33].mxu0  ;;  %v1258_v13 = vpop.f32.mrb[33].mxu1 }
 0x229   : > { %v1146_v14 = vadd.f32 %v1145_v12, %v984_v6  ;;  %v1259_v15 = vadd.f32 %v1258_v13, %v984_v6  ;;  %v1147_v0 = vpop.f32.mrb[34].mxu0  ;;  %v1260_v16 = vpop.f32.mrb[34].mxu1 }
 0x22a   : > { %1335 = vst [vmem:[%s2062_s7] sm:$0xff] %v1144_v10  ;;  %1337 = vst [vmem:[%s2062_s7 + $0x10] sm:$0xff] %v1257_v11  ;;  %v1148_v17 = vadd.f32 %v1147_v0, %v989_v7  ;;  %v1261_v18 = vadd.f32 %v1260_v16, %v989_v7  ;;  %v1149_v19 = vpop.f32.mrb[35].mxu0  ;;  %v1262_v20 = vpop.f32.mrb[35].mxu1 }
 0x22b   : > { %1336 = vst [vmem:[%s2062_s7 + $0x8] sm:$0xff] %v1146_v14  ;;  %1338 = vst [vmem:[%s2062_s7 + $0x18] sm:$0xff] %v1259_v15  ;;  %v1150_v21 = vadd.f32 %v1149_v19, %v989_v7  ;;  %v1263_v22 = vadd.f32 %v1262_v20, %v989_v7  ;;  %v1024_v14 = vpop.permute.xlu0 %1023  ;;  %v1029_v15 = vpop.permute.xlu1 %1028 }
 0x22c   : > { %1339 = vst [vmem:[%s2062_s7 + $0x20] sm:$0xff] %v1148_v17  ;;  %1341 = vst [vmem:[%s2062_s7 + $0x30] sm:$0xff] %v1261_v18 }
 0x22d   : > { %1340 = vst [vmem:[%s2062_s7 + $0x28] sm:$0xff] %v1150_v21  ;;  %1342 = vst [vmem:[%s2062_s7 + $0x38] sm:$0xff] %v1263_v22 }
 0x22f   : > { %v1153_v25 = vpop.f32.mrb[36].mxu0  ;;  %v1266_v26 = vpop.f32.mrb[36].mxu1 }
 0x230   : > { %v1154_v27 = vadd.f32 %v1153_v25, %v994_v23  ;;  %v1267_v28 = vadd.f32 %v1266_v26, %v994_v23  ;;  %v1155_v29 = vpop.f32.mrb[37].mxu0  ;;  %v1268_v30 = vpop.f32.mrb[37].mxu1 }
 0x231   : > { %v1156_v31 = vadd.f32 %v1155_v29, %v994_v23  ;;  %v1269_v32 = vadd.f32 %v1268_v30, %v994_v23  ;;  %v1157_v33 = vpop.f32.mrb[38].mxu0  ;;  %v1270_v34 = vpop.f32.mrb[38].mxu1 }
 0x232   : > { %1343 = vst [vmem:[%s2062_s7 + $0x40] sm:$0xff] %v1154_v27  ;;  %1345 = vst [vmem:[%s2062_s7 + $0x50] sm:$0xff] %v1267_v28  ;;  %v1158_v35 = vadd.f32 %v1157_v33, %v999_v24  ;;  %v1271_v36 = vadd.f32 %v1270_v34, %v999_v24  ;;  %v1159_v37 = vpop.f32.mrb[39].mxu0  ;;  %v1272_v38 = vpop.f32.mrb[39].mxu1 }
 0x233   : > { %1344 = vst [vmem:[%s2062_s7 + $0x48] sm:$0xff] %v1156_v31  ;;  %1346 = vst [vmem:[%s2062_s7 + $0x58] sm:$0xff] %v1269_v32  ;;  %v1160_v39 = vadd.f32 %v1159_v37, %v999_v24  ;;  %v1273_v40 = vadd.f32 %v1272_v38, %v999_v24  ;;  %v1034_v31 = vpop.permute.xlu0 %1033  ;;  %v1039_v32 = vpop.permute.xlu1 %1038 }
 0x234   : > { %1347 = vst [vmem:[%s2062_s7 + $0x60] sm:$0xff] %v1158_v35  ;;  %1349 = vst [vmem:[%s2062_s7 + $0x70] sm:$0xff] %v1271_v36 }
 0x235   : > { %1348 = vst [vmem:[%s2062_s7 + $0x68] sm:$0xff] %v1160_v39  ;;  %1350 = vst [vmem:[%s2062_s7 + $0x78] sm:$0xff] %v1273_v40 }
 0x237   : > { %v1163_v43 = vpop.f32.mrb[40].mxu0  ;;  %v1276_v44 = vpop.f32.mrb[40].mxu1 }
 0x238   : > { %v1164_v45 = vadd.f32 %v1163_v43, %v1004_v41  ;;  %v1277_v46 = vadd.f32 %v1276_v44, %v1004_v41  ;;  %v1165_v47 = vpop.f32.mrb[41].mxu0  ;;  %v1278_v48 = vpop.f32.mrb[41].mxu1 }
 0x239   : > { %v1166_v49 = vadd.f32 %v1165_v47, %v1004_v41  ;;  %v1279_v50 = vadd.f32 %v1278_v48, %v1004_v41  ;;  %v1167_v51 = vpop.f32.mrb[42].mxu0  ;;  %v1280_v52 = vpop.f32.mrb[42].mxu1 }
 0x23a   : > { %1351 = vst [vmem:[%s2062_s7 + $0x80] sm:$0xff] %v1164_v45  ;;  %1353 = vst [vmem:[%s2062_s7 + $0x90] sm:$0xff] %v1277_v46  ;;  %v1168_v53 = vadd.f32 %v1167_v51, %v1009_v42  ;;  %v1281_v54 = vadd.f32 %v1280_v52, %v1009_v42  ;;  %v1169_v55 = vpop.f32.mrb[43].mxu0  ;;  %v1282_v56 = vpop.f32.mrb[43].mxu1 }
 0x23b   : > { %1352 = vst [vmem:[%s2062_s7 + $0x88] sm:$0xff] %v1166_v49  ;;  %1354 = vst [vmem:[%s2062_s7 + $0x98] sm:$0xff] %v1279_v50  ;;  %v1170_v57 = vadd.f32 %v1169_v55, %v1009_v42  ;;  %v1283_v58 = vadd.f32 %v1282_v56, %v1009_v42  ;;  %v1044_v49 = vpop.permute.xlu0 %1043  ;;  %v1049_v50 = vpop.permute.xlu1 %1048 }
 0x23c   : > { %1355 = vst [vmem:[%s2062_s7 + $0xa0] sm:$0xff] %v1168_v53  ;;  %1357 = vst [vmem:[%s2062_s7 + $0xb0] sm:$0xff] %v1281_v54 }
 0x23d   : > { %1356 = vst [vmem:[%s2062_s7 + $0xa8] sm:$0xff] %v1170_v57  ;;  %1358 = vst [vmem:[%s2062_s7 + $0xb8] sm:$0xff] %v1283_v58 }
 0x23f   : > { %v1173_v61 = vpop.f32.mrb[44].mxu0  ;;  %v1286_v62 = vpop.f32.mrb[44].mxu1 }
 0x240   : > { %v1174_v63 = vadd.f32 %v1173_v61, %v1014_v59  ;;  %v1287_v1 = vadd.f32 %v1286_v62, %v1014_v59  ;;  %v1175_v2 = vpop.f32.mrb[45].mxu0  ;;  %v1288_v3 = vpop.f32.mrb[45].mxu1 }
 0x241   : > { %v1176_v4 = vadd.f32 %v1175_v2, %v1014_v59  ;;  %v1289_v5 = vadd.f32 %v1288_v3, %v1014_v59  ;;  %v1177_v6 = vpop.f32.mrb[46].mxu0  ;;  %v1290_v7 = vpop.f32.mrb[46].mxu1 }
 0x242   : > { %1359 = vst [vmem:[%s2062_s7 + $0xc0] sm:$0xff] %v1174_v63  ;;  %1361 = vst [vmem:[%s2062_s7 + $0xd0] sm:$0xff] %v1287_v1  ;;  %v1178_v8 = vadd.f32 %v1177_v6, %v1019_v60  ;;  %v1291_v9 = vadd.f32 %v1290_v7, %v1019_v60  ;;  %v1179_v10 = vpop.f32.mrb[47].mxu0  ;;  %v1292_v11 = vpop.f32.mrb[47].mxu1 }
 0x243   : > { %1360 = vst [vmem:[%s2062_s7 + $0xc8] sm:$0xff] %v1176_v4  ;;  %1362 = vst [vmem:[%s2062_s7 + $0xd8] sm:$0xff] %v1289_v5  ;;  %v1180_v12 = vadd.f32 %v1179_v10, %v1019_v60  ;;  %v1293_v13 = vadd.f32 %v1292_v11, %v1019_v60  ;;  %v1054_v4 = vpop.permute.xlu0 %1053  ;;  %v1059_v5 = vpop.permute.xlu1 %1058 }
 0x244   : > { %1363 = vst [vmem:[%s2062_s7 + $0xe0] sm:$0xff] %v1178_v8  ;;  %1365 = vst [vmem:[%s2062_s7 + $0xf0] sm:$0xff] %v1291_v9 }
 0x245   : > { %1364 = vst [vmem:[%s2062_s7 + $0xe8] sm:$0xff] %v1180_v12  ;;  %1366 = vst [vmem:[%s2062_s7 + $0xf8] sm:$0xff] %v1293_v13 }
 0x247   : > { %v1183_v0 = vpop.f32.mrb[48].mxu0  ;;  %v1296_v16 = vpop.f32.mrb[48].mxu1 }
 0x248   : > { %v1184_v17 = vadd.f32 %v1183_v0, %v1024_v14  ;;  %v1297_v18 = vadd.f32 %v1296_v16, %v1024_v14  ;;  %v1185_v19 = vpop.f32.mrb[49].mxu0  ;;  %v1298_v20 = vpop.f32.mrb[49].mxu1 }
 0x249   : > { %v1186_v21 = vadd.f32 %v1185_v19, %v1024_v14  ;;  %v1299_v22 = vadd.f32 %v1298_v20, %v1024_v14  ;;  %v1187_v23 = vpop.f32.mrb[50].mxu0  ;;  %v1300_v24 = vpop.f32.mrb[50].mxu1 }
 0x24a   : > { %1367 = vst [vmem:[%s2062_s7 + $0x100] sm:$0xff] %v1184_v17  ;;  %1369 = vst [vmem:[%s2062_s7 + $0x110] sm:$0xff] %v1297_v18  ;;  %v1188_v25 = vadd.f32 %v1187_v23, %v1029_v15  ;;  %v1301_v26 = vadd.f32 %v1300_v24, %v1029_v15  ;;  %v1189_v27 = vpop.f32.mrb[51].mxu0  ;;  %v1302_v28 = vpop.f32.mrb[51].mxu1 }
 0x24b   : > { %1368 = vst [vmem:[%s2062_s7 + $0x108] sm:$0xff] %v1186_v21  ;;  %1370 = vst [vmem:[%s2062_s7 + $0x118] sm:$0xff] %v1299_v22  ;;  %v1190_v29 = vadd.f32 %v1189_v27, %v1029_v15  ;;  %v1303_v30 = vadd.f32 %v1302_v28, %v1029_v15 }
 0x24c   : > { %1371 = vst [vmem:[%s2062_s7 + $0x120] sm:$0xff] %v1188_v25  ;;  %1373 = vst [vmem:[%s2062_s7 + $0x130] sm:$0xff] %v1301_v26 }
 0x24d   : > { %1372 = vst [vmem:[%s2062_s7 + $0x128] sm:$0xff] %v1190_v29  ;;  %1374 = vst [vmem:[%s2062_s7 + $0x138] sm:$0xff] %v1303_v30 }
 0x24f   : > { %v1193_v33 = vpop.f32.mrb[52].mxu0  ;;  %v1306_v34 = vpop.f32.mrb[52].mxu1 }
 0x250   : > { %v1194_v35 = vadd.f32 %v1193_v33, %v1034_v31  ;;  %v1307_v36 = vadd.f32 %v1306_v34, %v1034_v31  ;;  %v1195_v37 = vpop.f32.mrb[53].mxu0  ;;  %v1308_v38 = vpop.f32.mrb[53].mxu1 }
 0x251   : > { %v1196_v39 = vadd.f32 %v1195_v37, %v1034_v31  ;;  %v1309_v40 = vadd.f32 %v1308_v38, %v1034_v31  ;;  %v1197_v41 = vpop.f32.mrb[54].mxu0  ;;  %v1310_v42 = vpop.f32.mrb[54].mxu1 }
 0x252   : > { %1375 = vst [vmem:[%s2062_s7 + $0x140] sm:$0xff] %v1194_v35  ;;  %1377 = vst [vmem:[%s2062_s7 + $0x150] sm:$0xff] %v1307_v36  ;;  %v1198_v43 = vadd.f32 %v1197_v41, %v1039_v32  ;;  %v1311_v44 = vadd.f32 %v1310_v42, %v1039_v32  ;;  %v1199_v45 = vpop.f32.mrb[55].mxu0  ;;  %v1312_v46 = vpop.f32.mrb[55].mxu1 }
 0x253   : > { %1376 = vst [vmem:[%s2062_s7 + $0x148] sm:$0xff] %v1196_v39  ;;  %1378 = vst [vmem:[%s2062_s7 + $0x158] sm:$0xff] %v1309_v40  ;;  %v1200_v47 = vadd.f32 %v1199_v45, %v1039_v32  ;;  %v1313_v48 = vadd.f32 %v1312_v46, %v1039_v32 }
 0x254   : > { %1379 = vst [vmem:[%s2062_s7 + $0x160] sm:$0xff] %v1198_v43  ;;  %1381 = vst [vmem:[%s2062_s7 + $0x170] sm:$0xff] %v1311_v44 }
 0x255   : > { %1380 = vst [vmem:[%s2062_s7 + $0x168] sm:$0xff] %v1200_v47  ;;  %1382 = vst [vmem:[%s2062_s7 + $0x178] sm:$0xff] %v1313_v48 }
 0x257   : > { %v1203_v51 = vpop.f32.mrb[56].mxu0  ;;  %v1316_v52 = vpop.f32.mrb[56].mxu1 }
 0x258   : > { %v1204_v53 = vadd.f32 %v1203_v51, %v1044_v49  ;;  %v1317_v54 = vadd.f32 %v1316_v52, %v1044_v49  ;;  %v1205_v55 = vpop.f32.mrb[57].mxu0  ;;  %v1318_v56 = vpop.f32.mrb[57].mxu1 }
 0x259   : > { %v1206_v57 = vadd.f32 %v1205_v55, %v1044_v49  ;;  %v1319_v58 = vadd.f32 %v1318_v56, %v1044_v49  ;;  %v1207_v59 = vpop.f32.mrb[58].mxu0  ;;  %v1320_v60 = vpop.f32.mrb[58].mxu1 }
 0x25a   : > { %1383 = vst [vmem:[%s2062_s7 + $0x180] sm:$0xff] %v1204_v53  ;;  %1385 = vst [vmem:[%s2062_s7 + $0x190] sm:$0xff] %v1317_v54  ;;  %v1208_v61 = vadd.f32 %v1207_v59, %v1049_v50  ;;  %v1321_v62 = vadd.f32 %v1320_v60, %v1049_v50  ;;  %v1209_v63 = vpop.f32.mrb[59].mxu0  ;;  %v1322_v1 = vpop.f32.mrb[59].mxu1 }
 0x25b   : > { %1384 = vst [vmem:[%s2062_s7 + $0x188] sm:$0xff] %v1206_v57  ;;  %1386 = vst [vmem:[%s2062_s7 + $0x198] sm:$0xff] %v1319_v58  ;;  %v1210_v2 = vadd.f32 %v1209_v63, %v1049_v50  ;;  %v1323_v3 = vadd.f32 %v1322_v1, %v1049_v50 }
 0x25c   : > { %1387 = vst [vmem:[%s2062_s7 + $0x1a0] sm:$0xff] %v1208_v61  ;;  %1389 = vst [vmem:[%s2062_s7 + $0x1b0] sm:$0xff] %v1321_v62 }
 0x25d   : > { %1388 = vst [vmem:[%s2062_s7 + $0x1a8] sm:$0xff] %v1210_v2  ;;  %1390 = vst [vmem:[%s2062_s7 + $0x1b8] sm:$0xff] %v1323_v3 }
 0x25f   : > { %v1213_v6 = vpop.f32.mrb[60].mxu0  ;;  %v1326_v7 = vpop.f32.mrb[60].mxu1 }
 0x260   : > { %v1214_v8 = vadd.f32 %v1213_v6, %v1054_v4  ;;  %v1327_v9 = vadd.f32 %v1326_v7, %v1054_v4  ;;  %v1215_v10 = vpop.f32.mrb[61].mxu0  ;;  %v1328_v11 = vpop.f32.mrb[61].mxu1 }
 0x261   : > { %v1216_v12 = vadd.f32 %v1215_v10, %v1054_v4  ;;  %v1329_v13 = vadd.f32 %v1328_v11, %v1054_v4  ;;  %v1217_v14 = vpop.f32.mrb[62].mxu0  ;;  %v1330_v15 = vpop.f32.mrb[62].mxu1 }
 0x262   : > { %1391 = vst [vmem:[%s2062_s7 + $0x1c0] sm:$0xff] %v1214_v8  ;;  %1393 = vst [vmem:[%s2062_s7 + $0x1d0] sm:$0xff] %v1327_v9  ;;  %v1218_v0 = vadd.f32 %v1217_v14, %v1059_v5  ;;  %v1331_v16 = vadd.f32 %v1330_v15, %v1059_v5  ;;  %v1219_v17 = vpop.f32.mrb[63].mxu0  ;;  %v1332_v18 = vpop.f32.mrb[63].mxu1 }
 0x263   : > { %1392 = vst [vmem:[%s2062_s7 + $0x1c8] sm:$0xff] %v1216_v12  ;;  %1394 = vst [vmem:[%s2062_s7 + $0x1d8] sm:$0xff] %v1329_v13  ;;  %v1220_v19 = vadd.f32 %v1219_v17, %v1059_v5  ;;  %v1333_v20 = vadd.f32 %v1332_v18, %v1059_v5 }
 0x264   : > { %1395 = vst [vmem:[%s2062_s7 + $0x1e0] sm:$0xff] %v1218_v0  ;;  %1397 = vst [vmem:[%s2062_s7 + $0x1f0] sm:$0xff] %v1331_v16 }
 0x265   : > { %1396 = vst [vmem:[%s2062_s7 + $0x1e8] sm:$0xff] %v1220_v19  ;;  %1398 = vst [vmem:[%s2062_s7 + $0x1f8] sm:$0xff] %v1333_v20 }
 0x266   : > { %1709 = shalt.err (!%p1706_p5)
}
 0x267   : > { %s1710_s17 = scalar_lea.hbm %s2127_s11, 8192  ;;  %s1714_s27 = scalar_lea.hbm %s2190_s5, 16384 }
 0x268   : > { %p1711_p6 = scmp.ne.s32.totalorder %s2127_s11, %s1710_s17  ;;  %p1715_p10 = scmp.lt.u32.totalorder %s2127_s11, %s2190_s5 }
 0x269   : > { %p1716_p11 = scmp.lt.u32.totalorder %s1714_s27, %s1710_s17  ;;  %p1718_p13 = scmp.lt.u32.totalorder %s1710_s17, %s2127_s11 }
 0x26a   : > { %p1712_p7 = pnand %p1711_p6, %p1850_p4 }
 0x26b   : > { %p1717_p12 = por %p1716_p11, %p1715_p10 }
 0x26c   : > { %p1713_p9 = pneg %p1712_p7 }
 0x26d   : > { %p1719_p0 = por %p1718_p13, %p1717_p12 }
 0x26f   : > { %p1720_p1 = pnand %p1719_p0, %p1713_p9 }
 0x271   : > { %1723 = shalt.err (!%p1720_p1)
}
 0x272   : > { %s1778_s8 = smov 512   ;;  %s1779_s21 = smov 32  }
 0x273   : > { %1572 = dma.vmem_to_hbm [thread:$0]  (%p1850_p4), %s2129_s9, 8192, %s2127_s11, %s2139_s12, %s1778_s8, %s1778_s8, %s1779_s21  }
 0x274 PF: > { %p1578_p2 = scmp.ge.s32.totalorder %s1774_s23, 2  ;;  %s1430_s10 = sand.u32 1, %s1754_s18  }
 0x275   : > { %s1431_s13 = scalar_lea.sflag [#allocation3], %s1430_s10 }
 0x276   : > { %p1575_p3 = pnand %p1578_p2, %p1857_p8 }
 0x278   : > { %1749 = dma.done.wait (!%p1575_p3), %s1431_s13, 8192  }
 0x279   : > { %1751 = vsyncadd (!%p1575_p3), %s1431_s13, 4294959104  ;;  %s18_s23 = sadd.s32 1, %s1774_s23   ;;  %s2193_s18 = smov %s1758_s19 }
 0x27a   : > { %p15_p5 = scmp.ge.s32.totalorder %s18_s23, 4   ;;  %s2194_s19 = smov %s1762_s20 }
 0x27b   : > { %s2195_s20 = smov %s1863_s6  ;;  %s2196_s21 = smov %s1770_s22 }
 0x27c   : > { %s2197_s22 = smov %s2199_s26  ;;  %17 = sbr.rel (!%p15_p5) target bundleno = 4 (0x4), region = 78 }
 0x283   :  { %1436 = vsyncpa [#allocation3], 1 }
 0x284   :  { %1438 = vsyncpa [#allocation3 + $0x1], 1 }

// kernel: encoder_forward.2
= control target key start
LH: loop header
LB: loop body
LE: loop exit
PB: predicated region body
PF: predicated region fallthrough
CT: control target
= control target key end

     0   :  { %s2675_s27 = smov 0   ;;  %s2677_s28 = smov 0   ;;  %s3624_s0 = inlined_call_operand.vmem [shape: f32[2,3,512], index: 0, kind: input, shape index: {}]   ;;  %s3625_s1 = inlined_call_operand.vmem [shape: f32[128,3], index: 1, kind: input, shape index: {}]   ;;  %s3626_s2 = inlined_call_operand.vmem [shape: f32[128,1], index: 2, kind: input, shape index: {}]   ;;  %s3627_s3 = inlined_call_operand.vmem [shape: bf16[128,128], index: 3, kind: input, shape index: {}]   ;;  %s3628_s4 = inlined_call_operand.vmem [shape: f32[128,1], index: 4, kind: input, shape index: {}]   ;;  %s3629_s5 = inlined_call_operand.vmem [shape: bf16[128,128], index: 5, kind: input, shape index: {}]   ;;  %s3630_s6 = inlined_call_operand.vmem [shape: f32[128,1], index: 6, kind: input, shape index: {}]   ;;  %s3631_s7 = inlined_call_operand.vmem [shape: bf16[2,128,512], index: 7, kind: output, shape index: {0}]   ;;  %s3632_s8 = inlined_call_operand.vmem [shape: f32[2,128,1], index: 8, kind: output, shape index: {1}]  }
   0x1   :  { %s2679_s29 = smov 0  }
   0x2 LB: > { %s31_s30 = sadd.s32 1, %s2620_s28  ;;  %p2375_p0 = scmp.ge.s32.totalorder %s2624_s29, 1  ;;  %s2624_s29 = sphi %s2679_s29, %s19_s29   ;;  %s2620_s28 = sphi %s2677_s28, %s3649_s28   ;;  %s2616_s27 = sphi %s2675_s27, %s3648_s27  }
   0x3   : > { %p33_p1 = scmp.ge.s32.totalorder %s31_s30, 2  ;;  %p286_p2 = scmp.lt.s32.totalorder %s2624_s29, 3 }
   0x5   : > { %s3651_s30 = smov (%p33_p1, %s31_s30), 0  ;;  %p287_p3 = pnand %p2375_p0, %p286_p2 }
   0x7   : > { %290 = sbr.rel (%p287_p3) target bundleno = 997 (0x3e5), region = 48 }
   0xe   : > { %v361_v0 = vld [vmem:[%s3625_s1] sm:$0xff]  ;;  %v2626_v1 = vmov 2   ;;  %v2627_v2 = vmov 1   ;;  %v363_v3 = vld [vmem:[%s3625_s1 + $0x10] sm:$0xff]  ;;  %v362_v4 = vld [vmem:[%s3625_s1 + $0x8] sm:$0xff]  ;;  %v3637_v5 = vmov 0   ;;  %v459_v48 = vlaneseq }
   0xf   : > { %2560 = vset.pattern.permute.xlu0 %v2626_v1  ;;  %2559 = vset.pattern.permute.xlu1 %v2627_v2  ;;  %v366_v6 = vld [vmem:[%s3625_s1 + $0x28] sm:$0xff]  ;;  %v365_v7 = vld [vmem:[%s3625_s1 + $0x20] sm:$0xff]  ;;  %v368_v8 = vld [vmem:[%s3625_s1 + $0x38] sm:$0xff]  ;;  %p334_p4 = scmp.lt.s32.totalorder %s2616_s27, 1  ;;  %vm1965_vm0 = vcmask 7168  }
  0x10   : > { %788 = vperm.xlu0 %2560, %v361_v0   ;;  %560 = vperm.xlu1 %2559, %v361_v0   ;;  %v2723_v9 = vld [vmem:[%s3625_s1 + $0x48] sm:$0xff]  ;;  %v364_v10 = vld [vmem:[%s3625_s1 + $0x18] sm:$0xff]  ;;  %v1015_v14 = vld [vmem:[%s3626_s2] sm:$0xff]  ;;  %v460_v51 = vshrl.u32 %v459_v48, 7 }
  0x11   : > { %1463 = vmatprep.mubr.bf16.mxu0 %v3637_v5  ;;  %1576 = vmatprep.mubr.bf16.mxu1 %v3637_v5  ;;  %v2733_v11 = vld [vmem:[%s3625_s1 + $0x58] sm:$0xff]  ;;  %v2739_v12 = vld [vmem:[%s3625_s1 + $0x68] sm:$0xff]  ;;  %v367_v16 = vld [vmem:[%s3625_s1 + $0x30] sm:$0xff]  ;;  %s3653_s27 = smov (!%p334_p4, %s2616_s27), 1 }
  0x12   : > { %v2746_v13 = vld [vmem:[%s3625_s1 + $0x78] sm:$0xff]  ;;  %v1016_v15 = vld [vmem:[%s3626_s2 + $0x8] sm:$0xff]  ;;  %v1017_v17 = vld [vmem:[%s3626_s2 + $0x10] sm:$0xff]  ;;  %s2432_s9 = sshll.u32 %s3653_s27, 4  ;;  %v625_v55 = vsub.s32 1, %v460_v51  ;;  %v853_v59 = vsub.s32 2, %v460_v51 }
  0x13   : > { %v1019_v18 = vld [vmem:[%s3626_s2 + $0x20] sm:$0xff]  ;;  %v1018_v19 = vld [vmem:[%s3626_s2 + $0x18] sm:$0xff]  ;;  %v1021_v20 = vld [vmem:[%s3626_s2 + $0x30] sm:$0xff]  ;;  %s341_s14 = scalar_lea.vmem %s3624_s0, %s2432_s9  ;;  %v857_v60 = vsub.s32 6, %v460_v51  ;;  %v629_v61 = vsub.s32 5, %v460_v51  ;;  %v461_v63 = vsub.s32 0, %v460_v51 }
  0x14   : > { %796 = vperm.xlu0 %2560, %v363_v3   ;;  %564 = vperm.xlu1 %2559, %v362_v4   ;;  %v1023_v21 = vld [vmem:[%s3626_s2 + $0x40] sm:$0xff]  ;;  %v1025_v22 = vld [vmem:[%s3626_s2 + $0x50] sm:$0xff]  ;;  %v1020_v23 = vld [vmem:[%s3626_s2 + $0x28] sm:$0xff]  ;;  %s2433_s17 = sshll.u32 %s3653_s27, 8  ;;  %s2434_s19 = sshll.u32 %s3653_s27, 7 }
  0x15   : > { %v369_v24 = vld [vmem:[%s3625_s1 + $0x40] sm:$0xff]  ;;  %v1030_v26 = vld [vmem:[%s3626_s2 + $0x78] sm:$0xff]  ;;  %v1288_v27 = vld [vmem:[%s3628_s4 + $0x8] sm:$0xff]  ;;  %s3455_s20 = scalar_lea.vmem %s3631_s7, %s2433_s17  ;;  %s3545_s27 = scalar_lea.vmem %s3632_s8, %s2434_s19 }
  0x16   : > { %v1027_v25 = vld [vmem:[%s3626_s2 + $0x60] sm:$0xff]  ;;  %v1290_v28 = vld [vmem:[%s3628_s4 + $0x18] sm:$0xff]  ;;  %v1292_v29 = vld [vmem:[%s3628_s4 + $0x28] sm:$0xff] }
  0x17   : > { %v1022_v30 = vld [vmem:[%s3626_s2 + $0x38] sm:$0xff]  ;;  %v371_v32 = vld [vmem:[%s3625_s1 + $0x50] sm:$0xff]  ;;  %v1296_v33 = vld [vmem:[%s3628_s4 + $0x48] sm:$0xff] }
  0x18   : > { %808 = vperm.xlu0 %2560, %v366_v6   ;;  %2561 = vset.pattern.permute.xlu1 %v2626_v1  ;;  %v1294_v31 = vld [vmem:[%s3628_s4 + $0x38] sm:$0xff]  ;;  %v1300_v35 = vld [vmem:[%s3628_s4 + $0x68] sm:$0xff]  ;;  %v373_v40 = vld [vmem:[%s3625_s1 + $0x60] sm:$0xff] }
  0x19   : > { %792 = vperm.xlu1 %2561, %v362_v4   ;;  %v1298_v34 = vld [vmem:[%s3628_s4 + $0x58] sm:$0xff]  ;;  %v1024_v37 = vld [vmem:[%s3626_s2 + $0x48] sm:$0xff]  ;;  %v375_v56 = vld [vmem:[%s3625_s1 + $0x70] sm:$0xff] }
  0x1a   : > { %v1302_v36 = vld [vmem:[%s3628_s4 + $0x78] sm:$0xff]  ;;  %v359_v57 = vld [vmem:[%s341_s14] sm:$0x77]  ;;  %v360_v58 = vld [vmem:[%s341_s14 + $0x8] sm:$0x77] }
  0x1b   : > { %v1026_v52 = vld [vmem:[%s3626_s2 + $0x58] sm:$0xff] }
  0x1c   : > { %2568 = vset.pattern.permute.xlu0 %v2627_v2 }
  0x1d   : > { %576 = vperm.xlu0 %2568, %v365_v7   ;;  %2562 = vset.pattern.permute.xlu1 %v3637_v5 }
  0x1e   : > { %389 = vperm.xlu1 %2562, %v363_v3  }
  0x21   : > { %588 = vperm.xlu0 %2568, %v368_v8  }
  0x22   : > { %2563 = vset.pattern.permute.xlu1 %v2627_v2 }
  0x23   : > { %568 = vperm.xlu1 %2563, %v363_v3  }
  0x25   : > { %596 = vperm.xlu0 %2568, %v2723_v9  }
  0x27   : > { %572 = vperm.xlu1 %2563, %v364_v10  }
  0x29   : > { %604 = vperm.xlu0 %2568, %v2733_v11  }
  0x2b   : > { %2564 = vset.pattern.permute.xlu1 %v2626_v1 }
  0x2c   : > { %800 = vperm.xlu1 %2564, %v364_v10  }
  0x2d   : > { %612 = vperm.xlu0 %2568, %v2739_v12  }
  0x30   : > { %2565 = vset.pattern.permute.xlu1 %v3637_v5 }
  0x31   : > { %620 = vperm.xlu0 %2568, %v2746_v13   ;;  %1033 = vperm.xlu1 %2565, %v1015_v14   ;;  %v462_v14 = vrot.slane %v359_v57, %v461_v63 }
  0x35   : > { %2583 = vset.pattern.permute.xlu0 %v3637_v5  ;;  %399 = vperm.xlu1 %2565, %v365_v7  }
  0x36   : > { %379 = vperm.xlu0 %2583, %v361_v0   ;;  %v465_v0 = vsub.s32 4, %v460_v51 }
  0x39   : > { %404 = vperm.xlu1 %2565, %v366_v6  }
  0x3a   : > { %384 = vperm.xlu0 %2583, %v362_v4   ;;  %v626_v4 = vrot.slane %v359_v57, %v625_v55 }
  0x3d   : > { %2566 = vset.pattern.permute.xlu1 %v2627_v2 }
  0x3e   : > { %394 = vperm.xlu0 %2583, %v364_v10   ;;  %580 = vperm.xlu1 %2566, %v366_v6   ;;  %v634_v6 = vrot.slane %v360_v58, %v625_v55  ;;  %v866_v10 = vrot.slane %v360_v58, %v857_v60 }
  0x42   : > { %1038 = vperm.xlu0 %2583, %v1016_v15   ;;  %2567 = vset.pattern.permute.xlu1 %v2626_v1  ;;  %v466_v15 = vrot.slane %v359_v57, %v465_v0 }
  0x43   : > { %804 = vperm.xlu1 %2567, %v365_v7   ;;  %v854_v7 = vrot.slane %v359_v57, %v853_v59 }
  0x46   : > { %409 = vperm.xlu0 %2583, %v367_v16  }
  0x47   : > { %2569 = vset.pattern.permute.xlu1 %v3637_v5 }
  0x48   : > { %1043 = vperm.xlu1 %2569, %v1017_v17   ;;  %v474_v17 = vrot.slane %v360_v58, %v465_v0 }
  0x4a   : > { %1053 = vperm.xlu0 %2583, %v1019_v18  }
  0x4c   : > { %1048 = vperm.xlu1 %2569, %v1018_v19  }
  0x4e   : > { %424 = vperm.xlu0 %2583, %v2723_v9  }
  0x50   : > { %414 = vperm.xlu1 %2569, %v368_v8  }
  0x52   : > { %1063 = vperm.xlu0 %2583, %v1021_v20   ;;  %v2897_v20 = vrot.slane %v626_v4, %v625_v55 }
  0x54   : > { %2570 = vset.pattern.permute.xlu1 %v2627_v2 }
  0x55   : > { %584 = vperm.xlu1 %2570, %v367_v16  }
  0x56   : > { %434 = vperm.xlu0 %2583, %v2733_v11  }
  0x59   : > { %2571 = vset.pattern.permute.xlu1 %v2626_v1 }
  0x5a   : > { %1073 = vperm.xlu0 %2583, %v1023_v21   ;;  %812 = vperm.xlu1 %2571, %v367_v16   ;;  %v470_v16 = vrot.slane %v360_v58, %v461_v63  ;;  %v2899_v21 = vrot.slane %v634_v6, %v625_v55 }
  0x5e   : > { %444 = vperm.xlu0 %2583, %v2739_v12   ;;  %816 = vperm.xlu1 %2571, %v368_v8   ;;  %v858_v8 = vrot.slane %v359_v57, %v857_v60 }
  0x62   : > { %1083 = vperm.xlu0 %2583, %v1025_v22   ;;  %2572 = vset.pattern.permute.xlu1 %v3637_v5  ;;  %v2901_v22 = vrot.slane %v854_v7, %v853_v59 }
  0x63   : > { %1058 = vperm.xlu1 %2572, %v1020_v23   ;;  %v2903_v23 = vrot.slane %v858_v8, %v853_v59 }
  0x66   : > { %454 = vperm.xlu0 %2583, %v2746_v13  }
  0x67   : > { %419 = vperm.xlu1 %2572, %v369_v24  }
  0x6a   : > { %1093 = vperm.xlu0 %2583, %v1027_v25   ;;  %v2907_v25 = vrot.slane %v866_v10, %v853_v59 }
  0x6b   : > { %2573 = vset.pattern.permute.xlu1 %v2627_v2 }
  0x6c   : > { %592 = vperm.xlu1 %2573, %v369_v24  }
  0x6e   : > { %1108 = vperm.xlu0 %2583, %v1030_v26  }
  0x70   : > { %2574 = vset.pattern.permute.xlu1 %v2626_v1 }
  0x71   : > { %820 = vperm.xlu1 %2574, %v369_v24  }
  0x72   : > { %1310 = vperm.xlu0 %2583, %v1288_v27   ;;  %v2913_v27 = vrot.slane %v462_v14, %v461_v63 }
  0x75   : > { %824 = vperm.xlu1 %2574, %v2723_v9   ;;  %v862_v9 = vrot.slane %v360_v58, %v853_v59 }
  0x76   : > { %1320 = vperm.xlu0 %2583, %v1290_v28   ;;  %v2915_v28 = vrot.slane %v466_v15, %v461_v63 }
  0x77   : > { %v2905_v24 = vrot.slane %v862_v9, %v853_v59 }
  0x79   : > { %2575 = vset.pattern.permute.xlu1 %v3637_v5 }
  0x7a   : > { %1330 = vperm.xlu0 %2583, %v1292_v29   ;;  %1068 = vperm.xlu1 %2575, %v1022_v30   ;;  %v2917_v29 = vrot.slane %v470_v16, %v461_v63  ;;  %v2919_v30 = vrot.slane %v474_v17, %v461_v63  ;;  %v1028_v16 = vld [vmem:[%s3626_s2 + $0x68] sm:$0xff] }
  0x7e   : > { %1340 = vperm.xlu0 %2583, %v1294_v31   ;;  %429 = vperm.xlu1 %2575, %v371_v32  }
  0x82   : > { %1350 = vperm.xlu0 %2583, %v1296_v33   ;;  %2576 = vset.pattern.permute.xlu1 %v2627_v2 }
  0x83   : > { %600 = vperm.xlu1 %2576, %v371_v32  }
  0x86   : > { %1360 = vperm.xlu0 %2583, %v1298_v34  }
  0x87   : > { %2577 = vset.pattern.permute.xlu1 %v2626_v1 }
  0x88   : > { %828 = vperm.xlu1 %2577, %v371_v32  }
  0x8a   : > { %1370 = vperm.xlu0 %2583, %v1300_v35  }
  0x8c   : > { %832 = vperm.xlu1 %2577, %v2733_v11   ;;  %v630_v11 = vrot.slane %v359_v57, %v629_v61 }
  0x8e   : > { %1380 = vperm.xlu0 %2583, %v1302_v36   ;;  %v2909_v26 = vrot.slane %v630_v11, %v625_v55 }
  0x8f   : > { %v2840_v38 = vpop.permute.xlu1 %560  ;;  %v2842_v39 = vpop.permute.xlu0 %788 }
  0x90   : > { %2578 = vset.pattern.permute.xlu1 %v3637_v5  ;;  %v659_v32 = vmul.f32 %v2897_v20, %v2840_v38  ;;  %v661_v33 = vmul.f32 %v2899_v21, %v2840_v38  ;;  %v887_v34 = vmul.f32 %v2901_v22, %v2842_v39  ;;  %v888_v35 = vmul.f32 %v2903_v23, %v2842_v39 }
  0x91   : > { %1078 = vperm.xlu1 %2578, %v1024_v37   ;;  %v889_v37 = vmul.f32 %v2905_v24, %v2842_v39  ;;  %v660_v57 = vmul.f32 %v2909_v26, %v2840_v38 }
  0x93   : > { %v2848_v41 = vpop.permute.xlu1 %564  ;;  %v2850_v42 = vpop.permute.xlu0 %796 }
  0x94   : > { %v2957_v59 = vmul.f32 %v2905_v24, %v2850_v42  ;;  %v664_v0 = vmul.f32 %v2909_v26, %v2848_v41 }
  0x95   : > { %439 = vperm.xlu1 %2578, %v373_v40  }
  0x97   : > { %v2852_v43 = vpop.permute.xlu0 %808 }
  0x98   : > { %v2854_v44 = vpop.permute.xlu1 %792 }
  0x99   : > { %2579 = vset.pattern.permute.xlu1 %v2627_v2  ;;  %v892_v11 = vmul.f32 %v2903_v23, %v2854_v44 }
  0x9a   : > { %608 = vperm.xlu1 %2579, %v373_v40  }
  0x9c   : > { %v2858_v45 = vpop.permute.xlu0 %576 }
  0x9d   : > { %v2860_v46 = vpop.permute.xlu1 %389 }
  0x9e   : > { %2580 = vset.pattern.permute.xlu1 %v2626_v1  ;;  %v504_v14 = vmul.f32 %v2915_v28, %v2860_v46 }
  0x9f   : > { %836 = vperm.xlu1 %2580, %v373_v40   ;;  %v890_v40 = vmul.f32 %v2907_v25, %v2842_v39  ;;  %v2949_v39 = vmul.f32 %v2901_v22, %v2850_v42 }
  0xa0   : > { %v2866_v47 = vpop.permute.xlu0 %588 }
  0xa2   : > { %v2868_v49 = vpop.permute.xlu1 %568 }
  0xa3   : > { %840 = vperm.xlu1 %2580, %v2739_v12   ;;  %v638_v12 = vrot.slane %v360_v58, %v629_v61  ;;  %v665_v58 = vmul.f32 %v2899_v21, %v2848_v41  ;;  %v669_v15 = vmul.f32 %v2899_v21, %v2868_v49 }
  0xa4   : > { %v2872_v50 = vpop.permute.xlu0 %596 }
  0xa5   : > { %3639 = vst [vmem:[#allocation3_spill] sm:$0xff] %v2872_v50 }
  0xa6   : > { %v2877_v53 = vpop.permute.xlu1 %572 }
  0xa7   : > { %2581 = vset.pattern.permute.xlu1 %v3637_v5 }
  0xa8   : > { %1088 = vperm.xlu1 %2581, %v1026_v52   ;;  %v2883_v54 = vpop.permute.xlu0 %604  ;;  %v663_v52 = vmul.f32 %v2897_v20, %v2848_v41 }
  0xa9   : > { %3640 = vst [vmem:[#allocation4_spill] sm:$0xff] %v2883_v54  ;;  %v506_v54 = vmul.f32 %v2919_v30, %v2860_v46 }
  0xab   : > { %v2888_v62 = vpop.permute.xlu1 %800 }
  0xac   : > { %449 = vperm.xlu1 %2581, %v375_v56   ;;  %v2890_v3 = vpop.permute.xlu0 %612 }
  0xad   : > { %3641 = vst [vmem:[#allocation5_spill] sm:$0xff] %v2890_v3 }
  0xb0   : > { %2582 = vset.pattern.permute.xlu1 %v2627_v2  ;;  %v2893_v18 = vpop.permute.xlu1 %1033  ;;  %v2895_v19 = vpop.permute.xlu0 %620  ;;  %v2911_v2 = vrot.slane %v638_v12, %v625_v55  ;;  %v894_v12 = vmul.f32 %v2907_v25, %v2854_v44 }
  0xb1   : > { %3642 = vst [vmem:[#allocation6_spill] sm:$0xff] %v2895_v19  ;;  %616 = vperm.xlu1 %2582, %v375_v56  }
  0xb2   : > { %v666_v8 = vmul.f32 %v2911_v2, %v2848_v41  ;;  %v668_v41 = vmul.f32 %v2909_v26, %v2868_v49  ;;  %v670_v17 = vmul.f32 %v2911_v2, %v2868_v49 }
  0xb4   : > { %v2921_v31 = vpop.permute.xlu1 %399  ;;  %v732_v50 = vadd.f32 %v668_v41, %v504_v14  ;;  %v671_v14 = vmul.f32 %v2897_v20, %v2877_v53  ;;  %v674_v41 = vmul.f32 %v2911_v2, %v2877_v53 }
  0xb5   : > { %v380_v36 = vpop.permute.xlu0 %379  ;;  %2584 = vset.pattern.permute.xlu1 %v2626_v1  ;;  %v662_v1 = vmul.f32 %v2911_v2, %v2840_v38  ;;  %v2963_v38 = vmul.f32 %v2907_v25, %v2850_v42 }
  0xb6   : > { %v496_v48 = vmul.f32 %v2915_v28, %v380_v36  ;;  %v498_v51 = vmul.f32 %v2919_v30, %v380_v36  ;;  %844 = vperm.xlu1 %2584, %v375_v56   ;;  %v495_v55 = vmul.f32 %v2913_v27, %v380_v36  ;;  %v2953_v56 = vmul.f32 %v2903_v23, %v2850_v42 }
  0xb7   : > { %v497_v61 = vmul.f32 %v2917_v29, %v380_v36  ;;  %v503_v42 = vmul.f32 %v2913_v27, %v2860_v46 }
  0xb8   : > { %v2959_v60 = vpop.permute.xlu1 %404  ;;  %v724_v4 = vadd.f32 %v660_v57, %v496_v48  ;;  %v726_v9 = vadd.f32 %v662_v1, %v498_v51  ;;  %v723_v10 = vadd.f32 %v659_v32, %v495_v55  ;;  %v505_v57 = vmul.f32 %v2917_v29, %v2860_v46 }
  0xb9   : > { %v385_v63 = vpop.permute.xlu0 %384  ;;  %v725_v32 = vadd.f32 %v661_v33, %v497_v61  ;;  %v891_v33 = vmul.f32 %v2901_v22, %v2854_v44 }
  0xba   : > { %v500_v6 = vmul.f32 %v2915_v28, %v385_v63  ;;  %v502_v7 = vmul.f32 %v2919_v30, %v385_v63  ;;  %848 = vperm.xlu1 %2584, %v2746_v13   ;;  %v667_v13 = vmul.f32 %v2897_v20, %v2868_v49  ;;  %v499_v36 = vmul.f32 %v2913_v27, %v385_v63 }
  0xbb   : > { %v952_v55 = vadd.f32 %v888_v35, %v724_v4  ;;  %v954_v3 = vadd.f32 %v890_v40, %v726_v9  ;;  %v501_v49 = vmul.f32 %v2917_v29, %v385_v63  ;;  %v951_v61 = vadd.f32 %v887_v34, %v723_v10  ;;  %v1029_v35 = vld [vmem:[%s3626_s2 + $0x70] sm:$0xff] }
  0xbc   : > { %v728_v1 = vadd.f32 %v664_v0, %v500_v6  ;;  %v730_v19 = vadd.f32 %v666_v8, %v502_v7  ;;  %v731_v4 = vadd.f32 %v667_v13, %v503_v42  ;;  %v893_v40 = vmul.f32 %v2905_v24, %v2854_v44 }
  0xbd   : > { %v395_v48 = vpop.permute.xlu0 %394  ;;  %v2993_v51 = vpop.permute.xlu1 %580  ;;  %v727_v0 = vadd.f32 %v663_v52, %v499_v36  ;;  %v734_v6 = vadd.f32 %v670_v17, %v506_v54  ;;  %v1112_v63 = vadd.f32 %v2893_v18, %v952_v55  ;;  %v953_v7 = vadd.f32 %v889_v37, %v725_v32 }
  0xbe   : > { %2585 = vset.pattern.permute.xlu1 %v3637_v5  ;;  %v3006_v5 = vadd.f32 %v669_v15, %v505_v57  ;;  %v507_v8 = vmul.f32 %v2913_v27, %v395_v48  ;;  %v956_v9 = vadd.f32 %v892_v11, %v728_v1  ;;  %v958_v10 = vadd.f32 %v894_v12, %v730_v19  ;;  %v1287_v19 = vld [vmem:[%s3628_s4] sm:$0xff] }
  0xbf   : > { %1098 = vperm.xlu1 %2585, %v1028_v16   ;;  %v1114_v42 = vadd.f32 %v2893_v18, %v954_v3  ;;  %v672_v44 = vmul.f32 %v2909_v26, %v2877_v53  ;;  %v729_v52 = vadd.f32 %v665_v58, %v501_v49  ;;  %v1111_v54 = vadd.f32 %v2893_v18, %v951_v61 }
  0xc0   : > { %v508_v37 = vmul.f32 %v2915_v28, %v395_v48  ;;  %v510_v13 = vmul.f32 %v2919_v30, %v395_v48  ;;  %v673_v12 = vmul.f32 %v2899_v21, %v2877_v53  ;;  %v955_v58 = vadd.f32 %v891_v33, %v727_v0 }
  0xc1   : > { %v1039_v46 = vpop.permute.xlu0 %1038  ;;  %v1113_v15 = vadd.f32 %v2893_v18, %v953_v7  ;;  %v509_v16 = vmul.f32 %v2917_v29, %v395_v48  ;;  %v735_v17 = vadd.f32 %v671_v14, %v507_v8  ;;  %v1176_v32 = vmax.f32 %v1112_v63, 0.0  ;;  %v1289_v48 = vld [vmem:[%s3628_s4 + $0x10] sm:$0xff] }
  0xc2   : > { %v3012_v34 = vpop.permute.xlu1 %804  ;;  %v1116_v11 = vadd.f32 %v1039_v46, %v956_v9  ;;  %v1118_v3 = vadd.f32 %v1039_v46, %v958_v10  ;;  %v1178_v36 = vmax.f32 %v1114_v42, 0.0  ;;  %v1115_v49 = vadd.f32 %v1039_v46, %v955_v58 }
  0xc3   : > { %1103 = vperm.xlu1 %2585, %v1029_v35   ;;  %v957_v61 = vadd.f32 %v893_v40, %v729_v52  ;;  %v899_v35 = vmul.f32 %v2901_v22, %v2888_v62  ;;  %v736_v9 = vadd.f32 %v672_v44, %v508_v37  ;;  %v738_v10 = vadd.f32 %v674_v41, %v510_v13  ;;  %v1291_v41 = vld [vmem:[%s3628_s4 + $0x20] sm:$0xff] }
  0xc4   : > { %v1180_v57 = vmax.f32 %v1116_v11, 0.0  ;;  %v1182_v1 = vmax.f32 %v1118_v3, 0.0  ;;  %v1175_v53 = vmax.f32 %v1111_v54, 0.0  ;;  %v1179_v18 = vmax.f32 %v1115_v49, 0.0 }
  0xc5   : > { %v1117_v7 = vadd.f32 %v1039_v46, %v957_v61  ;;  %v900_v63 = vmul.f32 %v2903_v23, %v2888_v62  ;;  %v902_v40 = vmul.f32 %v2907_v25, %v2888_v62  ;;  %v737_v8 = vadd.f32 %v673_v12, %v509_v16 }
  0xc6   : > { %v1256_v33 = vpack.c.bf16 %v1180_v57, %v1176_v32  ;;  %v1258_v0 = vpack.c.bf16 %v1182_v1, %v1178_v36  ;;  %v959_v42 = vadd.f32 %v2949_v39, %v731_v4  ;;  %v1255_v14 = vpack.c.bf16 %v1179_v18, %v1175_v53  ;;  %v1293_v36 = vld [vmem:[%s3628_s4 + $0x30] sm:$0xff]  ;;  %v1295_v18 = vld [vmem:[%s3628_s4 + $0x40] sm:$0xff] }
  0xc7   : > { %1305 = vperm.xlu1 %2585, %v1287_v19   ;;  %v1044_v55 = vpop.permute.xlu1 %1043  ;;  %v1177_v44 = vmax.f32 %v1113_v15, 0.0  ;;  %v1181_v52 = vmax.f32 %v1117_v7, 0.0  ;;  %v963_v46 = vadd.f32 %v899_v35, %v735_v17  ;;  %v901_v37 = vmul.f32 %v2905_v24, %v2888_v62 }
  0xc8   : > { %1431 = vmatprep.subr.bf16.mxu0 %v1256_v33  ;;  %1544 = vmatprep.subr.bf16.mxu1 %v1258_v0  ;;  %v960_v13 = vadd.f32 %v2953_v56, %v732_v50  ;;  %v962_v19 = vadd.f32 %v2963_v38, %v734_v6  ;;  %v964_v11 = vadd.f32 %v900_v63, %v736_v9 }
  0xc9   : > { %v1119_v3 = vadd.f32 %v1044_v55, %v959_v42  ;;  %1432 = vmatpush1.bf16.msra.mxu0 %v1255_v14  ;;  %v1257_v12 = vpack.c.bf16 %v1181_v52, %v1177_v44  ;;  %v966_v39 = vadd.f32 %v902_v40, %v738_v10  ;;  %v961_v58 = vadd.f32 %v2957_v59, %v3006_v5 }
  0xca   : > { %v1120_v15 = vadd.f32 %v1044_v55, %v960_v13  ;;  %v965_v62 = vadd.f32 %v901_v37, %v737_v8  ;;  %v1122_v50 = vadd.f32 %v1044_v55, %v962_v19  ;;  %v908_v7 = vmul.f32 %v2903_v23, %v2852_v43 }
  0xcb   : > { %v1049_v54 = vpop.permute.xlu1 %1048  ;;  %1315 = vperm.xlu1 %2585, %v1289_v48   ;;  %1545 = vmatpush1.bf16.msra.mxu1 %v1257_v12  ;;  %v1121_v17 = vadd.f32 %v1044_v55, %v961_v58  ;;  %v1183_v57 = vmax.f32 %v1119_v3, 0.0  ;;  %v907_v55 = vmul.f32 %v2901_v22, %v2852_v43  ;;  %v909_v48 = vmul.f32 %v2905_v24, %v2852_v43 }
  0xcc   : > { %v1123_v4 = vadd.f32 %v1049_v54, %v963_v46  ;;  %v1124_v16 = vadd.f32 %v1049_v54, %v964_v11  ;;  %v1126_v56 = vadd.f32 %v1049_v54, %v966_v39  ;;  %v1125_v32 = vadd.f32 %v1049_v54, %v965_v62  ;;  %v3084_v46 = vpop.permute.xlu0 %409 }
  0xcd   : > { %v1184_v1 = vmax.f32 %v1120_v15, 0.0  ;;  %v1186_v5 = vmax.f32 %v1122_v50, 0.0  ;;  %v1185_v9 = vmax.f32 %v1121_v17, 0.0  ;;  %v910_v63 = vmul.f32 %v2907_v25, %v2852_v43 }
  0xce   : > { %v1187_v6 = vmax.f32 %v1123_v4, 0.0  ;;  %v1188_v49 = vmax.f32 %v1124_v16, 0.0  ;;  %v1190_v59 = vmax.f32 %v1126_v56, 0.0  ;;  %v1189_v10 = vmax.f32 %v1125_v32, 0.0 }
  0xcf   : > { %v3050_v38 = vpop.permute.xlu1 %414  ;;  %1325 = vperm.xlu1 %2585, %v1291_v41   ;;  %v675_v40 = vmul.f32 %v2897_v20, %v2858_v45  ;;  %v676_v8 = vmul.f32 %v2909_v26, %v2858_v45  ;;  %v677_v42 = vmul.f32 %v2899_v21, %v2858_v45  ;;  %v678_v14 = vmul.f32 %v2911_v2, %v2858_v45 }
  0xd0   : > { %v1259_v61 = vpack.c.bf16 %v1187_v6, %v1183_v57  ;;  %v1260_v35 = vpack.c.bf16 %v1188_v49, %v1184_v1  ;;  %v1262_v33 = vpack.c.bf16 %v1190_v59, %v1186_v5  ;;  %v1261_v0 = vpack.c.bf16 %v1189_v10, %v1185_v9  ;;  %v1299_v57 = vld [vmem:[%s3628_s4 + $0x60] sm:$0xff]  ;;  %v1054_v1 = vpop.permute.xlu0 %1053 }
  0xd1   : > { %v679_v44 = vmul.f32 %v2897_v20, %v2993_v51  ;;  %v680_v43 = vmul.f32 %v2909_v26, %v2993_v51  ;;  %v681_v52 = vmul.f32 %v2899_v21, %v2993_v51  ;;  %v682_v54 = vmul.f32 %v2911_v2, %v2993_v51  ;;  %v1297_v51 = vld [vmem:[%s3628_s4 + $0x50] sm:$0xff] }
  0xd2   : > { %1433 = vmatprep.subr.bf16.mxu0 %v1260_v35  ;;  %1546 = vmatprep.subr.bf16.mxu1 %v1262_v33  ;;  %v511_v45 = vmul.f32 %v2913_v27, %v2921_v31  ;;  %v512_v13 = vmul.f32 %v2915_v28, %v2921_v31  ;;  %v513_v19 = vmul.f32 %v2917_v29, %v2921_v31 }
  0xd3   : > { %1335 = vperm.xlu1 %2585, %v1293_v36   ;;  %1434 = vmatpush1.bf16.msra.mxu0 %v1259_v61  ;;  %v514_v11 = vmul.f32 %v2919_v30, %v2921_v31  ;;  %v515_v3 = vmul.f32 %v2913_v27, %v2959_v60  ;;  %v516_v12 = vmul.f32 %v2915_v28, %v2959_v60 }
  0xd4   : > { %v3055_v53 = vpop.permute.xlu1 %584  ;;  %1547 = vmatpush1.bf16.msra.mxu1 %v1261_v0  ;;  %v517_v39 = vmul.f32 %v2917_v29, %v2959_v60  ;;  %v518_v4 = vmul.f32 %v2919_v30, %v2959_v60  ;;  %v903_v41 = vmul.f32 %v2901_v22, %v3012_v34  ;;  %v904_v31 = vmul.f32 %v2903_v23, %v3012_v34 }
  0xd5   : > { %v905_v58 = vmul.f32 %v2905_v24, %v3012_v34  ;;  %v906_v15 = vmul.f32 %v2907_v25, %v3012_v34  ;;  %v743_v62 = vadd.f32 %v679_v44, %v515_v3  ;;  %v744_v16 = vadd.f32 %v680_v43, %v516_v12 }
  0xd6   : > { %v745_v50 = vadd.f32 %v681_v52, %v517_v39  ;;  %v746_v56 = vadd.f32 %v682_v54, %v518_v4  ;;  %v739_v60 = vadd.f32 %v675_v40, %v511_v45  ;;  %v740_v17 = vadd.f32 %v676_v8, %v512_v13 }
  0xd7   : > { %1345 = vperm.xlu1 %2585, %v1295_v18   ;;  %v741_v32 = vadd.f32 %v677_v42, %v513_v19  ;;  %v742_v36 = vadd.f32 %v678_v14, %v514_v11  ;;  %v971_v61 = vadd.f32 %v907_v55, %v743_v62  ;;  %v972_v35 = vadd.f32 %v908_v7, %v744_v16  ;;  %v1301_v42 = vld [vmem:[%s3628_s4 + $0x70] sm:$0xff] }
  0xd8   : > { %v967_v49 = vadd.f32 %v903_v41, %v739_v60  ;;  %v968_v5 = vadd.f32 %v904_v31, %v740_v17  ;;  %v973_v9 = vadd.f32 %v909_v48, %v745_v50  ;;  %v974_v10 = vadd.f32 %v910_v63, %v746_v56 }
  0xd9   : > { %v3086_v37 = vpop.permute.xlu1 %812  ;;  %v969_v59 = vadd.f32 %v905_v58, %v741_v32  ;;  %v970_v34 = vadd.f32 %v906_v15, %v742_v36  ;;  %v519_v41 = vmul.f32 %v2913_v27, %v3084_v46  ;;  %v520_v31 = vmul.f32 %v2915_v28, %v3084_v46 }
  0xda   : > { %v1127_v33 = vadd.f32 %v1054_v1, %v967_v49  ;;  %v1128_v0 = vadd.f32 %v1054_v1, %v968_v5  ;;  %v521_v58 = vmul.f32 %v2917_v29, %v3084_v46  ;;  %v522_v15 = vmul.f32 %v2919_v30, %v3084_v46  ;;  %v425_v5 = vpop.permute.xlu0 %424 }
  0xdb   : > { %1355 = vperm.xlu1 %2585, %v1297_v51   ;;  %v1129_v18 = vadd.f32 %v1054_v1, %v969_v59  ;;  %v1130_v40 = vadd.f32 %v1054_v1, %v970_v34  ;;  %v683_v62 = vmul.f32 %v2897_v20, %v3055_v53  ;;  %v684_v16 = vmul.f32 %v2909_v26, %v3055_v53 }
  0xdc   : > { %v1192_v63 = vmax.f32 %v1128_v0, 0.0  ;;  %v1191_v19 = vmax.f32 %v1127_v33, 0.0  ;;  %v685_v50 = vmul.f32 %v2899_v21, %v3055_v53  ;;  %v686_v56 = vmul.f32 %v2911_v2, %v3055_v53 }
  0xdd   : > { %v3115_v6 = vpop.permute.xlu1 %816  ;;  %v1194_v13 = vmax.f32 %v1130_v40, 0.0  ;;  %v1193_v11 = vmax.f32 %v1129_v18, 0.0  ;;  %v687_v60 = vmul.f32 %v2897_v20, %v2866_v47  ;;  %v688_v17 = vmul.f32 %v2909_v26, %v2866_v47 }
  0xde   : > { %v689_v46 = vmul.f32 %v2899_v21, %v2866_v47  ;;  %v690_v32 = vmul.f32 %v2911_v2, %v2866_v47  ;;  %v912_v53 = vmul.f32 %v2903_v23, %v3086_v37  ;;  %v913_v1 = vmul.f32 %v2905_v24, %v3086_v37 }
  0xdf   : > { %1365 = vperm.xlu1 %2585, %v1299_v57   ;;  %v911_v57 = vmul.f32 %v2901_v22, %v3086_v37  ;;  %v914_v49 = vmul.f32 %v2907_v25, %v3086_v37  ;;  %v523_v59 = vmul.f32 %v2913_v27, %v3050_v38  ;;  %v524_v47 = vmul.f32 %v2915_v28, %v3050_v38 }
  0xe0   : > { %v525_v34 = vmul.f32 %v2917_v29, %v3050_v38  ;;  %v750_v33 = vadd.f32 %v686_v56, %v522_v15  ;;  %v915_v37 = vmul.f32 %v2901_v22, %v3115_v6  ;;  %v916_v0 = vmul.f32 %v2903_v23, %v3115_v6 }
  0xe1   : > { %v917_v18 = vmul.f32 %v2905_v24, %v3115_v6  ;;  %v918_v40 = vmul.f32 %v2907_v25, %v3115_v6 }
  0xe2   : > { %v1059_v8 = vpop.permute.xlu1 %1058 }
  0xe3   : > { %v1131_v14 = vadd.f32 %v1059_v8, %v971_v61  ;;  %v1132_v44 = vadd.f32 %v1059_v8, %v972_v35  ;;  %v1133_v43 = vadd.f32 %v1059_v8, %v973_v9  ;;  %v1134_v52 = vadd.f32 %v1059_v8, %v974_v10  ;;  %1375 = vperm.xlu1 %2585, %v1301_v42  }
  0xe4   : > { %v526_v61 = vmul.f32 %v2919_v30, %v3050_v38  ;;  %v747_v35 = vadd.f32 %v683_v62, %v519_v41  ;;  %v748_v9 = vadd.f32 %v684_v16, %v520_v31  ;;  %v749_v10 = vadd.f32 %v685_v50, %v521_v58 }
  0xe5   : > { %v1196_v54 = vmax.f32 %v1132_v44, 0.0  ;;  %v1198_v45 = vmax.f32 %v1134_v52, 0.0  ;;  %v1195_v55 = vmax.f32 %v1131_v14, 0.0  ;;  %v1197_v7 = vmax.f32 %v1133_v43, 0.0 }
  0xe6   : > { %v3123_v48 = vpop.permute.xlu1 %419  ;;  %v975_v42 = vadd.f32 %v911_v57, %v747_v35  ;;  %v976_v38 = vadd.f32 %v912_v53, %v748_v9  ;;  %v977_v14 = vadd.f32 %v913_v1, %v749_v10  ;;  %v978_v44 = vadd.f32 %v914_v49, %v750_v33 }
  0xe7   : > { %v1264_v51 = vpack.c.bf16 %v1196_v54, %v1192_v63  ;;  %v1266_v3 = vpack.c.bf16 %v1198_v45, %v1194_v13  ;;  %v1263_v12 = vpack.c.bf16 %v1195_v55, %v1191_v19  ;;  %v1265_v39 = vpack.c.bf16 %v1197_v7, %v1193_v11  ;;  %v1064_v55 = vpop.permute.xlu0 %1063 }
  0xe8   : > { %v751_v43 = vadd.f32 %v687_v60, %v523_v59  ;;  %v752_v52 = vadd.f32 %v688_v17, %v524_v47  ;;  %v753_v54 = vadd.f32 %v689_v46, %v525_v34  ;;  %v754_v45 = vadd.f32 %v690_v32, %v526_v61  ;;  %v3643_v47 = vld [vmem:[#allocation3_spill] sm:$0xff] }
  0xe9   : > { %1435 = vmatprep.subr.bf16.mxu0 %v1264_v51  ;;  %1548 = vmatprep.subr.bf16.mxu1 %v1266_v3  ;;  %v1136_v51 = vadd.f32 %v1064_v55, %v976_v38  ;;  %v1138_v3 = vadd.f32 %v1064_v55, %v978_v44  ;;  %v1137_v6 = vadd.f32 %v1064_v55, %v977_v14 }
  0xea   : > { %1436 = vmatpush1.bf16.msra.mxu0 %v1263_v12  ;;  %1549 = vmatpush1.bf16.msra.mxu1 %v1265_v39  ;;  %v979_v7 = vadd.f32 %v915_v37, %v751_v43  ;;  %v980_v63 = vadd.f32 %v916_v0, %v752_v52  ;;  %v981_v13 = vadd.f32 %v917_v18, %v753_v54 }
  0xeb   : > { %v3125_v4 = vpop.permute.xlu1 %592  ;;  %v982_v19 = vadd.f32 %v918_v40, %v754_v45  ;;  %v1135_v12 = vadd.f32 %v1064_v55, %v975_v42  ;;  %v1200_v60 = vmax.f32 %v1136_v51, 0.0  ;;  %v1202_v17 = vmax.f32 %v1138_v3, 0.0 }
  0xec   : > { %v1201_v32 = vmax.f32 %v1137_v6, 0.0  ;;  %v695_v34 = vmul.f32 %v2897_v20, %v3643_v47  ;;  %v696_v61 = vmul.f32 %v2909_v26, %v3643_v47  ;;  %v697_v35 = vmul.f32 %v2899_v21, %v3643_v47 }
  0xed   : > { %v1199_v46 = vmax.f32 %v1135_v12, 0.0  ;;  %v698_v9 = vmul.f32 %v2911_v2, %v3643_v47  ;;  %v531_v10 = vmul.f32 %v2913_v27, %v425_v5  ;;  %v532_v33 = vmul.f32 %v2915_v28, %v425_v5 }
  0xee   : > { %v533_v37 = vmul.f32 %v2917_v29, %v425_v5  ;;  %v534_v0 = vmul.f32 %v2919_v30, %v425_v5  ;;  %v691_v18 = vmul.f32 %v2897_v20, %v3125_v4  ;;  %v692_v40 = vmul.f32 %v2909_v26, %v3125_v4 }
  0xef   : > { %v693_v42 = vmul.f32 %v2899_v21, %v3125_v4  ;;  %v694_v38 = vmul.f32 %v2911_v2, %v3125_v4  ;;  %v527_v14 = vmul.f32 %v2913_v27, %v3123_v48  ;;  %v528_v44 = vmul.f32 %v2915_v28, %v3123_v48 }
  0xf0   : > { %v3151_v36 = vpop.permute.xlu1 %820  ;;  %v529_v5 = vmul.f32 %v2917_v29, %v3123_v48  ;;  %v530_v43 = vmul.f32 %v2919_v30, %v3123_v48 }
  0xf1   : > { %v919_v54 = vmul.f32 %v2901_v22, %v3151_v36  ;;  %v920_v4 = vmul.f32 %v2903_v23, %v3151_v36  ;;  %v921_v45 = vmul.f32 %v2905_v24, %v3151_v36  ;;  %v922_v55 = vmul.f32 %v2907_v25, %v3151_v36 }
  0xf2   : > { %v755_v48 = vadd.f32 %v691_v18, %v527_v14  ;;  %v756_v51 = vadd.f32 %v692_v40, %v528_v44  ;;  %v757_v3 = vadd.f32 %v693_v42, %v529_v5  ;;  %v758_v12 = vadd.f32 %v694_v38, %v530_v43 }
  0xf4   : > { %v3177_v8 = vpop.permute.xlu1 %824 }
  0xf5   : > { %v923_v6 = vmul.f32 %v2901_v22, %v3177_v8  ;;  %v926_v36 = vmul.f32 %v2907_v25, %v3177_v8 }
  0xf9   : > { %v1069_v11 = vpop.permute.xlu1 %1068 }
  0xfa   : > { %v1139_v39 = vadd.f32 %v1069_v11, %v979_v7  ;;  %v1140_v41 = vadd.f32 %v1069_v11, %v980_v63  ;;  %v1141_v31 = vadd.f32 %v1069_v11, %v981_v13  ;;  %v1142_v58 = vadd.f32 %v1069_v11, %v982_v19  ;;  %v3221_v11 = vpop.permute.xlu0 %434 }
  0xfb   : > { %v759_v7 = vadd.f32 %v695_v34, %v531_v10  ;;  %v760_v63 = vadd.f32 %v696_v61, %v532_v33  ;;  %v761_v13 = vadd.f32 %v697_v35, %v533_v37  ;;  %v762_v19 = vadd.f32 %v698_v9, %v534_v0 }
  0xfc   : > { %v1204_v15 = vmax.f32 %v1140_v41, 0.0  ;;  %v1206_v62 = vmax.f32 %v1142_v58, 0.0  ;;  %v1203_v16 = vmax.f32 %v1139_v39, 0.0  ;;  %v1205_v50 = vmax.f32 %v1141_v31, 0.0 }
  0xfd   : > { %v3179_v56 = vpop.permute.xlu1 %429  ;;  %v924_v39 = vmul.f32 %v2903_v23, %v3177_v8  ;;  %v925_v41 = vmul.f32 %v2905_v24, %v3177_v8  ;;  %v983_v58 = vadd.f32 %v919_v54, %v755_v48 }
  0xfe   : > { %v1268_v57 = vpack.c.bf16 %v1204_v15, %v1200_v60  ;;  %v1270_v53 = vpack.c.bf16 %v1206_v62, %v1202_v17  ;;  %v1267_v1 = vpack.c.bf16 %v1203_v16, %v1199_v46  ;;  %v1269_v49 = vpack.c.bf16 %v1205_v50, %v1201_v32  ;;  %v1074_v50 = vpop.permute.xlu0 %1073 }
  0xff   : > { %v984_v15 = vadd.f32 %v920_v4, %v756_v51  ;;  %v985_v62 = vadd.f32 %v921_v45, %v757_v3  ;;  %v986_v16 = vadd.f32 %v922_v55, %v758_v12  ;;  %v987_v60 = vadd.f32 %v923_v6, %v759_v7 }
 0x100   : > { %1437 = vmatprep.subr.bf16.mxu0 %v1268_v57  ;;  %1550 = vmatprep.subr.bf16.mxu1 %v1270_v53  ;;  %v988_v17 = vadd.f32 %v924_v39, %v760_v63  ;;  %v989_v46 = vadd.f32 %v925_v41, %v761_v13  ;;  %v990_v32 = vadd.f32 %v926_v36, %v762_v19 }
 0x101   : > { %1438 = vmatpush1.bf16.msra.mxu0 %v1267_v1  ;;  %1551 = vmatpush1.bf16.msra.mxu1 %v1269_v49  ;;  %v1144_v53 = vadd.f32 %v1074_v50, %v984_v15  ;;  %v1146_v1 = vadd.f32 %v1074_v50, %v986_v16  ;;  %v1143_v49 = vadd.f32 %v1074_v50, %v983_v58  ;;  %v3644_v58 = vld [vmem:[#allocation4_spill] sm:$0xff] }
 0x102   : > { %v3181_v59 = vpop.permute.xlu1 %600  ;;  %v1145_v47 = vadd.f32 %v1074_v50, %v985_v62  ;;  %v535_v55 = vmul.f32 %v2913_v27, %v3179_v56  ;;  %v536_v7 = vmul.f32 %v2915_v28, %v3179_v56  ;;  %v538_v19 = vmul.f32 %v2919_v30, %v3179_v56  ;;  %v3257_v12 = vpop.permute.xlu0 %444 }
 0x103   : > { %v1208_v18 = vmax.f32 %v1144_v53, 0.0  ;;  %v1210_v40 = vmax.f32 %v1146_v1, 0.0  ;;  %v1207_v42 = vmax.f32 %v1143_v49, 0.0  ;;  %v699_v54 = vmul.f32 %v2897_v20, %v3181_v59  ;;  %v3645_v49 = vld [vmem:[#allocation5_spill] sm:$0xff] }
 0x104   : > { %v1209_v38 = vmax.f32 %v1145_v47, 0.0  ;;  %v700_v4 = vmul.f32 %v2909_v26, %v3181_v59  ;;  %v702_v45 = vmul.f32 %v2911_v2, %v3181_v59  ;;  %v701_v63 = vmul.f32 %v2899_v21, %v3181_v59 }
 0x105   : > { %v537_v59 = vmul.f32 %v2917_v29, %v3179_v56  ;;  %v763_v39 = vadd.f32 %v699_v54, %v535_v55  ;;  %v703_v15 = vmul.f32 %v2897_v20, %v3644_v58  ;;  %v704_v62 = vmul.f32 %v2909_v26, %v3644_v58  ;;  %v3646_v54 = vld [vmem:[#allocation6_spill] sm:$0xff] }
 0x106   : > { %v764_v41 = vadd.f32 %v700_v4, %v536_v7  ;;  %v766_v36 = vadd.f32 %v702_v45, %v538_v19  ;;  %v705_v50 = vmul.f32 %v2899_v21, %v3644_v58  ;;  %v706_v1 = vmul.f32 %v2911_v2, %v3644_v58 }
 0x107   : > { %v3211_v52 = vpop.permute.xlu1 %828  ;;  %v765_v16 = vadd.f32 %v701_v63, %v537_v59  ;;  %v3279_v47 = vmul.f32 %v2897_v20, %v3645_v49  ;;  %v3311_v45 = vmul.f32 %v2909_v26, %v3646_v54 }
 0x108   : > { %v927_v48 = vmul.f32 %v2901_v22, %v3211_v52  ;;  %v928_v51 = vmul.f32 %v2903_v23, %v3211_v52  ;;  %v930_v3 = vmul.f32 %v2907_v25, %v3211_v52  ;;  %v929_v6 = vmul.f32 %v2905_v24, %v3211_v52 }
 0x109   : > { %v539_v52 = vmul.f32 %v2913_v27, %v3221_v11 }
 0x10a   : > { %v993_v53 = vadd.f32 %v929_v6, %v765_v16 }
 0x10b   : > { %v3231_v31 = vpop.permute.xlu1 %832 }
 0x110   : > { %v1079_v57 = vpop.permute.xlu1 %1078 }
 0x111   : > { %v1147_v34 = vadd.f32 %v1079_v57, %v987_v60  ;;  %v1148_v61 = vadd.f32 %v1079_v57, %v988_v17  ;;  %v1149_v35 = vadd.f32 %v1079_v57, %v989_v46  ;;  %v1150_v8 = vadd.f32 %v1079_v57, %v990_v32 }
 0x112   : > { %v991_v60 = vadd.f32 %v927_v48, %v763_v39  ;;  %v992_v17 = vadd.f32 %v928_v51, %v764_v41  ;;  %v994_v46 = vadd.f32 %v930_v3, %v766_v36  ;;  %v540_v32 = vmul.f32 %v2915_v28, %v3221_v11 }
 0x113   : > { %v1212_v9 = vmax.f32 %v1148_v61, 0.0  ;;  %v1214_v10 = vmax.f32 %v1150_v8, 0.0  ;;  %v1211_v33 = vmax.f32 %v1147_v34, 0.0  ;;  %v1213_v37 = vmax.f32 %v1149_v35, 0.0  ;;  %v1084_v35 = vpop.permute.xlu0 %1083 }
 0x114   : > { %v3233_v0 = vpop.permute.xlu1 %439  ;;  %v541_v57 = vmul.f32 %v2917_v29, %v3221_v11  ;;  %v542_v34 = vmul.f32 %v2919_v30, %v3221_v11  ;;  %v3285_v61 = vmul.f32 %v2909_v26, %v3645_v49  ;;  %v931_v8 = vmul.f32 %v2901_v22, %v3231_v31 }
 0x115   : > { %v1272_v14 = vpack.c.bf16 %v1212_v9, %v1208_v18  ;;  %v1274_v44 = vpack.c.bf16 %v1214_v10, %v1210_v40  ;;  %v1271_v5 = vpack.c.bf16 %v1211_v33, %v1207_v42  ;;  %v1273_v43 = vpack.c.bf16 %v1213_v37, %v1209_v38 }
 0x116   : > { %v932_v9 = vmul.f32 %v2903_v23, %v3231_v31  ;;  %v933_v10 = vmul.f32 %v2905_v24, %v3231_v31  ;;  %v934_v33 = vmul.f32 %v2907_v25, %v3231_v31  ;;  %v1152_v11 = vadd.f32 %v1084_v35, %v992_v17 }
 0x117   : > { %1439 = vmatprep.subr.bf16.mxu0 %v1272_v14  ;;  %1552 = vmatprep.subr.bf16.mxu1 %v1274_v44  ;;  %v1154_v18 = vadd.f32 %v1084_v35, %v994_v46  ;;  %v1151_v40 = vadd.f32 %v1084_v35, %v991_v60  ;;  %v767_v42 = vadd.f32 %v703_v15, %v539_v52 }
 0x118   : > { %1440 = vmatpush1.bf16.msra.mxu0 %v1271_v5  ;;  %1553 = vmatpush1.bf16.msra.mxu1 %v1273_v43  ;;  %v768_v38 = vadd.f32 %v704_v62, %v540_v32  ;;  %v769_v14 = vadd.f32 %v705_v50, %v541_v57  ;;  %v1153_v44 = vadd.f32 %v1084_v35, %v993_v53  ;;  %v1216_v48 = vmax.f32 %v1152_v11, 0.0 }
 0x119   : > { %v3247_v13 = vpop.permute.xlu1 %608  ;;  %v3299_v5 = vmul.f32 %v2899_v21, %v3645_v49  ;;  %v3303_v43 = vmul.f32 %v2911_v2, %v3645_v49  ;;  %v3307_v31 = vmul.f32 %v2897_v20, %v3646_v54  ;;  %v770_v4 = vadd.f32 %v706_v1, %v542_v34 }
 0x11a   : > { %v995_v55 = vadd.f32 %v931_v8, %v767_v42  ;;  %v996_v7 = vadd.f32 %v932_v9, %v768_v38  ;;  %v997_v63 = vadd.f32 %v933_v10, %v769_v14  ;;  %v1218_v51 = vmax.f32 %v1154_v18, 0.0  ;;  %v455_v9 = vpop.permute.xlu0 %454 }
 0x11b   : > { %v998_v19 = vadd.f32 %v934_v33, %v770_v4  ;;  %v1215_v3 = vmax.f32 %v1151_v40, 0.0  ;;  %v707_v59 = vmul.f32 %v2897_v20, %v3247_v13  ;;  %v708_v6 = vmul.f32 %v2909_v26, %v3247_v13 }
 0x11c   : > { %v710_v39 = vmul.f32 %v2911_v2, %v3247_v13  ;;  %v1217_v36 = vmax.f32 %v1153_v44, 0.0  ;;  %v543_v50 = vmul.f32 %v2913_v27, %v3233_v0  ;;  %v544_v60 = vmul.f32 %v2915_v28, %v3233_v0 }
 0x11d   : > { %v546_v17 = vmul.f32 %v2919_v30, %v3233_v0  ;;  %v709_v46 = vmul.f32 %v2899_v21, %v3247_v13  ;;  %v545_v1 = vmul.f32 %v2917_v29, %v3233_v0  ;;  %v721_v0 = vmul.f32 %v2899_v21, %v3646_v54 }
 0x11e   : > { %v837_v56 = vpop.permute.xlu1 %836  ;;  %v771_v10 = vadd.f32 %v707_v59, %v543_v50  ;;  %v772_v33 = vadd.f32 %v708_v6, %v544_v60  ;;  %v722_v14 = vmul.f32 %v2911_v2, %v3646_v54  ;;  %v547_v44 = vmul.f32 %v2913_v27, %v3257_v12 }
 0x11f   : > { %v935_v49 = vmul.f32 %v2901_v22, %v837_v56  ;;  %v936_v34 = vmul.f32 %v2903_v23, %v837_v56  ;;  %v938_v35 = vmul.f32 %v2907_v25, %v837_v56  ;;  %v774_v11 = vadd.f32 %v710_v39, %v546_v17 }
 0x120   : > { %v937_v13 = vmul.f32 %v2905_v24, %v837_v56  ;;  %v773_v4 = vadd.f32 %v709_v46, %v545_v1  ;;  %v548_v56 = vmul.f32 %v2915_v28, %v3257_v12  ;;  %v550_v54 = vmul.f32 %v2919_v30, %v3257_v12 }
 0x121   : > { %v556_v59 = vmul.f32 %v2915_v28, %v455_v9  ;;  %v557_v6 = vmul.f32 %v2917_v29, %v455_v9  ;;  %v558_v39 = vmul.f32 %v2919_v30, %v455_v9  ;;  %v775_v60 = vadd.f32 %v3279_v47, %v547_v44 }
 0x122   : > { %v3295_v37 = vpop.permute.xlu1 %840  ;;  %v776_v17 = vadd.f32 %v3285_v61, %v548_v56 }
 0x127   : > { %v1089_v41 = vpop.permute.xlu1 %1088 }
 0x128   : > { %v1155_v58 = vadd.f32 %v1089_v41, %v995_v55  ;;  %v1156_v15 = vadd.f32 %v1089_v41, %v996_v7  ;;  %v1157_v62 = vadd.f32 %v1089_v41, %v997_v63  ;;  %v1158_v16 = vadd.f32 %v1089_v41, %v998_v19  ;;  %v1094_v41 = vpop.permute.xlu0 %1093 }
 0x129   : > { %v999_v55 = vadd.f32 %v935_v49, %v771_v10  ;;  %v1000_v7 = vadd.f32 %v936_v34, %v772_v33  ;;  %v1002_v63 = vadd.f32 %v938_v35, %v774_v11  ;;  %v549_v19 = vmul.f32 %v2917_v29, %v3257_v12 }
 0x12a   : > { %v1220_v52 = vmax.f32 %v1156_v15, 0.0  ;;  %v1222_v32 = vmax.f32 %v1158_v16, 0.0  ;;  %v1219_v57 = vmax.f32 %v1155_v58, 0.0  ;;  %v1221_v53 = vmax.f32 %v1157_v62, 0.0 }
 0x12b   : > { %v3332_v8 = vpop.permute.xlu1 %449  ;;  %v940_v58 = vmul.f32 %v2903_v23, %v3295_v37  ;;  %v941_v15 = vmul.f32 %v2905_v24, %v3295_v37  ;;  %v942_v12 = vmul.f32 %v2907_v25, %v3295_v37  ;;  %v3359_v62 = vadd.f32 %v1094_v41, %v1000_v7 }
 0x12c   : > { %v1276_v18 = vpack.c.bf16 %v1220_v52, %v1216_v48  ;;  %v1278_v40 = vpack.c.bf16 %v1222_v32, %v1218_v51  ;;  %v1275_v42 = vpack.c.bf16 %v1219_v57, %v1215_v3  ;;  %v1277_v38 = vpack.c.bf16 %v1221_v53, %v1217_v36 }
 0x12d   : > { %v1001_v48 = vadd.f32 %v937_v13, %v773_v4  ;;  %v555_v3 = vmul.f32 %v2913_v27, %v455_v9  ;;  %v939_v36 = vmul.f32 %v2901_v22, %v3295_v37  ;;  %v3361_v16 = vadd.f32 %v1094_v41, %v1002_v63 }
 0x12e   : > { %1441 = vmatprep.subr.bf16.mxu0 %v1276_v18  ;;  %1554 = vmatprep.subr.bf16.mxu1 %v1278_v40  ;;  %v3363_v50 = vadd.f32 %v1094_v41, %v999_v55  ;;  %v777_v46 = vadd.f32 %v3299_v5, %v549_v19  ;;  %v778_v32 = vadd.f32 %v3303_v43, %v550_v54  ;;  %v1224_v47 = vmax.f32 %v3359_v62, 0.0  ;;  %v1109_v55 = vpop.permute.xlu0 %1108 }
 0x12f   : > { %1442 = vmatpush1.bf16.msra.mxu0 %v1275_v42  ;;  %1555 = vmatpush1.bf16.msra.mxu1 %v1277_v38  ;;  %v3368_v52 = vadd.f32 %v1094_v41, %v1001_v48  ;;  %v783_v57 = vadd.f32 %v3307_v31, %v555_v3  ;;  %v784_v37 = vadd.f32 %v3311_v45, %v556_v59  ;;  %v1226_v61 = vmax.f32 %v3361_v16, 0.0 }
 0x130   : > { %v617_v51 = vpop.permute.xlu1 %616  ;;  %v785_v53 = vadd.f32 %v721_v0, %v557_v6  ;;  %v786_v49 = vadd.f32 %v722_v14, %v558_v39  ;;  %v1003_v34 = vadd.f32 %v939_v36, %v775_v60  ;;  %v1004_v35 = vadd.f32 %v940_v58, %v776_v17 }
 0x131   : > { %v1005_v9 = vadd.f32 %v941_v15, %v777_v46  ;;  %v1006_v10 = vadd.f32 %v942_v12, %v778_v32  ;;  %v1223_v5 = vmax.f32 %v3363_v50, 0.0  ;;  %v551_v43 = vmul.f32 %v2913_v27, %v3332_v8 }
 0x132   : > { %v552_v31 = vmul.f32 %v2915_v28, %v3332_v8  ;;  %v553_v45 = vmul.f32 %v2917_v29, %v3332_v8  ;;  %v1225_v33 = vmax.f32 %v3368_v52, 0.0  ;;  %v715_v11 = vmul.f32 %v2897_v20, %v617_v51 }
 0x133   : > { %v716_v13 = vmul.f32 %v2909_v26, %v617_v51  ;;  %v717_v18 = vmul.f32 %v2899_v21, %v617_v51  ;;  %v718_v40 = vmul.f32 %v2911_v2, %v617_v51  ;;  %v554_v29 = vmul.f32 %v2919_v30, %v3332_v8 }
 0x134   : > { %v779_v7 = vadd.f32 %v715_v11, %v551_v43 }
 0x135   : > { %v845_v1 = vpop.permute.xlu1 %844  ;;  %v780_v63 = vadd.f32 %v716_v13, %v552_v31  ;;  %v781_v56 = vadd.f32 %v717_v18, %v553_v45  ;;  %v782_v19 = vadd.f32 %v718_v40, %v554_v29  ;;  %v2589_v13 = vld [vmem:[%s3627_s3 + $0x18] sm:$0xff]   ;;  %v2590_v18 = vld [vmem:[%s3627_s3 + $0x20] sm:$0xff]   ;;  %v2591_v40 = vld [vmem:[%s3627_s3 + $0x28] sm:$0xff]  }
 0x136   : > { %v943_v20 = vmul.f32 %v2901_v22, %v845_v1  ;;  %v944_v26 = vmul.f32 %v2903_v23, %v845_v1  ;;  %v945_v21 = vmul.f32 %v2905_v24, %v845_v1  ;;  %v946_v2 = vmul.f32 %v2907_v25, %v845_v1 }
 0x138   : > { %v1008_v6 = vadd.f32 %v944_v26, %v780_v63  ;;  %v1010_v39 = vadd.f32 %v946_v2, %v782_v19 }
 0x139   : > { %v849_v42 = vpop.permute.xlu1 %848 }
 0x13a   : > { %v947_v38 = vmul.f32 %v2901_v22, %v849_v42  ;;  %v948_v27 = vmul.f32 %v2903_v23, %v849_v42  ;;  %v949_v28 = vmul.f32 %v2905_v24, %v849_v42  ;;  %v950_v0 = vmul.f32 %v2907_v25, %v849_v42  ;;  %v2592_v42 = vld [vmem:[%s3627_s3 + $0x30] sm:$0xff]  }
 0x13b   : > { %v1007_v24 = vadd.f32 %v943_v20, %v779_v7  ;;  %v1009_v25 = vadd.f32 %v945_v21, %v781_v56 }
 0x13c   : > { %v1011_v14 = vadd.f32 %v947_v38, %v783_v57  ;;  %v1012_v44 = vadd.f32 %v948_v27, %v784_v37  ;;  %v1014_v4 = vadd.f32 %v950_v0, %v786_v49  ;;  %v1013_v48 = vadd.f32 %v949_v28, %v785_v53  ;;  %v2593_v38 = vld [vmem:[%s3627_s3 + $0x38] sm:$0xff]   ;;  %v1311_v28 = vpop.permute.xlu0 %1310 }
 0x13d   : > { %v2629_v27 = vmov -inf  }
 0x13e   : > { %v1099_v51 = vpop.permute.xlu1 %1098  ;;  %v1172_v54 = vadd.f32 %v1109_v55, %v1012_v44  ;;  %v1174_v30 = vadd.f32 %v1109_v55, %v1014_v4  ;;  %v1171_v8 = vadd.f32 %v1109_v55, %v1011_v14  ;;  %v1173_v60 = vadd.f32 %v1109_v55, %v1013_v48  ;;  %1966 = vst.msk [vmem:[#allocation2] sm:$0xff] %vm1965_vm0, %v2629_v27 }
 0x13f   : > { %v1163_v22 = vadd.f32 %v1099_v51, %v1003_v34  ;;  %v1164_v3 = vadd.f32 %v1099_v51, %v1004_v35  ;;  %v1165_v23 = vadd.f32 %v1099_v51, %v1005_v9  ;;  %v1166_v59 = vadd.f32 %v1099_v51, %v1006_v10  ;;  %1967 = vst.msk [vmem:[#allocation2 + $0x8] sm:$0xff] %vm1965_vm0, %v2629_v27 }
 0x140   : > { %v1236_v62 = vmax.f32 %v1172_v54, 0.0  ;;  %v1238_v16 = vmax.f32 %v1174_v30, 0.0  ;;  %v1235_v50 = vmax.f32 %v1171_v8, 0.0  ;;  %v1237_v10 = vmax.f32 %v1173_v60, 0.0  ;;  %1968 = vst.msk [vmem:[#allocation2 + $0x10] sm:$0xff] %vm1965_vm0, %v2629_v27  ;;  %1969 = vst.msk [vmem:[#allocation2 + $0x18] sm:$0xff] %vm1965_vm0, %v2629_v27 }
 0x141   : > { %v1228_v41 = vmax.f32 %v1164_v3, 0.0  ;;  %v1230_v36 = vmax.f32 %v1166_v59, 0.0  ;;  %v1227_v58 = vmax.f32 %v1163_v22, 0.0  ;;  %v1229_v15 = vmax.f32 %v1165_v23, 0.0  ;;  %1970 = vst.msk [vmem:[#allocation2 + $0x20] sm:$0xff] %vm1965_vm0, %v2629_v27  ;;  %1971 = vst.msk [vmem:[#allocation2 + $0x28] sm:$0xff] %vm1965_vm0, %v2629_v27 }
 0x142   : > { %v1104_v12 = vpop.permute.xlu1 %1103  ;;  %1972 = vst.msk [vmem:[#allocation2 + $0x30] sm:$0xff] %vm1965_vm0, %v2629_v27  ;;  %1973 = vst.msk [vmem:[#allocation2 + $0x38] sm:$0xff] %vm1965_vm0, %v2629_v27 }
 0x143   : > { %v1167_v17 = vadd.f32 %v1104_v12, %v1007_v24  ;;  %v1168_v46 = vadd.f32 %v1104_v12, %v1008_v6  ;;  %v1169_v52 = vadd.f32 %v1104_v12, %v1009_v25  ;;  %v1170_v32 = vadd.f32 %v1104_v12, %v1010_v39  ;;  %1974 = vst.msk [vmem:[#allocation2 + $0x40] sm:$0xff] %vm1965_vm0, %v2629_v27  ;;  %v1321_v24 = vpop.permute.xlu0 %1320 }
 0x144   : > { %v1280_v57 = vpack.c.bf16 %v1228_v41, %v1224_v47  ;;  %v1282_v37 = vpack.c.bf16 %v1230_v36, %v1226_v61  ;;  %v1279_v53 = vpack.c.bf16 %v1227_v58, %v1223_v5  ;;  %v1281_v1 = vpack.c.bf16 %v1229_v15, %v1225_v33  ;;  %v2586_v47 = vld [vmem:[%s3627_s3] sm:$0xff]   ;;  %v2587_v5 = vld [vmem:[%s3627_s3 + $0x8] sm:$0xff]   ;;  %v2588_v33 = vld [vmem:[%s3627_s3 + $0x10] sm:$0xff]   ;;  %1975 = vst.msk [vmem:[#allocation2 + $0x48] sm:$0xff] %vm1965_vm0, %v2629_v27 }
 0x145   : > { %v1232_v49 = vmax.f32 %v1168_v46, 0.0  ;;  %v1234_v34 = vmax.f32 %v1170_v32, 0.0  ;;  %v1231_v35 = vmax.f32 %v1167_v17, 0.0  ;;  %v1233_v9 = vmax.f32 %v1169_v52, 0.0  ;;  %1976 = vst.msk [vmem:[#allocation2 + $0x50] sm:$0xff] %vm1965_vm0, %v2629_v27  ;;  %1977 = vst.msk [vmem:[#allocation2 + $0x58] sm:$0xff] %vm1965_vm0, %v2629_v27 }
 0x146   : > { %1443 = vmatprep.subr.bf16.mxu0 %v1280_v57  ;;  %1556 = vmatprep.subr.bf16.mxu1 %v1282_v37  ;;  %v3647_v61 = vmov 0   ;;  %1978 = vst.msk [vmem:[#allocation2 + $0x60] sm:$0xff] %vm1965_vm0, %v2629_v27  ;;  %1979 = vst.msk [vmem:[#allocation2 + $0x68] sm:$0xff] %vm1965_vm0, %v2629_v27  ;;  %v1306_v0 = vpop.permute.xlu1 %1305 }
 0x147   : > { %1444 = vmatpush1.bf16.msra.mxu0 %v1279_v53  ;;  %1557 = vmatpush1.bf16.msra.mxu1 %v1281_v1  ;;  %v1284_v43 = vpack.c.bf16 %v1236_v62, %v1232_v49  ;;  %v1286_v31 = vpack.c.bf16 %v1238_v16, %v1234_v34  ;;  %v1283_v45 = vpack.c.bf16 %v1235_v50, %v1231_v35 }
 0x148   : > { %v1285_v11 = vpack.c.bf16 %v1237_v10, %v1233_v9  ;;  %1980 = vst.msk [vmem:[#allocation2 + $0x70] sm:$0xff] %vm1965_vm0, %v2629_v27  ;;  %1981 = vst.msk [vmem:[#allocation2 + $0x78] sm:$0xff] %vm1965_vm0, %v2629_v27 }
 0x149   : > { %1445 = vmatprep.subr.bf16.mxu0 %v1284_v43  ;;  %1558 = vmatprep.subr.bf16.mxu1 %v1286_v31 }
 0x14a   : > { %v1316_v6 = vpop.permute.xlu1 %1315 }
 0x14b   : > { %1446 = vmatpush1.bf16.msra.mxu0 %v1283_v45  ;;  %1559 = vmatpush1.bf16.msra.mxu1 %v1285_v11  ;;  %v1331_v45 = vpop.permute.xlu0 %1330 }
 0x14e   : > { %1464 = vmatmul.mubr.bf16.vlgmr.msra.gmra.mrb[0].mxu0 %v2586_v47  ;;  %1577 = vmatmul.mubr.bf16.vlgmr.msra.gmra.mrb[0].mxu1 %v2586_v47  ;;  %v1326_v11 = vpop.permute.xlu1 %1325 }
 0x14f   : > { %1473 = vmatprep.mubr.bf16.mxu0 %v3647_v61  ;;  %1586 = vmatprep.mubr.bf16.mxu1 %v3647_v61 }
 0x156   : > { %1474 = vmatmul.mubr.bf16.gmra.mrb[4].mxu0 %v2587_v5  ;;  %1587 = vmatmul.mubr.bf16.gmra.mrb[4].mxu1 %v2587_v5 }
 0x157   : > { %1483 = vmatprep.mubr.bf16.mxu0 %v3647_v61  ;;  %1596 = vmatprep.mubr.bf16.mxu1 %v3647_v61 }
 0x15e   : > { %1484 = vmatmul.mubr.bf16.gmra.mrb[8].mxu0 %v2588_v33  ;;  %1597 = vmatmul.mubr.bf16.gmra.mrb[8].mxu1 %v2588_v33 }
 0x15f   : > { %1493 = vmatprep.mubr.bf16.mxu0 %v3647_v61  ;;  %1606 = vmatprep.mubr.bf16.mxu1 %v3647_v61 }
 0x166   : > { %1494 = vmatmul.mubr.bf16.gmra.mrb[12].mxu0 %v2589_v13  ;;  %1607 = vmatmul.mubr.bf16.gmra.mrb[12].mxu1 %v2589_v13 }
 0x167   : > { %1503 = vmatprep.mubr.bf16.mxu0 %v3647_v61  ;;  %1616 = vmatprep.mubr.bf16.mxu1 %v3647_v61 }
 0x16e   : > { %1504 = vmatmul.mubr.bf16.gmra.mrb[16].mxu0 %v2590_v18  ;;  %1617 = vmatmul.mubr.bf16.gmra.mrb[16].mxu1 %v2590_v18 }
 0x16f   : > { %1513 = vmatprep.mubr.bf16.mxu0 %v3647_v61  ;;  %1626 = vmatprep.mubr.bf16.mxu1 %v3647_v61 }
 0x176   : > { %1514 = vmatmul.mubr.bf16.gmra.mrb[20].mxu0 %v2591_v40  ;;  %1627 = vmatmul.mubr.bf16.gmra.mrb[20].mxu1 %v2591_v40 }
 0x177   : > { %1523 = vmatprep.mubr.bf16.mxu0 %v3647_v61  ;;  %1636 = vmatprep.mubr.bf16.mxu1 %v3647_v61 }
 0x17e   : > { %1524 = vmatmul.mubr.bf16.gmra.mrb[24].mxu0 %v2592_v42  ;;  %1637 = vmatmul.mubr.bf16.gmra.mrb[24].mxu1 %v2592_v42 }
 0x17f   : > { %1533 = vmatprep.mubr.bf16.mxu0 %v3647_v61  ;;  %1646 = vmatprep.mubr.bf16.mxu1 %v3647_v61 }
 0x186   : > { %1534 = vmatmul.mubr.bf16.gmra.mrb[28].mxu0 %v2593_v38  ;;  %1647 = vmatmul.mubr.bf16.gmra.mrb[28].mxu1 %v2593_v38 }
 0x221   : > { %v1465_v29 = vpop.f32.mrb[0].mxu0  ;;  %v1578_v20 = vpop.f32.mrb[0].mxu1 }
 0x222   : > { %v1466_v26 = vadd.f32 %v1465_v29, %v1306_v0  ;;  %v1579_v21 = vadd.f32 %v1578_v20, %v1306_v0  ;;  %v1467_v2 = vpop.f32.mrb[1].mxu0  ;;  %v1580_v14 = vpop.f32.mrb[1].mxu1 }
 0x223   : > { %v1468_v44 = vadd.f32 %v1467_v2, %v1306_v0  ;;  %v1581_v4 = vadd.f32 %v1580_v14, %v1306_v0  ;;  %v1469_v55 = vpop.f32.mrb[2].mxu0  ;;  %v1582_v7 = vpop.f32.mrb[2].mxu1 }
 0x224   : > { %v1470_v63 = vadd.f32 %v1469_v55, %v1311_v28  ;;  %v1583_v56 = vadd.f32 %v1582_v7, %v1311_v28  ;;  %v1471_v19 = vpop.f32.mrb[3].mxu0  ;;  %v1584_v48 = vpop.f32.mrb[3].mxu1 }
 0x225   : > { %v2435_v51 = vpack.c.bf16 %v1468_v44, %v1466_v26  ;;  %v1881_v54 = vmax.f32 %v1466_v26, %v1468_v44  ;;  %v2436_v30 = vpack.c.bf16 %v1581_v4, %v1579_v21  ;;  %v1472_v8 = vadd.f32 %v1471_v19, %v1311_v28 }
 0x226   : > { %v1585_v22 = vadd.f32 %v1584_v48, %v1311_v28 }
 0x227   : > { %1849 = vst [vmem:[%s3455_s20] sm:$0xff] %v2435_v51  ;;  %1850 = vst [vmem:[%s3455_s20 + $0x8] sm:$0xff] %v2436_v30  ;;  %v2437_v3 = vpack.c.bf16 %v1472_v8, %v1470_v63  ;;  %v1886_v23 = vmax.f32 %v1470_v63, %v1472_v8  ;;  %v1882_v59 = vmax.f32 %v1881_v54, %v1579_v21  ;;  %v1341_v51 = vpop.permute.xlu0 %1340  ;;  %v1336_v54 = vpop.permute.xlu1 %1335 }
 0x228   : > { %v2438_v25 = vpack.c.bf16 %v1585_v22, %v1583_v56 }
 0x229   : > { %1851 = vst [vmem:[%s3455_s20 + $0x10] sm:$0xff] %v2437_v3  ;;  %v1475_v39 = vpop.f32.mrb[4].mxu0  ;;  %v1588_v41 = vpop.f32.mrb[4].mxu1  ;;  %v1883_v36 = vmax.f32 %v1882_v59, %v1581_v4  ;;  %v1887_v58 = vmax.f32 %v1886_v23, %v1583_v56 }
 0x22a   : > { %1852 = vst [vmem:[%s3455_s20 + $0x18] sm:$0xff] %v2438_v25  ;;  %v1476_v15 = vadd.f32 %v1475_v39, %v1316_v6  ;;  %v1589_v12 = vadd.f32 %v1588_v41, %v1316_v6  ;;  %v1477_v62 = vpop.f32.mrb[5].mxu0  ;;  %v1590_v16 = vpop.f32.mrb[5].mxu1 }
 0x22b   : > { %v1478_v50 = vadd.f32 %v1477_v62, %v1316_v6  ;;  %v1591_v60 = vadd.f32 %v1590_v16, %v1316_v6  ;;  %v1479_v17 = vpop.f32.mrb[6].mxu0  ;;  %v1592_v46 = vpop.f32.mrb[6].mxu1  ;;  %1884 = vmax.xlane.f32.xlu1 %v1883_v36  ;;  %v1888_v52 = vmax.f32 %v1887_v58, %v1585_v22 }
 0x22c   : > { %v1480_v32 = vadd.f32 %v1479_v17, %v1321_v24  ;;  %v1593_v57 = vadd.f32 %v1592_v46, %v1321_v24  ;;  %v1481_v37 = vpop.f32.mrb[7].mxu0  ;;  %v1594_v53 = vpop.f32.mrb[7].mxu1 }
 0x22d   : > { %v2439_v1 = vpack.c.bf16 %v1478_v50, %v1476_v15  ;;  %v1891_v49 = vmax.f32 %v1476_v15, %v1478_v50  ;;  %v2440_v34 = vpack.c.bf16 %v1591_v60, %v1589_v12  ;;  %v1482_v35 = vadd.f32 %v1481_v37, %v1321_v24  ;;  %1889 = vmax.xlane.f32.xlu0 %v1888_v52 }
 0x22e   : > { %v1595_v9 = vadd.f32 %v1594_v53, %v1321_v24 }
 0x22f   : > { %1853 = vst [vmem:[%s3455_s20 + $0x20] sm:$0xff] %v2439_v1  ;;  %1854 = vst [vmem:[%s3455_s20 + $0x28] sm:$0xff] %v2440_v34  ;;  %v2441_v10 = vpack.c.bf16 %v1482_v35, %v1480_v32  ;;  %v1896_v43 = vmax.f32 %v1480_v32, %v1482_v35  ;;  %v1892_v31 = vmax.f32 %v1891_v49, %v1589_v12  ;;  %v1351_v1 = vpop.permute.xlu0 %1350  ;;  %v1346_v49 = vpop.permute.xlu1 %1345 }
 0x230   : > { %v2442_v47 = vpack.c.bf16 %v1595_v9, %v1593_v57 }
 0x231   : > { %1855 = vst [vmem:[%s3455_s20 + $0x30] sm:$0xff] %v2441_v10  ;;  %v1897_v61 = vmax.f32 %v1896_v43, %v1593_v57  ;;  %v1485_v5 = vpop.f32.mrb[8].mxu0  ;;  %v1598_v33 = vpop.f32.mrb[8].mxu1  ;;  %v1893_v13 = vmax.f32 %v1892_v31, %v1591_v60 }
 0x232   : > { %1856 = vst [vmem:[%s3455_s20 + $0x38] sm:$0xff] %v2442_v47  ;;  %v1486_v18 = vadd.f32 %v1485_v5, %v1326_v11  ;;  %v1599_v40 = vadd.f32 %v1598_v33, %v1326_v11  ;;  %v1487_v42 = vpop.f32.mrb[9].mxu0  ;;  %v1600_v38 = vpop.f32.mrb[9].mxu1 }
 0x233   : > { %v1898_v27 = vmax.f32 %v1897_v61, %v1595_v9  ;;  %v1488_v28 = vadd.f32 %v1487_v42, %v1326_v11  ;;  %v1601_v0 = vadd.f32 %v1600_v38, %v1326_v11  ;;  %v1489_v29 = vpop.f32.mrb[10].mxu0  ;;  %v1602_v20 = vpop.f32.mrb[10].mxu1  ;;  %1894 = vmax.xlane.f32.xlu0 %v1893_v13 }
 0x234   : > { %v1490_v26 = vadd.f32 %v1489_v29, %v1331_v45  ;;  %v1603_v21 = vadd.f32 %v1602_v20, %v1331_v45  ;;  %v1491_v2 = vpop.f32.mrb[11].mxu0  ;;  %v1604_v14 = vpop.f32.mrb[11].mxu1 }
 0x235   : > { %v2443_v44 = vpack.c.bf16 %v1488_v28, %v1486_v18  ;;  %v1901_v4 = vmax.f32 %v1486_v18, %v1488_v28  ;;  %v2444_v55 = vpack.c.bf16 %v1601_v0, %v1599_v40  ;;  %v1492_v7 = vadd.f32 %v1491_v2, %v1331_v45  ;;  %1899 = vmax.xlane.f32.xlu1 %v1898_v27 }
 0x236   : > { %v1605_v63 = vadd.f32 %v1604_v14, %v1331_v45 }
 0x237   : > { %1857 = vst [vmem:[%s3455_s20 + $0x40] sm:$0xff] %v2443_v44  ;;  %1858 = vst [vmem:[%s3455_s20 + $0x48] sm:$0xff] %v2444_v55  ;;  %v2445_v56 = vpack.c.bf16 %v1492_v7, %v1490_v26  ;;  %v1906_v19 = vmax.f32 %v1490_v26, %v1492_v7  ;;  %v1902_v48 = vmax.f32 %v1901_v4, %v1599_v40  ;;  %v1361_v44 = vpop.permute.xlu0 %1360  ;;  %v1356_v4 = vpop.permute.xlu1 %1355 }
 0x238   : > { %v2446_v30 = vpack.c.bf16 %v1605_v63, %v1603_v21 }
 0x239   : > { %1859 = vst [vmem:[%s3455_s20 + $0x50] sm:$0xff] %v2445_v56  ;;  %v1907_v8 = vmax.f32 %v1906_v19, %v1603_v21  ;;  %v1495_v22 = vpop.f32.mrb[12].mxu0  ;;  %v1608_v3 = vpop.f32.mrb[12].mxu1  ;;  %v1903_v23 = vmax.f32 %v1902_v48, %v1601_v0 }
 0x23a   : > { %1860 = vst [vmem:[%s3455_s20 + $0x58] sm:$0xff] %v2446_v30  ;;  %v1496_v59 = vadd.f32 %v1495_v22, %v1336_v54  ;;  %v1609_v24 = vadd.f32 %v1608_v3, %v1336_v54  ;;  %v1497_v6 = vpop.f32.mrb[13].mxu0  ;;  %v1610_v25 = vpop.f32.mrb[13].mxu1 }
 0x23b   : > { %v1908_v39 = vmax.f32 %v1907_v8, %v1605_v63  ;;  %v1498_v41 = vadd.f32 %v1497_v6, %v1336_v54  ;;  %v1611_v36 = vadd.f32 %v1610_v25, %v1336_v54  ;;  %v1499_v58 = vpop.f32.mrb[14].mxu0  ;;  %v1612_v15 = vpop.f32.mrb[14].mxu1  ;;  %1904 = vmax.xlane.f32.xlu0 %v1903_v23 }
 0x23c   : > { %v1500_v12 = vadd.f32 %v1499_v58, %v1341_v51  ;;  %v1613_v62 = vadd.f32 %v1612_v15, %v1341_v51  ;;  %v1501_v16 = vpop.f32.mrb[15].mxu0  ;;  %v1614_v50 = vpop.f32.mrb[15].mxu1 }
 0x23d   : > { %v2447_v60 = vpack.c.bf16 %v1498_v41, %v1496_v59  ;;  %v1911_v17 = vmax.f32 %v1496_v59, %v1498_v41  ;;  %v2448_v46 = vpack.c.bf16 %v1611_v36, %v1609_v24  ;;  %v1502_v52 = vadd.f32 %v1501_v16, %v1341_v51  ;;  %1909 = vmax.xlane.f32.xlu1 %v1908_v39 }
 0x23e   : > { %v1615_v32 = vadd.f32 %v1614_v50, %v1341_v51 }
 0x23f   : > { %1861 = vst [vmem:[%s3455_s20 + $0x60] sm:$0xff] %v2447_v60  ;;  %1862 = vst [vmem:[%s3455_s20 + $0x68] sm:$0xff] %v2448_v46  ;;  %v2449_v57 = vpack.c.bf16 %v1502_v52, %v1500_v12  ;;  %v1916_v37 = vmax.f32 %v1500_v12, %v1502_v52  ;;  %v1912_v53 = vmax.f32 %v1911_v17, %v1609_v24  ;;  %v1371_v60 = vpop.permute.xlu0 %1370  ;;  %v1366_v17 = vpop.permute.xlu1 %1365 }
 0x240   : > { %v2450_v34 = vpack.c.bf16 %v1615_v32, %v1613_v62 }
 0x241   : > { %1863 = vst [vmem:[%s3455_s20 + $0x70] sm:$0xff] %v2449_v57  ;;  %v1917_v35 = vmax.f32 %v1916_v37, %v1613_v62  ;;  %v1505_v9 = vpop.f32.mrb[16].mxu0  ;;  %v1618_v10 = vpop.f32.mrb[16].mxu1  ;;  %v1913_v43 = vmax.f32 %v1912_v53, %v1611_v36 }
 0x242   : > { %1864 = vst [vmem:[%s3455_s20 + $0x78] sm:$0xff] %v2450_v34  ;;  %v1506_v31 = vadd.f32 %v1505_v9, %v1346_v49  ;;  %v1619_v45 = vadd.f32 %v1618_v10, %v1346_v49  ;;  %v1507_v11 = vpop.f32.mrb[17].mxu0  ;;  %v1620_v47 = vpop.f32.mrb[17].mxu1 }
 0x243   : > { %v1918_v61 = vmax.f32 %v1917_v35, %v1615_v32  ;;  %v1508_v5 = vadd.f32 %v1507_v11, %v1346_v49  ;;  %v1621_v33 = vadd.f32 %v1620_v47, %v1346_v49  ;;  %v1509_v13 = vpop.f32.mrb[18].mxu0  ;;  %v1622_v18 = vpop.f32.mrb[18].mxu1  ;;  %1914 = vmax.xlane.f32.xlu0 %v1913_v43 }
 0x244   : > { %v1510_v40 = vadd.f32 %v1509_v13, %v1351_v1  ;;  %v1623_v42 = vadd.f32 %v1622_v18, %v1351_v1  ;;  %v1511_v38 = vpop.f32.mrb[19].mxu0  ;;  %v1624_v27 = vpop.f32.mrb[19].mxu1 }
 0x245   : > { %v2451_v28 = vpack.c.bf16 %v1508_v5, %v1506_v31  ;;  %v1921_v0 = vmax.f32 %v1506_v31, %v1508_v5  ;;  %v2452_v29 = vpack.c.bf16 %v1621_v33, %v1619_v45  ;;  %v1512_v20 = vadd.f32 %v1511_v38, %v1351_v1  ;;  %1919 = vmax.xlane.f32.xlu1 %v1918_v61 }
 0x246   : > { %v1625_v26 = vadd.f32 %v1624_v27, %v1351_v1 }
 0x247   : > { %1865 = vst [vmem:[%s3455_s20 + $0x80] sm:$0xff] %v2451_v28  ;;  %1866 = vst [vmem:[%s3455_s20 + $0x88] sm:$0xff] %v2452_v29  ;;  %v2453_v21 = vpack.c.bf16 %v1512_v20, %v1510_v40  ;;  %v1926_v2 = vmax.f32 %v1510_v40, %v1512_v20  ;;  %v1922_v14 = vmax.f32 %v1921_v0, %v1619_v45  ;;  %v1381_v28 = vpop.permute.xlu0 %1380  ;;  %v1376_v0 = vpop.permute.xlu1 %1375 }
 0x248   : > { %v2454_v55 = vpack.c.bf16 %v1625_v26, %v1623_v42 }
 0x249   : > { %1867 = vst [vmem:[%s3455_s20 + $0x90] sm:$0xff] %v2453_v21  ;;  %v1927_v7 = vmax.f32 %v1926_v2, %v1623_v42  ;;  %v1515_v63 = vpop.f32.mrb[20].mxu0  ;;  %v1628_v56 = vpop.f32.mrb[20].mxu1  ;;  %v1923_v19 = vmax.f32 %v1922_v14, %v1621_v33 }
 0x24a   : > { %1868 = vst [vmem:[%s3455_s20 + $0x98] sm:$0xff] %v2454_v55  ;;  %v1516_v48 = vadd.f32 %v1515_v63, %v1356_v4  ;;  %v1629_v51 = vadd.f32 %v1628_v56, %v1356_v4  ;;  %v1517_v54 = vpop.f32.mrb[21].mxu0  ;;  %v1630_v30 = vpop.f32.mrb[21].mxu1 }
 0x24b   : > { %v1928_v8 = vmax.f32 %v1927_v7, %v1625_v26  ;;  %v1518_v22 = vadd.f32 %v1517_v54, %v1356_v4  ;;  %v1631_v3 = vadd.f32 %v1630_v30, %v1356_v4  ;;  %v1519_v23 = vpop.f32.mrb[22].mxu0  ;;  %v1632_v59 = vpop.f32.mrb[22].mxu1  ;;  %1924 = vmax.xlane.f32.xlu0 %v1923_v19 }
 0x24c   : > { %v1520_v24 = vadd.f32 %v1519_v23, %v1361_v44  ;;  %v1633_v6 = vadd.f32 %v1632_v59, %v1361_v44  ;;  %v1521_v25 = vpop.f32.mrb[23].mxu0  ;;  %v1634_v39 = vpop.f32.mrb[23].mxu1 }
 0x24d   : > { %v2455_v41 = vpack.c.bf16 %v1518_v22, %v1516_v48  ;;  %v1931_v36 = vmax.f32 %v1516_v48, %v1518_v22  ;;  %v2456_v58 = vpack.c.bf16 %v1631_v3, %v1629_v51  ;;  %v1522_v15 = vadd.f32 %v1521_v25, %v1361_v44  ;;  %1929 = vmax.xlane.f32.xlu1 %v1928_v8 }
 0x24e   : > { %v1635_v12 = vadd.f32 %v1634_v39, %v1361_v44 }
 0x24f   : > { %1869 = vst [vmem:[%s3455_s20 + $0xa0] sm:$0xff] %v2455_v41  ;;  %1870 = vst [vmem:[%s3455_s20 + $0xa8] sm:$0xff] %v2456_v58  ;;  %v2457_v62 = vpack.c.bf16 %v1522_v15, %v1520_v24  ;;  %v1936_v16 = vmax.f32 %v1520_v24, %v1522_v15  ;;  %v1932_v50 = vmax.f32 %v1931_v36, %v1629_v51 }
 0x250   : > { %v2458_v46 = vpack.c.bf16 %v1635_v12, %v1633_v6 }
 0x251   : > { %1871 = vst [vmem:[%s3455_s20 + $0xb0] sm:$0xff] %v2457_v62  ;;  %v1937_v52 = vmax.f32 %v1936_v16, %v1633_v6  ;;  %v1525_v32 = vpop.f32.mrb[24].mxu0  ;;  %v1638_v57 = vpop.f32.mrb[24].mxu1  ;;  %v1933_v37 = vmax.f32 %v1932_v50, %v1631_v3  ;;  %v2595_v62 = vld [vmem:[%s3629_s5 + $0x20] sm:$0xff]  }
 0x252   : > { %1872 = vst [vmem:[%s3455_s20 + $0xb8] sm:$0xff] %v2458_v46  ;;  %v1526_v53 = vadd.f32 %v1525_v32, %v1366_v17  ;;  %v1639_v1 = vadd.f32 %v1638_v57, %v1366_v17  ;;  %v1527_v49 = vpop.f32.mrb[25].mxu0  ;;  %v1640_v34 = vpop.f32.mrb[25].mxu1  ;;  %2507 = vmatprep.mubr.bf16.mxu1 %v2595_v62  ;;  %v1982_v16 = vld [vmem:[#allocation2] sm:$0xff]  ;;  %v1984_v32 = vld [vmem:[#allocation2 + $0x10] sm:$0xff] }
 0x253   : > { %v1938_v35 = vmax.f32 %v1937_v52, %v1635_v12  ;;  %v1528_v9 = vadd.f32 %v1527_v49, %v1366_v17  ;;  %v1641_v10 = vadd.f32 %v1640_v34, %v1366_v17  ;;  %v1529_v43 = vpop.f32.mrb[26].mxu0  ;;  %v1642_v31 = vpop.f32.mrb[26].mxu1  ;;  %1934 = vmax.xlane.f32.xlu0 %v1933_v37  ;;  %v2594_v12 = vld [vmem:[%s3629_s5] sm:$0xff]   ;;  %v1985_v37 = vld [vmem:[#allocation2 + $0x18] sm:$0xff] }
 0x254   : > { %v1530_v45 = vadd.f32 %v1529_v43, %v1371_v60  ;;  %v1643_v11 = vadd.f32 %v1642_v31, %v1371_v60  ;;  %v1531_v47 = vpop.f32.mrb[27].mxu0  ;;  %v1644_v61 = vpop.f32.mrb[27].mxu1  ;;  %2499 = vmatprep.mubr.bf16.mxu0 %v2594_v12  ;;  %v1987_v31 = vld [vmem:[#allocation2 + $0x28] sm:$0xff]  ;;  %v1997_v12 = vld [vmem:[#allocation2 + $0x78] sm:$0xff] }
 0x255   : > { %v2459_v5 = vpack.c.bf16 %v1528_v9, %v1526_v53  ;;  %v1941_v33 = vmax.f32 %v1526_v53, %v1528_v9  ;;  %v2460_v13 = vpack.c.bf16 %v1641_v10, %v1639_v1  ;;  %v1532_v18 = vadd.f32 %v1531_v47, %v1371_v60  ;;  %1939 = vmax.xlane.f32.xlu1 %v1938_v35 }
 0x256   : > { %v1645_v40 = vadd.f32 %v1644_v61, %v1371_v60  ;;  %v1983_v60 = vld [vmem:[#allocation2 + $0x8] sm:$0xff] }
 0x257   : > { %1873 = vst [vmem:[%s3455_s20 + $0xc0] sm:$0xff] %v2459_v5  ;;  %1874 = vst [vmem:[%s3455_s20 + $0xc8] sm:$0xff] %v2460_v13  ;;  %v2461_v42 = vpack.c.bf16 %v1532_v18, %v1530_v45  ;;  %v1946_v38 = vmax.f32 %v1530_v45, %v1532_v18  ;;  %v1942_v27 = vmax.f32 %v1941_v33, %v1639_v1  ;;  %v1988_v13 = vld [vmem:[#allocation2 + $0x30] sm:$0xff] }
 0x258   : > { %v2462_v29 = vpack.c.bf16 %v1645_v40, %v1643_v11 }
 0x259   : > { %1875 = vst [vmem:[%s3455_s20 + $0xd0] sm:$0xff] %v2461_v42  ;;  %v1947_v20 = vmax.f32 %v1946_v38, %v1643_v11  ;;  %v1535_v26 = vpop.f32.mrb[28].mxu0  ;;  %v1648_v21 = vpop.f32.mrb[28].mxu1  ;;  %v1943_v2 = vmax.f32 %v1942_v27, %v1641_v10  ;;  %v1986_v10 = vld [vmem:[#allocation2 + $0x20] sm:$0xff] }
 0x25a   : > { %1876 = vst [vmem:[%s3455_s20 + $0xd8] sm:$0xff] %v2462_v29  ;;  %v1536_v14 = vadd.f32 %v1535_v26, %v1376_v0  ;;  %v1649_v44 = vadd.f32 %v1648_v21, %v1376_v0  ;;  %v1537_v4 = vpop.f32.mrb[29].mxu0  ;;  %v1650_v55 = vpop.f32.mrb[29].mxu1  ;;  %v1991_v21 = vld [vmem:[#allocation2 + $0x48] sm:$0xff] }
 0x25b   : > { %v1948_v7 = vmax.f32 %v1947_v20, %v1645_v40  ;;  %v1538_v63 = vadd.f32 %v1537_v4, %v1376_v0  ;;  %v1651_v56 = vadd.f32 %v1650_v55, %v1376_v0  ;;  %v1539_v19 = vpop.f32.mrb[30].mxu0  ;;  %v1652_v48 = vpop.f32.mrb[30].mxu1  ;;  %1944 = vmax.xlane.f32.xlu0 %v1943_v2  ;;  %v1989_v40 = vld [vmem:[#allocation2 + $0x38] sm:$0xff]  ;;  %v1990_v20 = vld [vmem:[#allocation2 + $0x40] sm:$0xff] }
 0x25c   : > { %v1540_v51 = vadd.f32 %v1539_v19, %v1381_v28  ;;  %v1653_v54 = vadd.f32 %v1652_v48, %v1381_v28  ;;  %v1541_v30 = vpop.f32.mrb[31].mxu0  ;;  %v1654_v8 = vpop.f32.mrb[31].mxu1  ;;  %v1993_v19 = vld [vmem:[#allocation2 + $0x58] sm:$0xff] }
 0x25d   : > { %v2463_v22 = vpack.c.bf16 %v1538_v63, %v1536_v14  ;;  %v1951_v3 = vmax.f32 %v1536_v14, %v1538_v63  ;;  %v2464_v23 = vpack.c.bf16 %v1651_v56, %v1649_v44  ;;  %v1542_v59 = vadd.f32 %v1541_v30, %v1381_v28  ;;  %1949 = vmax.xlane.f32.xlu1 %v1948_v7  ;;  %v1992_v63 = vld [vmem:[#allocation2 + $0x50] sm:$0xff] }
 0x25e   : > { %v1655_v24 = vadd.f32 %v1654_v8, %v1381_v28 }
 0x25f   : > { %1877 = vst [vmem:[%s3455_s20 + $0xe0] sm:$0xff] %v2463_v22  ;;  %1878 = vst [vmem:[%s3455_s20 + $0xe8] sm:$0xff] %v2464_v23  ;;  %v2465_v6 = vpack.c.bf16 %v1542_v59, %v1540_v51  ;;  %v1956_v25 = vmax.f32 %v1540_v51, %v1542_v59  ;;  %v1952_v39 = vmax.f32 %v1951_v3, %v1649_v44  ;;  %v1994_v3 = vld [vmem:[#allocation2 + $0x60] sm:$0xff]  ;;  %v1995_v59 = vld [vmem:[#allocation2 + $0x68] sm:$0xff] }
 0x260   : > { %v2466_v41 = vpack.c.bf16 %v1655_v24, %v1653_v54 }
 0x261   : > { %1879 = vst [vmem:[%s3455_s20 + $0xf0] sm:$0xff] %v2465_v6  ;;  %v1957_v36 = vmax.f32 %v1956_v25, %v1653_v54  ;;  %v1953_v58 = vmax.f32 %v1952_v39, %v1651_v56 }
 0x262   : > { %1880 = vst [vmem:[%s3455_s20 + $0xf8] sm:$0xff] %v2466_v41 }
 0x263   : > { %v1958_v15 = vmax.f32 %v1957_v36, %v1655_v24  ;;  %1954 = vmax.xlane.f32.xlu0 %v1953_v58  ;;  %v1996_v58 = vld [vmem:[#allocation2 + $0x70] sm:$0xff] }
 0x265   : > { %1959 = vmax.xlane.f32.xlu1 %v1958_v15 }
 0x2b8   : > { %v1885_v50 = vpop.xlane.xlu1 %1884 }
 0x2b9   : > { %v1998_v17 = vmax.f32 %v1982_v16, %v1885_v50 }
 0x2ba   : > { %v1890_v46 = vpop.xlane.xlu0 %1889 }
 0x2bb   : > { %2015 = vst.msk [vmem:[#allocation2] sm:$0xff] %vm1965_vm0, %v1998_v17  ;;  %v1999_v52 = vmax.f32 %v1983_v60, %v1890_v46 }
 0x2bd   : > { %2016 = vst.msk [vmem:[#allocation2 + $0x8] sm:$0xff] %vm1965_vm0, %v1999_v52 }
 0x2c0   : > { %v1895_v57 = vpop.xlane.xlu0 %1894 }
 0x2c1   : > { %v2000_v53 = vmax.f32 %v1984_v32, %v1895_v57 }
 0x2c2   : > { %v1900_v1 = vpop.xlane.xlu1 %1899  ;;  %v2050_v34 = vld [vmem:[#allocation2] sm:$0xff] }
 0x2c3   : > { %2017 = vst.msk [vmem:[#allocation2 + $0x10] sm:$0xff] %vm1965_vm0, %v2000_v53  ;;  %v2001_v49 = vmax.f32 %v1985_v37, %v1900_v1  ;;  %v2596_v37 = vld [vmem:[%s3629_s5 + $0x8] sm:$0xff]   ;;  %v2598_v1 = vld [vmem:[%s3629_s5 + $0x10] sm:$0xff]  }
 0x2c4   : > { %v2051_v35 = vld [vmem:[#allocation2 + $0x8] sm:$0xff] }
 0x2c5   : > { %2018 = vst.msk [vmem:[#allocation2 + $0x18] sm:$0xff] %vm1965_vm0, %v2001_v49  ;;  %v2066_v9 = vpack.c.bf16 %v2051_v35, %v2050_v34  ;;  %v2597_v53 = vld [vmem:[%s3629_s5 + $0x28] sm:$0xff]   ;;  %v2599_v49 = vld [vmem:[%s3629_s5 + $0x30] sm:$0xff]   ;;  %v2600_v34 = vld [vmem:[%s3629_s5 + $0x18] sm:$0xff]  }
 0x2c6   : > { %v2601_v35 = vld [vmem:[%s3629_s5 + $0x38] sm:$0xff]  }
 0x2c7   : > { %2483 = vmatprep.subr.bf16.mxu0 %v2066_v9  ;;  %2515 = vmatprep.subr.bf16.mxu1 %v2066_v9 }
 0x2c8   : > { %v1905_v43 = vpop.xlane.xlu0 %1904  ;;  %2484 = vmatpush3.bf16.msra.mxu0 %v2066_v9  ;;  %2523 = vmatpush3.bf16.msra.mxu1 %v2066_v9  ;;  %v2076_v9 = vld [vmem:[%s3630_s6 + $0x10] sm:$0xff] }
 0x2c9   : > { %v2002_v45 = vmax.f32 %v1986_v10, %v1905_v43  ;;  %v2084_v10 = vld [vmem:[%s3630_s6 + $0x50] sm:$0xff]  ;;  %v2074_v43 = vld [vmem:[%s3630_s6] sm:$0xff] }
 0x2ca   : > { %v1910_v11 = vpop.xlane.xlu1 %1909  ;;  %v2052_v61 = vld [vmem:[#allocation2 + $0x10] sm:$0xff] }
 0x2cb   : > { %2019 = vst.msk [vmem:[#allocation2 + $0x20] sm:$0xff] %vm1965_vm0, %v2002_v45  ;;  %v2003_v47 = vmax.f32 %v1987_v31, %v1910_v11  ;;  %v2082_v31 = vld [vmem:[%s3630_s6 + $0x40] sm:$0xff] }
 0x2cc   : > { %v2053_v5 = vld [vmem:[#allocation2 + $0x18] sm:$0xff] }
 0x2cd   : > { %2020 = vst.msk [vmem:[#allocation2 + $0x28] sm:$0xff] %vm1965_vm0, %v2003_v47  ;;  %v2067_v33 = vpack.c.bf16 %v2053_v5, %v2052_v61  ;;  %v2077_v47 = vld [vmem:[%s3630_s6 + $0x18] sm:$0xff] }
 0x2ce   : > { %v2085_v61 = vld [vmem:[%s3630_s6 + $0x58] sm:$0xff] }
 0x2cf   : > { %2485 = vmatprep.subr.bf16.mxu0 %v2067_v33  ;;  %2516 = vmatprep.subr.bf16.mxu1 %v2067_v33 }
 0x2d0   : > { %v1915_v18 = vpop.xlane.xlu0 %1914  ;;  %2486 = vmatpush3.bf16.msra.mxu0 %v2067_v33  ;;  %2524 = vmatpush3.bf16.msra.mxu1 %v2067_v33 }
 0x2d1   : > { %v2004_v42 = vmax.f32 %v1988_v13, %v1915_v18 }
 0x2d2   : > { %v1920_v38 = vpop.xlane.xlu1 %1919  ;;  %v2054_v28 = vld [vmem:[#allocation2 + $0x20] sm:$0xff] }
 0x2d3   : > { %2021 = vst.msk [vmem:[#allocation2 + $0x30] sm:$0xff] %vm1965_vm0, %v2004_v42  ;;  %v2005_v27 = vmax.f32 %v1989_v40, %v1920_v38  ;;  %v2075_v40 = vld [vmem:[%s3630_s6 + $0x8] sm:$0xff] }
 0x2d4   : > { %v2055_v0 = vld [vmem:[#allocation2 + $0x28] sm:$0xff] }
 0x2d5   : > { %2022 = vst.msk [vmem:[#allocation2 + $0x38] sm:$0xff] %vm1965_vm0, %v2005_v27  ;;  %v2068_v29 = vpack.c.bf16 %v2055_v0, %v2054_v28  ;;  %v2083_v42 = vld [vmem:[%s3630_s6 + $0x48] sm:$0xff] }
 0x2d7   : > { %2487 = vmatprep.subr.bf16.mxu0 %v2068_v29  ;;  %2517 = vmatprep.subr.bf16.mxu1 %v2068_v29 }
 0x2d8   : > { %v1925_v26 = vpop.xlane.xlu0 %1924  ;;  %2488 = vmatpush3.bf16.msra.mxu0 %v2068_v29  ;;  %2525 = vmatpush3.bf16.msra.mxu1 %v2068_v29 }
 0x2d9   : > { %v2006_v2 = vmax.f32 %v1990_v20, %v1925_v26 }
 0x2da   : > { %v1930_v14 = vpop.xlane.xlu1 %1929  ;;  %v2056_v4 = vld [vmem:[#allocation2 + $0x30] sm:$0xff] }
 0x2db   : > { %2023 = vst.msk [vmem:[#allocation2 + $0x40] sm:$0xff] %vm1965_vm0, %v2006_v2  ;;  %v2007_v44 = vmax.f32 %v1991_v21, %v1930_v14 }
 0x2dc   : > { %v2057_v55 = vld [vmem:[#allocation2 + $0x38] sm:$0xff] }
 0x2dd   : > { %2024 = vst.msk [vmem:[#allocation2 + $0x48] sm:$0xff] %vm1965_vm0, %v2007_v44  ;;  %v2069_v7 = vpack.c.bf16 %v2057_v55, %v2056_v4  ;;  %v2080_v44 = vld [vmem:[%s3630_s6 + $0x30] sm:$0xff]  ;;  %v2078_v55 = vld [vmem:[%s3630_s6 + $0x20] sm:$0xff] }
 0x2de   : > { %v2088_v4 = vld [vmem:[%s3630_s6 + $0x70] sm:$0xff] }
 0x2df   : > { %2489 = vmatprep.subr.bf16.mxu0 %v2069_v7  ;;  %2518 = vmatprep.subr.bf16.mxu1 %v2069_v7 }
 0x2e0   : > { %v1935_v56 = vpop.xlane.xlu0 %1934  ;;  %2490 = vmatpush3.bf16.msra.mxu0 %v2069_v7  ;;  %2526 = vmatpush3.bf16.msra.mxu1 %v2069_v7  ;;  %v2086_v7 = vld [vmem:[%s3630_s6 + $0x60] sm:$0xff] }
 0x2e1   : > { %v2008_v48 = vmax.f32 %v1992_v63, %v1935_v56 }
 0x2e2   : > { %v1940_v51 = vpop.xlane.xlu1 %1939  ;;  %v2058_v30 = vld [vmem:[#allocation2 + $0x40] sm:$0xff] }
 0x2e3   : > { %2025 = vst.msk [vmem:[#allocation2 + $0x50] sm:$0xff] %vm1965_vm0, %v2008_v48  ;;  %v2009_v54 = vmax.f32 %v1993_v19, %v1940_v51  ;;  %v2081_v19 = vld [vmem:[%s3630_s6 + $0x38] sm:$0xff] }
 0x2e4   : > { %v2059_v8 = vld [vmem:[#allocation2 + $0x48] sm:$0xff]  ;;  %v2089_v48 = vld [vmem:[%s3630_s6 + $0x78] sm:$0xff] }
 0x2e5   : > { %2026 = vst.msk [vmem:[#allocation2 + $0x58] sm:$0xff] %vm1965_vm0, %v2009_v54  ;;  %v2070_v22 = vpack.c.bf16 %v2059_v8, %v2058_v30 }
 0x2e7   : > { %2491 = vmatprep.subr.bf16.mxu0 %v2070_v22  ;;  %2519 = vmatprep.subr.bf16.mxu1 %v2070_v22 }
 0x2e8   : > { %v1945_v23 = vpop.xlane.xlu0 %1944  ;;  %2492 = vmatpush3.bf16.msra.mxu0 %v2070_v22  ;;  %2527 = vmatpush3.bf16.msra.mxu1 %v2070_v22  ;;  %v2079_v22 = vld [vmem:[%s3630_s6 + $0x28] sm:$0xff] }
 0x2e9   : > { %v2010_v24 = vmax.f32 %v1994_v3, %v1945_v23  ;;  %v2087_v3 = vld [vmem:[%s3630_s6 + $0x68] sm:$0xff] }
 0x2ea   : > { %v1950_v6 = vpop.xlane.xlu1 %1949  ;;  %v2060_v39 = vld [vmem:[#allocation2 + $0x50] sm:$0xff] }
 0x2eb   : > { %2027 = vst.msk [vmem:[#allocation2 + $0x60] sm:$0xff] %vm1965_vm0, %v2010_v24  ;;  %v2011_v25 = vmax.f32 %v1995_v59, %v1950_v6 }
 0x2ec   : > { %v2061_v41 = vld [vmem:[#allocation2 + $0x58] sm:$0xff] }
 0x2ed   : > { %2028 = vst.msk [vmem:[#allocation2 + $0x68] sm:$0xff] %vm1965_vm0, %v2011_v25  ;;  %v2071_v36 = vpack.c.bf16 %v2061_v41, %v2060_v39 }
 0x2ef   : > { %2493 = vmatprep.subr.bf16.mxu0 %v2071_v36  ;;  %2520 = vmatprep.subr.bf16.mxu1 %v2071_v36 }
 0x2f0   : > { %v1955_v15 = vpop.xlane.xlu0 %1954  ;;  %2494 = vmatpush3.bf16.msra.mxu0 %v2071_v36  ;;  %2528 = vmatpush3.bf16.msra.mxu1 %v2071_v36 }
 0x2f1   : > { %v2012_v62 = vmax.f32 %v1996_v58, %v1955_v15 }
 0x2f2   : > { %v1960_v16 = vpop.xlane.xlu1 %1959  ;;  %v2062_v60 = vld [vmem:[#allocation2 + $0x60] sm:$0xff] }
 0x2f3   : > { %2029 = vst.msk [vmem:[#allocation2 + $0x70] sm:$0xff] %vm1965_vm0, %v2012_v62  ;;  %v2013_v50 = vmax.f32 %v1997_v12, %v1960_v16 }
 0x2f4   : > { %v2063_v17 = vld [vmem:[#allocation2 + $0x68] sm:$0xff] }
 0x2f5   : > { %2030 = vst.msk [vmem:[#allocation2 + $0x78] sm:$0xff] %vm1965_vm0, %v2013_v50  ;;  %v2072_v46 = vpack.c.bf16 %v2063_v17, %v2062_v60 }
 0x2f7   : > { %2495 = vmatprep.subr.bf16.mxu0 %v2072_v46  ;;  %2521 = vmatprep.subr.bf16.mxu1 %v2072_v46 }
 0x2f8   : > { %2496 = vmatpush3.bf16.msra.mxu0 %v2072_v46  ;;  %2529 = vmatpush3.bf16.msra.mxu1 %v2072_v46 }
 0x2fa   : > { %v2064_v52 = vld [vmem:[#allocation2 + $0x70] sm:$0xff] }
 0x2fc   : > { %v2065_v32 = vld [vmem:[#allocation2 + $0x78] sm:$0xff] }
 0x2fd   : > { %v2073_v57 = vpack.c.bf16 %v2065_v32, %v2064_v52 }
 0x2ff   : > { %2497 = vmatprep.subr.bf16.mxu0 %v2073_v57  ;;  %2522 = vmatprep.subr.bf16.mxu1 %v2073_v57 }
 0x300   : > { %2498 = vmatpush3.bf16.msra.mxu0 %v2073_v57  ;;  %2530 = vmatpush3.bf16.msra.mxu1 %v2073_v57 }
 0x303   : > { %2500 = vmatmul.mubr.bf16.vlgmr.msra.gmra.mrb[32].mxu0 %v2596_v37  ;;  %2508 = vmatmul.mubr.bf16.vlgmr.msra.gmra.mrb[32].mxu1 %v2597_v53 }
 0x304   : > { %2503 = vmatprep.mubr.bf16.mxu0 %v2598_v1  ;;  %2511 = vmatprep.mubr.bf16.mxu1 %v2599_v49 }
 0x30b   : > { %2504 = vmatmul.mubr.bf16.gmra.mrb[36].mxu0 %v2600_v34  ;;  %2512 = vmatmul.mubr.bf16.gmra.mrb[36].mxu1 %v2601_v35 }
 0x3d6   : > { %v2501_v45 = vpop.f32.mrb[32].mxu0  ;;  %v2509_v11 = vpop.f32.mrb[32].mxu1 }
 0x3d7   : > { %v2181_v5 = vadd.f32 %v2501_v45, %v2076_v9  ;;  %v2213_v33 = vadd.f32 %v2509_v11, %v2084_v10  ;;  %v2172_v13 = vpop.f32.mrb[33].mxu0  ;;  %v2204_v18 = vpop.f32.mrb[33].mxu1 }
 0x3d8   : > { %v2173_v38 = vadd.f32 %v2172_v13, %v2074_v43  ;;  %v2205_v27 = vadd.f32 %v2204_v18, %v2082_v31  ;;  %v2502_v28 = vpop.f32.mrb[34].mxu0  ;;  %v2510_v0 = vpop.f32.mrb[34].mxu1 }
 0x3d9   : > { %2237 = vst.msk [vmem:[%s3545_s27 + $0x10] sm:$0xff] %vm1965_vm0, %v2181_v5  ;;  %2245 = vst.msk [vmem:[%s3545_s27 + $0x50] sm:$0xff] %vm1965_vm0, %v2213_v33  ;;  %v2184_v29 = vadd.f32 %v2502_v28, %v2077_v47  ;;  %v2216_v20 = vadd.f32 %v2510_v0, %v2085_v61  ;;  %v2175_v26 = vpop.f32.mrb[35].mxu0  ;;  %v2207_v21 = vpop.f32.mrb[35].mxu1 }
 0x3da   : > { %2235 = vst.msk [vmem:[%s3545_s27] sm:$0xff] %vm1965_vm0, %v2173_v38  ;;  %2243 = vst.msk [vmem:[%s3545_s27 + $0x40] sm:$0xff] %vm1965_vm0, %v2205_v27  ;;  %v2176_v2 = vadd.f32 %v2175_v26, %v2075_v40  ;;  %v2208_v14 = vadd.f32 %v2207_v21, %v2083_v42 }
 0x3db   : > { %2238 = vst.msk [vmem:[%s3545_s27 + $0x18] sm:$0xff] %vm1965_vm0, %v2184_v29  ;;  %2246 = vst.msk [vmem:[%s3545_s27 + $0x58] sm:$0xff] %vm1965_vm0, %v2216_v20 }
 0x3dc   : > { %2236 = vst.msk [vmem:[%s3545_s27 + $0x8] sm:$0xff] %vm1965_vm0, %v2176_v2  ;;  %2244 = vst.msk [vmem:[%s3545_s27 + $0x48] sm:$0xff] %vm1965_vm0, %v2208_v14 }
 0x3de   : > { %v2505_v63 = vpop.f32.mrb[36].mxu0  ;;  %v2513_v56 = vpop.f32.mrb[36].mxu1 }
 0x3df   : > { %v2197_v51 = vadd.f32 %v2505_v63, %v2080_v44  ;;  %v2229_v54 = vadd.f32 %v2513_v56, %v2088_v4  ;;  %v2188_v30 = vpop.f32.mrb[37].mxu0  ;;  %v2220_v8 = vpop.f32.mrb[37].mxu1 }
 0x3e0   : > { %v2189_v23 = vadd.f32 %v2188_v30, %v2078_v55  ;;  %v2221_v59 = vadd.f32 %v2220_v8, %v2086_v7  ;;  %v2506_v24 = vpop.f32.mrb[38].mxu0  ;;  %v2514_v6 = vpop.f32.mrb[38].mxu1 }
 0x3e1   : > { %2241 = vst.msk [vmem:[%s3545_s27 + $0x30] sm:$0xff] %vm1965_vm0, %v2197_v51  ;;  %2249 = vst.msk [vmem:[%s3545_s27 + $0x70] sm:$0xff] %vm1965_vm0, %v2229_v54  ;;  %v2200_v25 = vadd.f32 %v2506_v24, %v2081_v19  ;;  %v2232_v39 = vadd.f32 %v2514_v6, %v2089_v48  ;;  %v2191_v41 = vpop.f32.mrb[39].mxu0  ;;  %v2223_v36 = vpop.f32.mrb[39].mxu1 }
 0x3e2   : > { %2239 = vst.msk [vmem:[%s3545_s27 + $0x20] sm:$0xff] %vm1965_vm0, %v2189_v23  ;;  %2247 = vst.msk [vmem:[%s3545_s27 + $0x60] sm:$0xff] %vm1965_vm0, %v2221_v59  ;;  %v2192_v58 = vadd.f32 %v2191_v41, %v2079_v22  ;;  %v2224_v15 = vadd.f32 %v2223_v36, %v2087_v3 }
 0x3e3   : > { %2242 = vst.msk [vmem:[%s3545_s27 + $0x38] sm:$0xff] %vm1965_vm0, %v2200_v25  ;;  %2250 = vst.msk [vmem:[%s3545_s27 + $0x78] sm:$0xff] %vm1965_vm0, %v2232_v39 }
 0x3e4   : > { %2240 = vst.msk [vmem:[%s3545_s27 + $0x28] sm:$0xff] %vm1965_vm0, %v2192_v58  ;;  %2248 = vst.msk [vmem:[%s3545_s27 + $0x68] sm:$0xff] %vm1965_vm0, %v2224_v15 }
 0x3e5 PF: > { %s19_s29 = sadd.s32 1, %s2624_s29   ;;  %s3648_s27 = smov %s2620_s28 }
 0x3e6   : > { %p16_p5 = scmp.ge.s32.totalorder %s19_s29, 4   ;;  %s3649_s28 = smov %s3651_s30 }
 0x3e8   :  { %18 = sbr.rel (!%p16_p5) target bundleno = 2 (0x2), region = 98 }

</bundles_post_ra>
